<compile_context>
chip_gen: v7x
topology: tpu7x:2x2x1
jax: 0.10.0
libtpu: 0.0.40
codegen_flags: <defaults>
</compile_context>

<pallas_src>
import math
import functools

import jax
import jax.numpy as jnp
from jax.experimental import pallas as pl
from jax.experimental.pallas import tpu as pltpu


# Set to jnp.bfloat16 for ~2x MXU throughput on v6e/v7x (reduced precision);
# f32 keeps exact parity with the PyTorch reference.
MXU_DTYPE = jnp.float32
VMEM_LIMIT = 48 * 1024 * 1024  # explicit scoped-VMEM limit, < 64 MiB (v7x-safe)


# ---------------------------------------------------------------------------
# Small in-kernel helpers
# ---------------------------------------------------------------------------

def _mm(a, b):
    return jnp.dot(a.astype(MXU_DTYPE), b.astype(MXU_DTYPE),
                   preferred_element_type=jnp.float32)


def _dot_t(a, b):
    """(M,K) x (N,K) -> (M,N) contracting the last dims of both operands."""
    return jax.lax.dot_general(a.astype(MXU_DTYPE), b.astype(MXU_DTYPE),
                               (((1,), (1,)), ((), ())),
                               preferred_element_type=jnp.float32)


def _ln(x, pack):
    """LayerNorm over the last dim; pack is (2, C): row0=weight, row1=bias."""
    mu = jnp.mean(x, axis=-1, keepdims=True)
    var = jnp.mean((x - mu) ** 2, axis=-1, keepdims=True)
    return (x - mu) * jax.lax.rsqrt(var + 1e-5) * pack[0:1] + pack[1:2]


def _row_block(R, max_rows=256):
    """Largest row-tile <= max_rows that divides R (or R itself if small)."""
    if R <= max_rows:
        return R
    for blk in (256, 128, 64, 32, 16, 8):
        if R % blk == 0:
            return blk
    return R


def _const_spec(shape):
    nd = len(shape)
    return pl.BlockSpec(tuple(shape), lambda i, _nd=nd: (0,) * _nd)


# ---------------------------------------------------------------------------
# Pallas kernels
# ---------------------------------------------------------------------------

def _ln_lin_kernel(x_ref, lnp_ref, w_ref, b_ref, xn_ref, y_ref):
    xn = _ln(x_ref[...], lnp_ref[...])
    xn_ref[...] = xn
    y_ref[...] = _mm(xn, w_ref[...]) + b_ref[...]


def _matmul_kernel(x_ref, w_ref, o_ref):
    o_ref[...] = _mm(x_ref[...], w_ref[...])


def _matmul_bias_res_kernel(x_ref, w_ref, b_ref, r_ref, o_ref):
    o_ref[...] = r_ref[...] + _mm(x_ref[...], w_ref[...]) + b_ref[...]


def _ipa_attn_kernel(q_ref, k_ref, qp_ref, kp_ref, v_ref, vp_ref, b_ref,
                     z_ref, o_ref):
    """Fused per-(batch, head) IPA attention.

    q is pre-scaled by w_l/sqrt(c) (folded into the projection weight); qp/kp
    are global-frame points pre-scaled by sqrt(w_l * softplus(gamma_h) * w_c/2);
    pair bias is pre-scaled by w_l (folded into wb).  The point-distance bias
    uses the expanded square |q|^2+|k|^2-2 q.k, folded into a single MXU matmul
    together with the q.k term.
    """
    q = q_ref[0, 0]                                     # (N, c)
    k = k_ref[0, 0]                                     # (N, c)
    qp = qp_ref[0, 0]                                   # (N, 3*nq)
    kp = kp_ref[0, 0]                                   # (N, 3*nq)

    qn = jnp.sum(qp * qp, axis=-1, keepdims=True)       # (N, 1)
    kn = jnp.sum(kp * kp, axis=-1, keepdims=True)       # (N, 1)

    # [q | qp | 1] . [k | 2*kp | -kn]^T  ==  q.k + 2*qp.kp - kn[j]
    lhs = jnp.concatenate([q, qp, jnp.ones_like(qn)], axis=-1)
    rhs = jnp.concatenate([k, 2.0 * kp, -kn], axis=-1)
    logits = _dot_t(lhs, rhs) + b_ref[0, 0] - qn        # (N, N)

    m = jnp.max(logits, axis=-1, keepdims=True)
    e = jnp.exp(logits - m)
    a = e / jnp.sum(e, axis=-1, keepdims=True)          # softmax rows

    vv = jnp.concatenate([v_ref[0, 0], vp_ref[0, 0]], axis=-1)   # (N, c+3*nv)
    o23 = _mm(a, vv)                                    # (N, c + 3*nv)
    zt = z_ref[0]                                       # (N, N, c_z)
    o1 = jnp.sum(a[:, :, None] * zt, axis=1)            # (N, c_z)

    o_ref[0, 0] = jnp.concatenate([o1, o23], axis=-1)


def _post_ipa_kernel(s_ref, si_ref, ln2_ref, trw_ref, trb_ref, ln3_ref,
                     bbw_ref, bbb_ref, law_ref, lab_ref, saw_ref, sab_ref,
                     la3w_ref, la3b_ref, snew_ref, ex_ref):
    """LN_s2 -> transition MLP -> residual -> LN_s3 -> {backbone, angle head}."""
    trw = trw_ref[...]
    trb = trb_ref[...]
    saw = saw_ref[...]
    sab = sab_ref[...]
    law = law_ref[...]

    # TODO(synk): nn.Dropout(0.1) treated as identity (inference semantics).
    s = _ln(s_ref[...], ln2_ref[...])                   # ln_s_2
    h = jnp.maximum(_mm(s, trw[0]) + trb[0:1], 0.0)
    h = jnp.maximum(_mm(h, trw[1]) + trb[1:2], 0.0)
    h = _mm(h, trw[2]) + trb[2:3]
    s = _ln(s + h, ln3_ref[...])                        # ln_s_3
    snew_ref[...] = s

    bb = _mm(s, bbw_ref[...]) + bbb_ref[...]            # (rows, 6)

    a = _mm(s, law[0]) + _mm(si_ref[...], law[1]) + lab_ref[...]
    a1 = _mm(jnp.maximum(a, 0.0), saw[0]) + sab[0:1]
    a1 = _mm(jnp.maximum(a1, 0.0), saw[1]) + sab[1:2]
    a = a + a1
    a2 = _mm(jnp.maximum(a, 0.0), saw[2]) + sab[2:3]
    a2 = _mm(jnp.maximum(a2, 0.0), saw[3]) + sab[3:4]
    a = a + a2
    alpha = _mm(jnp.maximum(a, 0.0), la3w_ref[...]) + la3b_ref[...]   # (rows, 4)

    ex_ref[...] = jnp.concatenate([bb, alpha], axis=-1)


# ---------------------------------------------------------------------------
# pallas_call wrappers (row-tiled, lane-dense channels-last slabs)
# ---------------------------------------------------------------------------

def _cparams(n_axes=1):
    return pltpu.CompilerParams(
        dimension_semantics=("parallel",) * n_axes,
        vmem_limit_bytes=VMEM_LIMIT)


def ln_linear(x, ln_pack, W, b):
    """Fused LayerNorm(last dim) + matmul: returns (LN(x), LN(x) @ W + b)."""
    shp = x.shape
    Cin, Cout = shp[-1], W.shape[1]
    R = math.prod(shp[:-1])
    blk = _row_block(R)
    xn, y = pl.pallas_call(
        _ln_lin_kernel,
        out_shape=(jax.ShapeDtypeStruct((R, Cin), jnp.float32),
                   jax.ShapeDtypeStruct((R, Cout), jnp.float32)),
        grid=(R // blk,),
        in_specs=[pl.BlockSpec((blk, Cin), lambda i: (i, 0)),
                  pl.BlockSpec((2, Cin), lambda i: (0, 0)),
                  pl.BlockSpec((Cin, Cout), lambda i: (0, 0)),
                  pl.BlockSpec((1, Cout), lambda i: (0, 0))],
        out_specs=[pl.BlockSpec((blk, Cin), lambda i: (i, 0)),
                   pl.BlockSpec((blk, Cout), lambda i: (i, 0))],
        compiler_params=_cparams(1),
    )(x.reshape(R, Cin).astype(jnp.float32), ln_pack.astype(jnp.float32),
      W.astype(jnp.float32), b.reshape(1, Cout).astype(jnp.float32))
    return xn.reshape(shp), y.reshape(shp[:-1] + (Cout,))


def matmul_plain(x, W):
    """x @ W over the last dim (no bias; used for the fused IPA projection)."""
    shp = x.shape
    Cin, Cout = shp[-1], W.shape[1]
    R = math.prod(shp[:-1])
    blk = _row_block(R)
    y = pl.pallas_call(
        _matmul_kernel,
        out_shape=jax.ShapeDtypeStruct((R, Cout), jnp.float32),
        grid=(R // blk,),
        in_specs=[pl.BlockSpec((blk, Cin), lambda i: (i, 0)),
                  pl.BlockSpec((Cin, Cout), lambda i: (0, 0))],
        out_specs=pl.BlockSpec((blk, Cout), lambda i: (i, 0)),
        compiler_params=_cparams(1),
    )(x.reshape(R, Cin).astype(jnp.float32), W.astype(jnp.float32))
    return y.reshape(shp[:-1] + (Cout,))


def matmul_bias_residual(x, W, b, r):
    shp = x.shape
    Cin, Cout = shp[-1], W.shape[1]
    R = math.prod(shp[:-1])
    blk = _row_block(R)
    y = pl.pallas_call(
        _matmul_bias_res_kernel,
        out_shape=jax.ShapeDtypeStruct((R, Cout), jnp.float32),
        grid=(R // blk,),
        in_specs=[pl.BlockSpec((blk, Cin), lambda i: (i, 0)),
                  pl.BlockSpec((Cin, Cout), lambda i: (0, 0)),
                  pl.BlockSpec((1, Cout), lambda i: (0, 0)),
                  pl.BlockSpec((blk, Cout), lambda i: (i, 0))],
        out_specs=pl.BlockSpec((blk, Cout), lambda i: (i, 0)),
        compiler_params=_cparams(1),
    )(x.reshape(R, Cin).astype(jnp.float32), W.astype(jnp.float32),
      b.reshape(1, Cout).astype(jnp.float32), r.reshape(R, Cout).astype(jnp.float32))
    return y.reshape(shp[:-1] + (Cout,))


def ipa_attention(q, k, qp, kp, v, vp, bias, z_n):
    """Fused IPA attention, grid over (batch, head).

    The z block's index map is constant over heads (the "arbitrary" inner axis
    iterates sequentially), so it is DMA'd once per batch -- Pallas skips
    re-fetching unchanged input blocks."""
    B, H, N, c = q.shape
    P = qp.shape[-1]
    Vp = vp.shape[-1]
    c_z = z_n.shape[-1]
    Dout = c_z + c + Vp
    return pl.pallas_call(
        _ipa_attn_kernel,
        out_shape=jax.ShapeDtypeStruct((B, H, N, Dout), jnp.float32),
        grid=(B, H),
        in_specs=[pl.BlockSpec((1, 1, N, c), lambda b, h: (b, h, 0, 0)),
                  pl.BlockSpec((1, 1, N, c), lambda b, h: (b, h, 0, 0)),
                  pl.BlockSpec((1, 1, N, P), lambda b, h: (b, h, 0, 0)),
                  pl.BlockSpec((1, 1, N, P), lambda b, h: (b, h, 0, 0)),
                  pl.BlockSpec((1, 1, N, c), lambda b, h: (b, h, 0, 0)),
                  pl.BlockSpec((1, 1, N, Vp), lambda b, h: (b, h, 0, 0)),
                  pl.BlockSpec((1, 1, N, N), lambda b, h: (b, h, 0, 0)),
                  pl.BlockSpec((1, N, N, c_z), lambda b, h: (b, 0, 0, 0))],
        out_specs=pl.BlockSpec((1, 1, N, Dout), lambda b, h: (b, h, 0, 0)),
        compiler_params=pltpu.CompilerParams(
            dimension_semantics=("parallel", "arbitrary"),
            vmem_limit_bytes=VMEM_LIMIT),
    )(q, k, qp, kp, v, vp, bias, z_n)


def post_ipa(s, s_init_n, p):
    B, N, c_s = s.shape
    R = B * N
    blk = _row_block(R)

    def row_spec(C):
        return pl.BlockSpec((blk, C), lambda i: (i, 0))

    s_new, extras = pl.pallas_call(
        _post_ipa_kernel,
        out_shape=(jax.ShapeDtypeStruct((R, c_s), jnp.float32),
                   jax.ShapeDtypeStruct((R, 10), jnp.float32)),
        grid=(R // blk,),
        in_specs=[row_spec(c_s), row_spec(c_s),
                  _const_spec(p['ln_s2'].shape),
                  _const_spec(p['tr_w'].shape), _const_spec(p['tr_b'].shape),
                  _const_spec(p['ln_s3'].shape),
                  _const_spec(p['bb_w'].shape), _const_spec(p['bb_b'].shape),
                  _const_spec(p['la_w'].shape), _const_spec(p['la_b'].shape),
                  _const_spec(p['sa_w'].shape), _const_spec(p['sa_b'].shape),
                  _const_spec(p['la3_w'].shape), _const_spec(p['la3_b'].shape)],
        out_specs=[row_spec(c_s), row_spec(10)],
        compiler_params=_cparams(1),
    )(s.reshape(R, c_s), s_init_n.reshape(R, c_s),
      p['ln_s2'], p['tr_w'], p['tr_b'], p['ln_s3'],
      p['bb_w'], p['bb_b'], p['la_w'], p['la_b'],
      p['sa_w'], p['sa_b'], p['la3_w'], p['la3_b'])
    return s_new.reshape(B, N, c_s), extras.reshape(B, N, 10)


# ---------------------------------------------------------------------------
# Rigid frame algebra / quaternions / losses (tiny 3x3 ops -> plain JAX)
# ---------------------------------------------------------------------------

def t_inverse(t):
    t_r, t_t = t
    t_r_inv = jnp.swapaxes(t_r, -1, -2)
    t_t_inv = jnp.einsum('bnij,bnj->bni', -t_r_inv, t_t)
    return (t_r_inv, t_t_inv)


def t_compose(t1, t2):
    r1, tt1 = t1
    r2, tt2 = t2
    r = jnp.einsum('bnij,bnjk->bnik', r1, r2)
    tt = jnp.einsum('bnij,bnj->bni', r1, tt2) + tt1
    return (r, tt)


def apply_rigid(t, pts):
    """Local -> global for points laid out (B, N, h, p, 3)."""
    t_r, t_t = t
    return jnp.einsum('bnij,bnhpj->bnhpi', t_r, pts) + t_t[:, :, None, None, :]


def apply_rigid_inv(t, pts):
    """Global -> local for points laid out (B, h, N, p, 3)."""
    t_r, t_t = t
    return jnp.einsum('bnji,bhnpj->bhnpi', t_r, pts - t_t[:, None, :, None, :])


def quat_to_rigid(bb):
    """bb: (B, N, 6) -> rigid frame from the unnormalized quaternion (1,b,c,d)."""
    bq, cq, dq = bb[..., 0], bb[..., 1], bb[..., 2]
    t_t = bb[..., 3:6]
    denom = jnp.sqrt(1.0 + bq ** 2 + cq ** 2 + dq ** 2)
    aq = 1.0 / denom
    bq, cq, dq = bq / denom, cq / denom, dq / denom
    r00 = aq ** 2 + bq ** 2 - cq ** 2 - dq ** 2
    r01 = 2 * bq * cq - 2 * aq * dq
    r02 = 2 * bq * dq + 2 * aq * cq
    r10 = 2 * bq * cq + 2 * aq * dq
    r11 = aq ** 2 - bq ** 2 + cq ** 2 - dq ** 2
    r12 = 2 * cq * dq - 2 * aq * bq
    r20 = 2 * bq * dq - 2 * aq * cq
    r21 = 2 * cq * dq + 2 * aq * bq
    r22 = aq ** 2 - bq ** 2 - cq ** 2 + dq ** 2
    row0 = jnp.stack([r00, r01, r02], axis=-1)
    row1 = jnp.stack([r10, r11, r12], axis=-1)
    row2 = jnp.stack([r20, r21, r22], axis=-1)
    t_r = jnp.stack([row0, row1, row2], axis=-2)       # (B, N, 3, 3)
    return (t_r, t_t)


def compute_fape(t, x, tt, xt, mask, eps=1e-12, zscale=10.0):
    t_r_inv, t_t_inv = t_inverse(t)
    xg = jnp.einsum('bixy,bjy->bijx', t_r_inv, x) + t_t_inv[:, :, None, :]
    tt_r_inv, tt_t_inv = t_inverse(tt)
    xtg = jnp.einsum('bixy,bjy->bijx', tt_r_inv, xt) + tt_t_inv[:, :, None, :]
    mask_ij = jnp.einsum('bi,bj->bij', mask, mask)
    d = jnp.sqrt(jnp.sum((xg - xtg) ** 2, axis=-1) + eps)
    sel = (mask_ij != 0).astype(d.dtype)
    # masked mean (equivalent to torch indexing with torch.where(mask))
    return (1.0 / zscale) * jnp.sum(jnp.minimum(10.0, d) * sel) / jnp.maximum(jnp.sum(sel), 1.0)


def torsion_angle_loss(alpha, alpha_true, mask):
    l = jnp.linalg.norm(alpha, axis=2)                 # (B, 2, N)
    # NOTE: reproduces the PyTorch broadcasting of `alpha / l` (valid because B == 2).
    alpha_pred = alpha / l
    denom = jnp.maximum(jnp.sum(mask) * 2.0, 1.0)
    loss_torsion = jnp.sum(jnp.linalg.norm(alpha_pred - alpha_true, axis=2) ** 2 * mask) / denom
    loss_anglenorm = jnp.sum(jnp.abs(l - 1.0) * mask) / denom
    return loss_torsion + 0.02 * loss_anglenorm


# ---------------------------------------------------------------------------
# StructureModule forward
# ---------------------------------------------------------------------------

def structure_module_forward(p, s_initial, z, t_true, alpha_true, x_true, mask,
                             n_layer=2, n_heads=12, c=16, nq=4, nv=8):
    B, c_s, N = s_initial.shape
    c_z = z.shape[1]
    w_c = math.sqrt(2.0 / (9.0 * nq))
    w_l = math.sqrt(1.0 / 3.0)
    hc = n_heads * c
    hq = 3 * n_heads * nq

    # channels-last activations
    s_init_cl = jnp.transpose(s_initial, (0, 2, 1)).astype(jnp.float32)   # (B,N,c_s)
    z_cl = jnp.transpose(z, (0, 2, 3, 1)).astype(jnp.float32)             # (B,N,N,c_z)

    # fused LN(s_initial) + linear_s_1;  fused LN(z) + pair-bias projection
    # (pair-bias weight pre-scaled by w_l so the kernel adds it raw).
    s_init_n, s = ln_linear(s_init_cl, p['ln_s1'], p['lin_s1_w'], p['lin_s1_b'])
    z_n, bias_rows = ln_linear(z_cl, p['ln_z'], p['wb'] * w_l,
                               jnp.zeros((1, n_heads), jnp.float32))
    bias = jnp.transpose(bias_rows, (0, 3, 1, 2))                         # (B,h,N,N)

    # fold the q-scale (w_l / sqrt(c)) into the fused projection weight (once)
    ipa_w_eff = jnp.concatenate(
        [p['ipa_w'][:, :hc] * (w_l / math.sqrt(c)), p['ipa_w'][:, hc:]], axis=1)

    # per-head point scale folded into the operands: sqrt(w_l * softplus(gamma) * w_c / 2)
    point_scale = jnp.sqrt(w_l * jax.nn.softplus(p['gamma']) * w_c / 2.0)  # (h,1,1)

    t_r = jnp.broadcast_to(jnp.eye(3, dtype=jnp.float32), (B, N, 3, 3))
    t_t = jnp.zeros((B, N, 3), jnp.float32)
    t = (t_r, t_t)

    losses = []
    x = t_t
    for _ in range(n_layer):
        # ----------------------------- IPA -----------------------------
        proj = matmul_plain(s, ipa_w_eff)                                 # (B,N,1152)
        q = proj[..., :hc].reshape(B, N, n_heads, c)                      # pre-scaled
        k = proj[..., hc:2 * hc].reshape(B, N, n_heads, c)
        v = proj[..., 2 * hc:3 * hc].reshape(B, N, n_heads, c)
        qp = proj[..., 3 * hc:3 * hc + hq].reshape(B, N, n_heads, nq, 3)
        kp = proj[..., 3 * hc + hq:3 * hc + 2 * hq].reshape(B, N, n_heads, nq, 3)
        vp = proj[..., 3 * hc + 2 * hq:].reshape(B, N, n_heads, nv, 3)

        qp_g = apply_rigid(t, qp) * point_scale[None, None]
        kp_g = apply_rigid(t, kp) * point_scale[None, None]
        vp_g = apply_rigid(t, vp)

        q_bh = jnp.transpose(q, (0, 2, 1, 3))                             # (B,h,N,c)
        k_bh = jnp.transpose(k, (0, 2, 1, 3))
        v_bh = jnp.transpose(v, (0, 2, 1, 3))
        qp_f = jnp.transpose(qp_g, (0, 2, 1, 3, 4)).reshape(B, n_heads, N, 3 * nq)
        kp_f = jnp.transpose(kp_g, (0, 2, 1, 3, 4)).reshape(B, n_heads, N, 3 * nq)
        vp_f = jnp.transpose(vp_g, (0, 2, 1, 3, 4)).reshape(B, n_heads, N, 3 * nv)

        attn = ipa_attention(q_bh, k_bh, qp_f, kp_f, v_bh, vp_f, bias, z_n)
        o1 = attn[..., :c_z]                                              # (B,h,N,c_z)
        o2 = attn[..., c_z:c_z + c]                                       # (B,h,N,c)
        o3g = attn[..., c_z + c:].reshape(B, n_heads, N, nv, 3)
        o3l = apply_rigid_inv(t, o3g)                                     # (B,h,N,nv,3)
        o3n = jnp.sqrt(jnp.sum(o3l ** 2, axis=(1, 3, 4)))[..., None]      # (B,N,1)

        o1f = jnp.transpose(o1, (0, 2, 1, 3)).reshape(B, N, n_heads * c_z)
        o2f = jnp.transpose(o2, (0, 2, 1, 3)).reshape(B, N, n_heads * c)
        o3f = jnp.transpose(o3l, (0, 2, 1, 3, 4)).reshape(B, N, n_heads * nv * 3)
        cat = jnp.concatenate([o1f, o2f, o3f, o3n], axis=-1)              # (B,N,577)

        s = matmul_bias_residual(cat, p['ws'], p['ws_b'], s)              # s + IPA(s)

        # ---- LN2 + transition + LN3 + backbone linear + angle head ----
        s, extras = post_ipa(s, s_init_n, p)
        bb = extras[..., :6]
        alpha4 = extras[..., 6:]

        t = t_compose(t, quat_to_rigid(bb))
        alpha = jnp.transpose(alpha4.reshape(B, N, 2, 2), (0, 2, 3, 1))   # (B,2,2,N)

        x = t[1]
        losses.append(compute_fape(t, x, t_true, x_true, mask, eps=1e-12)
                      + torsion_angle_loss(alpha, alpha_true, mask))
        # TODO(synk): .detach() on t_r between layers is an autograd-only effect; no-op here.

    l_aux = jnp.mean(jnp.stack(losses))
    return x, l_aux


# ---------------------------------------------------------------------------
# Deterministic parameter initialization (synthetic weights, channels-last)
# ---------------------------------------------------------------------------

def init_params(key, c_s=32, c_z=8, c_a=16, n_heads=12, c=16, nq=4, nv=8):
    keys = jax.random.split(key, 32)
    it = iter(keys)

    def w(shape, scale=0.1):
        return (scale * jax.random.normal(next(it), shape)).astype(jnp.float32)

    def ln_pack(dim):
        return jnp.concatenate([jnp.ones((1, dim), jnp.float32),
                                jnp.zeros((1, dim), jnp.float32)], axis=0)

    p = {}
    p['ln_s1'], p['ln_z'] = ln_pack(c_s), ln_pack(c_z)
    p['ln_s2'], p['ln_s3'] = ln_pack(c_s), ln_pack(c_s)
    p['lin_s1_w'], p['lin_s1_b'] = w((c_s, c_s)), w((1, c_s))
    proj_dim = 3 * n_heads * c + 2 * 3 * n_heads * nq + 3 * n_heads * nv
    p['ipa_w'] = w((c_s, proj_dim))           # fused q|k|v|qp|kp|vp projection
    p['wb'] = w((c_z, n_heads))
    p['gamma'] = w((n_heads, 1, 1), 0.5)
    cin_s = c_z * n_heads + c * n_heads + 3 * n_heads * nv + 1
    p['ws'], p['ws_b'] = w((cin_s, c_s)), w((1, c_s))
    p['tr_w'], p['tr_b'] = w((3, c_s, c_s)), w((3, c_s))
    p['bb_w'], p['bb_b'] = w((c_s, 6)), w((1, 6))
    p['la_w'], p['la_b'] = w((2, c_s, c_a)), w((1, c_a))   # la_b = la1_b + la2_b
    p['sa_w'], p['sa_b'] = w((4, c_a, c_a)), w((4, c_a))
    p['la3_w'], p['la3_b'] = w((c_a, 4)), w((1, 4))
    return p


# ---------------------------------------------------------------------------

if __name__ == "__main__":
    B, N, c_s, c_z, c_a, n_layer = 2, 8, 32, 8, 16, 2

    key = jax.random.PRNGKey(0)
    k_par, k_s, k_z, k_tt, k_at, k_xt = jax.random.split(key, 6)

    params = init_params(k_par, c_s=c_s, c_z=c_z, c_a=c_a)

    s_initial = jax.random.normal(k_s, (B, c_s, N), jnp.float32)
    z = jax.random.normal(k_z, (B, c_z, N, N), jnp.float32)
    t_r_true = jnp.broadcast_to(jnp.eye(3, dtype=jnp.float32), (B, N, 3, 3))
    t_t_true = 0.5 * jax.random.normal(k_tt, (B, N, 3), jnp.float32)
    t_true = (t_r_true, t_t_true)
    alpha_true = jax.random.normal(k_at, (B, 2, 2, N), jnp.float32)
    alpha_true = alpha_true / jnp.linalg.norm(alpha_true, axis=2, keepdims=True)
    x_true = jax.random.normal(k_xt, (B, N, 3), jnp.float32)
    mask = jnp.ones((B, N), jnp.float32)

    fwd = jax.jit(functools.partial(structure_module_forward, n_layer=n_layer))
    x, l_aux = fwd(params, s_initial, z, t_true, alpha_true, x_true, mask)
    jax.block_until_ready((x, l_aux))

    assert x.shape == (B, N, 3)
    assert l_aux.shape == ()
    assert bool(jnp.isfinite(l_aux))
    print("KERNEL_OK")
</pallas_src>

<mosaic_0001>
module attributes {stable_mosaic.version = 11 : i64} {
  func.func @_ln_lin_kernel(%arg0: i32, %arg1: memref<16x32xf32, #tpu.memory_space<vmem>>, %arg2: memref<2x32xf32, #tpu.memory_space<vmem>>, %arg3: memref<32x32xf32, #tpu.memory_space<vmem>>, %arg4: memref<1x32xf32, #tpu.memory_space<vmem>>, %arg5: memref<16x32xf32, #tpu.memory_space<vmem>>, %arg6: memref<16x32xf32, #tpu.memory_space<vmem>>) attributes {dimension_semantics = [#tpu.dimension_semantics<parallel>], iteration_bounds = array<i64: 1>, scalar_prefetch = 0 : i64, scratch_operands = 0 : i64, tpu.core_type = #tpu.core_type<tc>, window_params = [{transform_indices = @transform_0, window_bounds = array<i64: 16, 32>}, {pipeline_mode = #tpu.pipeline_mode<synchronous>, transform_indices = @transform_1, window_bounds = array<i64: 2, 32>}, {pipeline_mode = #tpu.pipeline_mode<synchronous>, transform_indices = @transform_2, window_bounds = array<i64: 32, 32>}, {pipeline_mode = #tpu.pipeline_mode<synchronous>, transform_indices = @transform_3, window_bounds = array<i64: 1, 32>}, {transform_indices = @transform_4, window_bounds = array<i64: 16, 32>}, {transform_indices = @transform_5, window_bounds = array<i64: 16, 32>}]} {
    %c0 = arith.constant 0 : index
    %c0_0 = arith.constant 0 : index
    %0 = vector.load %arg1[%c0, %c0_0] : memref<16x32xf32, #tpu.memory_space<vmem>>, vector<16x32xf32>
    %c0_1 = arith.constant 0 : index
    %c0_2 = arith.constant 0 : index
    %1 = vector.load %arg2[%c0_1, %c0_2] : memref<2x32xf32, #tpu.memory_space<vmem>>, vector<2x32xf32>
    %cst = arith.constant dense<0.000000e+00> : vector<16xf32>
    %2 = vector.multi_reduction <add>, %0, %cst [1] : vector<16x32xf32> to vector<16xf32>
    %3 = vector.shape_cast %2 : vector<16xf32> to vector<16x1xf32>
    %cst_3 = arith.constant 3.200000e+01 : f32
    %4 = vector.broadcast %cst_3 : f32 to vector<16x1xf32>
    %5 = arith.divf %3, %4 : vector<16x1xf32>
    %6 = vector.broadcast %5 : vector<16x1xf32> to vector<16x32xf32>
    %7 = arith.subf %0, %6 : vector<16x32xf32>
    %8 = arith.mulf %7, %7 : vector<16x32xf32>
    %cst_4 = arith.constant dense<0.000000e+00> : vector<16xf32>
    %9 = vector.multi_reduction <add>, %8, %cst_4 [1] : vector<16x32xf32> to vector<16xf32>
    %10 = vector.shape_cast %9 : vector<16xf32> to vector<16x1xf32>
    %cst_5 = arith.constant 3.200000e+01 : f32
    %11 = vector.broadcast %cst_5 : f32 to vector<16x1xf32>
    %12 = arith.divf %10, %11 : vector<16x1xf32>
    %13 = vector.broadcast %5 : vector<16x1xf32> to vector<16x32xf32>
    %14 = arith.subf %0, %13 : vector<16x32xf32>
    %cst_6 = arith.constant 9.99999974E-6 : f32
    %15 = vector.broadcast %cst_6 : f32 to vector<16x1xf32>
    %16 = arith.addf %12, %15 : vector<16x1xf32>
    %17 = math.rsqrt %16 : vector<16x1xf32>
    %18 = vector.broadcast %17 : vector<16x1xf32> to vector<16x32xf32>
    %19 = arith.mulf %14, %18 : vector<16x32xf32>
    %20 = vector.extract_strided_slice %1 {offsets = [0, 0], sizes = [1, 32], strides = [1, 1]} : vector<2x32xf32> to vector<1x32xf32>
    %21 = vector.broadcast %20 : vector<1x32xf32> to vector<16x32xf32>
    %22 = arith.mulf %19, %21 : vector<16x32xf32>
    %23 = vector.extract_strided_slice %1 {offsets = [1, 0], sizes = [1, 32], strides = [1, 1]} : vector<2x32xf32> to vector<1x32xf32>
    %24 = vector.broadcast %23 : vector<1x32xf32> to vector<16x32xf32>
    %25 = arith.addf %22, %24 : vector<16x32xf32>
    %c0_7 = arith.constant 0 : index
    %c0_8 = arith.constant 0 : index
    %26 = vector.load %arg5[%c0_7, %c0_8] : memref<16x32xf32, #tpu.memory_space<vmem>>, vector<16x32xf32>
    tpu.vector_store %arg5[%c0_7, %c0_8], %25 {strides = array<i32>} : memref<16x32xf32, #tpu.memory_space<vmem>>, vector<16x32xf32>,
    %c0_9 = arith.constant 0 : index
    %c0_10 = arith.constant 0 : index
    %27 = vector.load %arg3[%c0_9, %c0_10] : memref<32x32xf32, #tpu.memory_space<vmem>>, vector<32x32xf32>
    %cst_11 = arith.constant dense<0.000000e+00> : vector<16x32xf32>
    %28 = tpu.matmul %25, %27, %cst_11 {dimension_numbers = #tpu.dot_dimension_numbers<[1], [0], [0], [1], [0, 0, 1, 1], [], []>} : vector<16x32xf32>, vector<32x32xf32>, vector<16x32xf32> -> vector<16x32xf32>
    %c0_12 = arith.constant 0 : index
    %c0_13 = arith.constant 0 : index
    %29 = vector.load %arg4[%c0_12, %c0_13] : memref<1x32xf32, #tpu.memory_space<vmem>>, vector<1x32xf32>
    %30 = vector.broadcast %29 : vector<1x32xf32> to vector<16x32xf32>
    %31 = arith.addf %28, %30 : vector<16x32xf32>
    %c0_14 = arith.constant 0 : index
    %c0_15 = arith.constant 0 : index
    %32 = vector.load %arg6[%c0_14, %c0_15] : memref<16x32xf32, #tpu.memory_space<vmem>>, vector<16x32xf32>
    tpu.vector_store %arg6[%c0_14, %c0_15], %31 {strides = array<i32>} : memref<16x32xf32, #tpu.memory_space<vmem>>, vector<16x32xf32>,
    return
  }
  func.func @transform_0(%arg0: i32) -> (i32, i32) {
    %c0_i32 = arith.constant 0 : i32
    %c0_i32_0 = arith.constant 0 : i32
    return %arg0, %c0_i32 : i32, i32
  }
  func.func @transform_1(%arg0: i32) -> (i32, i32) {
    %c0_i32 = arith.constant 0 : i32
    %c0_i32_0 = arith.constant 0 : i32
    %c0_i32_1 = arith.constant 0 : i32
    return %c0_i32, %c0_i32_0 : i32, i32
  }
  func.func @transform_2(%arg0: i32) -> (i32, i32) {
    %c0_i32 = arith.constant 0 : i32
    %c0_i32_0 = arith.constant 0 : i32
    %c0_i32_1 = arith.constant 0 : i32
    return %c0_i32, %c0_i32_0 : i32, i32
  }
  func.func @transform_3(%arg0: i32) -> (i32, i32) {
    %c0_i32 = arith.constant 0 : i32
    %c0_i32_0 = arith.constant 0 : i32
    %c0_i32_1 = arith.constant 0 : i32
    return %c0_i32, %c0_i32_0 : i32, i32
  }
  func.func @transform_4(%arg0: i32) -> (i32, i32) {
    %c0_i32 = arith.constant 0 : i32
    %c0_i32_0 = arith.constant 0 : i32
    return %arg0, %c0_i32 : i32, i32
  }
  func.func @transform_5(%arg0: i32) -> (i32, i32) {
    %c0_i32 = arith.constant 0 : i32
    %c0_i32_0 = arith.constant 0 : i32
    return %arg0, %c0_i32 : i32, i32
  }
}

module attributes {stable_mosaic.version = 11 : i64} {
  func.func @_matmul_kernel(%arg0: i32, %arg1: memref<16x32xf32, #tpu.memory_space<vmem>>, %arg2: memref<32x1152xf32, #tpu.memory_space<vmem>>, %arg3: memref<16x1152xf32, #tpu.memory_space<vmem>>) attributes {dimension_semantics = [#tpu.dimension_semantics<parallel>], iteration_bounds = array<i64: 1>, scalar_prefetch = 0 : i64, scratch_operands = 0 : i64, tpu.core_type = #tpu.core_type<tc>, window_params = [{transform_indices = @transform_0, window_bounds = array<i64: 16, 32>}, {pipeline_mode = #tpu.pipeline_mode<synchronous>, transform_indices = @transform_1, window_bounds = array<i64: 32, 1152>}, {transform_indices = @transform_2, window_bounds = array<i64: 16, 1152>}]} {
    %c0 = arith.constant 0 : index
    %c0_0 = arith.constant 0 : index
    %0 = vector.load %arg1[%c0, %c0_0] : memref<16x32xf32, #tpu.memory_space<vmem>>, vector<16x32xf32>
    %c0_1 = arith.constant 0 : index
    %c0_2 = arith.constant 0 : index
    %1 = vector.load %arg2[%c0_1, %c0_2] : memref<32x1152xf32, #tpu.memory_space<vmem>>, vector<32x1152xf32>
    %cst = arith.constant dense<0.000000e+00> : vector<16x1152xf32>
    %2 = tpu.matmul %0, %1, %cst {dimension_numbers = #tpu.dot_dimension_numbers<[1], [0], [0], [1], [0, 0, 1, 1], [], []>} : vector<16x32xf32>, vector<32x1152xf32>, vector<16x1152xf32> -> vector<16x1152xf32>
    %c0_3 = arith.constant 0 : index
    %c0_4 = arith.constant 0 : index
    %3 = vector.load %arg3[%c0_3, %c0_4] : memref<16x1152xf32, #tpu.memory_space<vmem>>, vector<16x1152xf32>
    tpu.vector_store %arg3[%c0_3, %c0_4], %2 {strides = array<i32>} : memref<16x1152xf32, #tpu.memory_space<vmem>>, vector<16x1152xf32>,
    return
  }
  func.func @transform_0(%arg0: i32) -> (i32, i32) {
    %c0_i32 = arith.constant 0 : i32
    %c0_i32_0 = arith.constant 0 : i32
    return %arg0, %c0_i32 : i32, i32
  }
  func.func @transform_1(%arg0: i32) -> (i32, i32) {
    %c0_i32 = arith.constant 0 : i32
    %c0_i32_0 = arith.constant 0 : i32
    %c0_i32_1 = arith.constant 0 : i32
    return %c0_i32, %c0_i32_0 : i32, i32
  }
  func.func @transform_2(%arg0: i32) -> (i32, i32) {
    %c0_i32 = arith.constant 0 : i32
    %c0_i32_0 = arith.constant 0 : i32
    return %arg0, %c0_i32 : i32, i32
  }
}

module attributes {stable_mosaic.version = 11 : i64} {
  func.func @_ln_lin_kernel(%arg0: i32, %arg1: memref<128x8xf32, #tpu.memory_space<vmem>>, %arg2: memref<2x8xf32, #tpu.memory_space<vmem>>, %arg3: memref<8x12xf32, #tpu.memory_space<vmem>>, %arg4: memref<1x12xf32, #tpu.memory_space<vmem>>, %arg5: memref<128x8xf32, #tpu.memory_space<vmem>>, %arg6: memref<128x12xf32, #tpu.memory_space<vmem>>) attributes {dimension_semantics = [#tpu.dimension_semantics<parallel>], iteration_bounds = array<i64: 1>, scalar_prefetch = 0 : i64, scratch_operands = 0 : i64, tpu.core_type = #tpu.core_type<tc>, window_params = [{transform_indices = @transform_0, window_bounds = array<i64: 128, 8>}, {pipeline_mode = #tpu.pipeline_mode<synchronous>, transform_indices = @transform_1, window_bounds = array<i64: 2, 8>}, {pipeline_mode = #tpu.pipeline_mode<synchronous>, transform_indices = @transform_2, window_bounds = array<i64: 8, 12>}, {pipeline_mode = #tpu.pipeline_mode<synchronous>, transform_indices = @transform_3, window_bounds = array<i64: 1, 12>}, {transform_indices = @transform_4, window_bounds = array<i64: 128, 8>}, {transform_indices = @transform_5, window_bounds = array<i64: 128, 12>}]} {
    %c0 = arith.constant 0 : index
    %c0_0 = arith.constant 0 : index
    %0 = vector.load %arg1[%c0, %c0_0] : memref<128x8xf32, #tpu.memory_space<vmem>>, vector<128x8xf32>
    %c0_1 = arith.constant 0 : index
    %c0_2 = arith.constant 0 : index
    %1 = vector.load %arg2[%c0_1, %c0_2] : memref<2x8xf32, #tpu.memory_space<vmem>>, vector<2x8xf32>
    %cst = arith.constant dense<0.000000e+00> : vector<128xf32>
    %2 = vector.multi_reduction <add>, %0, %cst [1] : vector<128x8xf32> to vector<128xf32>
    %3 = vector.shape_cast %2 : vector<128xf32> to vector<128x1xf32>
    %cst_3 = arith.constant 8.000000e+00 : f32
    %4 = vector.broadcast %cst_3 : f32 to vector<128x1xf32>
    %5 = arith.divf %3, %4 : vector<128x1xf32>
    %6 = vector.broadcast %5 : vector<128x1xf32> to vector<128x8xf32>
    %7 = arith.subf %0, %6 : vector<128x8xf32>
    %8 = arith.mulf %7, %7 : vector<128x8xf32>
    %cst_4 = arith.constant dense<0.000000e+00> : vector<128xf32>
    %9 = vector.multi_reduction <add>, %8, %cst_4 [1] : vector<128x8xf32> to vector<128xf32>
    %10 = vector.shape_cast %9 : vector<128xf32> to vector<128x1xf32>
    %cst_5 = arith.constant 8.000000e+00 : f32
    %11 = vector.broadcast %cst_5 : f32 to vector<128x1xf32>
    %12 = arith.divf %10, %11 : vector<128x1xf32>
    %13 = vector.broadcast %5 : vector<128x1xf32> to vector<128x8xf32>
    %14 = arith.subf %0, %13 : vector<128x8xf32>
    %cst_6 = arith.constant 9.99999974E-6 : f32
    %15 = vector.broadcast %cst_6 : f32 to vector<128x1xf32>
    %16 = arith.addf %12, %15 : vector<128x1xf32>
    %17 = math.rsqrt %16 : vector<128x1xf32>
    %18 = vector.broadcast %17 : vector<128x1xf32> to vector<128x8xf32>
    %19 = arith.mulf %14, %18 : vector<128x8xf32>
    %20 = vector.extract_strided_slice %1 {offsets = [0, 0], sizes = [1, 8], strides = [1, 1]} : vector<2x8xf32> to vector<1x8xf32>
    %21 = vector.broadcast %20 : vector<1x8xf32> to vector<128x8xf32>
    %22 = arith.mulf %19, %21 : vector<128x8xf32>
    %23 = vector.extract_strided_slice %1 {offsets = [1, 0], sizes = [1, 8], strides = [1, 1]} : vector<2x8xf32> to vector<1x8xf32>
    %24 = vector.broadcast %23 : vector<1x8xf32> to vector<128x8xf32>
    %25 = arith.addf %22, %24 : vector<128x8xf32>
    %c0_7 = arith.constant 0 : index
    %c0_8 = arith.constant 0 : index
    %26 = vector.load %arg5[%c0_7, %c0_8] : memref<128x8xf32, #tpu.memory_space<vmem>>, vector<128x8xf32>
    tpu.vector_store %arg5[%c0_7, %c0_8], %25 {strides = array<i32>} : memref<128x8xf32, #tpu.memory_space<vmem>>, vector<128x8xf32>,
    %c0_9 = arith.constant 0 : index
    %c0_10 = arith.constant 0 : index
    %27 = vector.load %arg3[%c0_9, %c0_10] : memref<8x12xf32, #tpu.memory_space<vmem>>, vector<8x12xf32>
    %cst_11 = arith.constant dense<0.000000e+00> : vector<128x12xf32>
    %28 = tpu.matmul %25, %27, %cst_11 {dimension_numbers = #tpu.dot_dimension_numbers<[1], [0], [0], [1], [0, 0, 1, 1], [], []>} : vector<128x8xf32>, vector<8x12xf32>, vector<128x12xf32> -> vector<128x12xf32>
    %c0_12 = arith.constant 0 : index
    %c0_13 = arith.constant 0 : index
    %29 = vector.load %arg4[%c0_12, %c0_13] : memref<1x12xf32, #tpu.memory_space<vmem>>, vector<1x12xf32>
    %30 = vector.broadcast %29 : vector<1x12xf32> to vector<128x12xf32>
    %31 = arith.addf %28, %30 : vector<128x12xf32>
    %c0_14 = arith.constant 0 : index
    %c0_15 = arith.constant 0 : index
    %32 = vector.load %arg6[%c0_14, %c0_15] : memref<128x12xf32, #tpu.memory_space<vmem>>, vector<128x12xf32>
    tpu.vector_store %arg6[%c0_14, %c0_15], %31 {strides = array<i32>} : memref<128x12xf32, #tpu.memory_space<vmem>>, vector<128x12xf32>,
    return
  }
  func.func @transform_0(%arg0: i32) -> (i32, i32) {
    %c0_i32 = arith.constant 0 : i32
    %c0_i32_0 = arith.constant 0 : i32
    return %arg0, %c0_i32 : i32, i32
  }
  func.func @transform_1(%arg0: i32) -> (i32, i32) {
    %c0_i32 = arith.constant 0 : i32
    %c0_i32_0 = arith.constant 0 : i32
    %c0_i32_1 = arith.constant 0 : i32
    return %c0_i32, %c0_i32_0 : i32, i32
  }
  func.func @transform_2(%arg0: i32) -> (i32, i32) {
    %c0_i32 = arith.constant 0 : i32
    %c0_i32_0 = arith.constant 0 : i32
    %c0_i32_1 = arith.constant 0 : i32
    return %c0_i32, %c0_i32_0 : i32, i32
  }
  func.func @transform_3(%arg0: i32) -> (i32, i32) {
    %c0_i32 = arith.constant 0 : i32
    %c0_i32_0 = arith.constant 0 : i32
    %c0_i32_1 = arith.constant 0 : i32
    return %c0_i32, %c0_i32_0 : i32, i32
  }
  func.func @transform_4(%arg0: i32) -> (i32, i32) {
    %c0_i32 = arith.constant 0 : i32
    %c0_i32_0 = arith.constant 0 : i32
    return %arg0, %c0_i32 : i32, i32
  }
  func.func @transform_5(%arg0: i32) -> (i32, i32) {
    %c0_i32 = arith.constant 0 : i32
    %c0_i32_0 = arith.constant 0 : i32
    return %arg0, %c0_i32 : i32, i32
  }
}

module attributes {stable_mosaic.version = 11 : i64} {
  func.func @_ipa_attn_kernel(%arg0: i32, %arg1: i32, %arg2: memref<1x1x8x16xf32, #tpu.memory_space<vmem>>, %arg3: memref<1x1x8x16xf32, #tpu.memory_space<vmem>>, %arg4: memref<1x1x8x12xf32, #tpu.memory_space<vmem>>, %arg5: memref<1x1x8x12xf32, #tpu.memory_space<vmem>>, %arg6: memref<1x1x8x16xf32, #tpu.memory_space<vmem>>, %arg7: memref<1x1x8x24xf32, #tpu.memory_space<vmem>>, %arg8: memref<1x1x8x8xf32, #tpu.memory_space<vmem>>, %arg9: memref<1x8x8x8xf32, #tpu.memory_space<vmem>>, %arg10: memref<1x1x8x48xf32, #tpu.memory_space<vmem>>) attributes {dimension_semantics = [#tpu.dimension_semantics<parallel>, #tpu.dimension_semantics<arbitrary>], iteration_bounds = array<i64: 2, 12>, scalar_prefetch = 0 : i64, scratch_operands = 0 : i64, tpu.core_type = #tpu.core_type<tc>, window_params = [{transform_indices = @transform_0, window_bounds = array<i64: 1, 1, 8, 16>}, {transform_indices = @transform_1, window_bounds = array<i64: 1, 1, 8, 16>}, {transform_indices = @transform_2, window_bounds = array<i64: 1, 1, 8, 12>}, {transform_indices = @transform_3, window_bounds = array<i64: 1, 1, 8, 12>}, {transform_indices = @transform_4, window_bounds = array<i64: 1, 1, 8, 16>}, {transform_indices = @transform_5, window_bounds = array<i64: 1, 1, 8, 24>}, {transform_indices = @transform_6, window_bounds = array<i64: 1, 1, 8, 8>}, {transform_indices = @transform_7, window_bounds = array<i64: 1, 8, 8, 8>}, {transform_indices = @transform_8, window_bounds = array<i64: 1, 1, 8, 48>}]} {
    %c0 = arith.constant 0 : index
    %c0_0 = arith.constant 0 : index
    %c0_1 = arith.constant 0 : index
    %c0_2 = arith.constant 0 : index
    %0 = vector.load %arg2[%c0, %c0_0, %c0_1, %c0_2] : memref<1x1x8x16xf32, #tpu.memory_space<vmem>>, vector<1x1x8x16xf32>
    %1 = vector.shape_cast %0 : vector<1x1x8x16xf32> to vector<8x16xf32>
    %c0_3 = arith.constant 0 : index
    %c0_4 = arith.constant 0 : index
    %c0_5 = arith.constant 0 : index
    %c0_6 = arith.constant 0 : index
    %2 = vector.load %arg3[%c0_3, %c0_4, %c0_5, %c0_6] : memref<1x1x8x16xf32, #tpu.memory_space<vmem>>, vector<1x1x8x16xf32>
    %3 = vector.shape_cast %2 : vector<1x1x8x16xf32> to vector<8x16xf32>
    %c0_7 = arith.constant 0 : index
    %c0_8 = arith.constant 0 : index
    %c0_9 = arith.constant 0 : index
    %c0_10 = arith.constant 0 : index
    %4 = vector.load %arg4[%c0_7, %c0_8, %c0_9, %c0_10] : memref<1x1x8x12xf32, #tpu.memory_space<vmem>>, vector<1x1x8x12xf32>
    %5 = vector.shape_cast %4 : vector<1x1x8x12xf32> to vector<8x12xf32>
    %c0_11 = arith.constant 0 : index
    %c0_12 = arith.constant 0 : index
    %c0_13 = arith.constant 0 : index
    %c0_14 = arith.constant 0 : index
    %6 = vector.load %arg5[%c0_11, %c0_12, %c0_13, %c0_14] : memref<1x1x8x12xf32, #tpu.memory_space<vmem>>, vector<1x1x8x12xf32>
    %7 = vector.shape_cast %6 : vector<1x1x8x12xf32> to vector<8x12xf32>
    %8 = arith.mulf %5, %5 : vector<8x12xf32>
    %cst = arith.constant dense<0.000000e+00> : vector<8xf32>
    %9 = vector.multi_reduction <add>, %8, %cst [1] : vector<8x12xf32> to vector<8xf32>
    %10 = vector.shape_cast %9 : vector<8xf32> to vector<8x1xf32>
    %11 = arith.mulf %7, %7 : vector<8x12xf32>
    %cst_15 = arith.constant dense<0.000000e+00> : vector<8xf32>
    %12 = vector.multi_reduction <add>, %11, %cst_15 [1] : vector<8x12xf32> to vector<8xf32>
    %13 = vector.shape_cast %12 : vector<8xf32> to vector<8x1xf32>
    %cst_16 = arith.constant 1.000000e+00 : f32
    %14 = vector.broadcast %cst_16 : f32 to vector<8x1xf32>
    %15 = tpu.concatenate %1, %5, %14 in 1 : vector<8x16xf32>, vector<8x12xf32>, vector<8x1xf32> -> vector<8x29xf32>
    %cst_17 = arith.constant 2.000000e+00 : f32
    %16 = vector.broadcast %cst_17 : f32 to vector<8x12xf32>
    %17 = arith.mulf %16, %7 : vector<8x12xf32>
    %cst_18 = arith.constant 0.000000e+00 : f32
    %18 = vector.broadcast %cst_18 : f32 to vector<8x1xf32>
    %19 = arith.subf %18, %13 : vector<8x1xf32>
    %20 = tpu.concatenate %3, %17, %19 in 1 : vector<8x16xf32>, vector<8x12xf32>, vector<8x1xf32> -> vector<8x29xf32>
    %cst_19 = arith.constant dense<0.000000e+00> : vector<8x8xf32>
    %21 = tpu.matmul %15, %20, %cst_19 {dimension_numbers = #tpu.dot_dimension_numbers<[1], [1], [0], [0], [0, 0, 1, 0], [], []>} : vector<8x29xf32>, vector<8x29xf32>, vector<8x8xf32> -> vector<8x8xf32>
    %c0_20 = arith.constant 0 : index
    %c0_21 = arith.constant 0 : index
    %c0_22 = arith.constant 0 : index
    %c0_23 = arith.constant 0 : index
    %22 = vector.load %arg8[%c0_20, %c0_21, %c0_22, %c0_23] : memref<1x1x8x8xf32, #tpu.memory_space<vmem>>, vector<1x1x8x8xf32>
    %23 = vector.shape_cast %22 : vector<1x1x8x8xf32> to vector<8x8xf32>
    %24 = arith.addf %21, %23 : vector<8x8xf32>
    %25 = vector.broadcast %10 : vector<8x1xf32> to vector<8x8xf32>
    %26 = arith.subf %24, %25 : vector<8x8xf32>
    %cst_24 = arith.constant dense<0xFF800000> : vector<8xf32>
    %27 = vector.multi_reduction <maximumf>, %26, %cst_24 [1] : vector<8x8xf32> to vector<8xf32>
    %28 = vector.shape_cast %27 : vector<8xf32> to vector<8x1xf32>
    %29 = vector.broadcast %28 : vector<8x1xf32> to vector<8x8xf32>
    %30 = arith.subf %26, %29 : vector<8x8xf32>
    %31 = math.exp %30 : vector<8x8xf32>
    %cst_25 = arith.constant dense<0.000000e+00> : vector<8xf32>
    %32 = vector.multi_reduction <add>, %31, %cst_25 [1] : vector<8x8xf32> to vector<8xf32>
    %33 = vector.shape_cast %32 : vector<8xf32> to vector<8x1xf32>
    %34 = vector.broadcast %33 : vector<8x1xf32> to vector<8x8xf32>
    %35 = arith.divf %31, %34 : vector<8x8xf32>
    %c0_26 = arith.constant 0 : index
    %c0_27 = arith.constant 0 : index
    %c0_28 = arith.constant 0 : index
    %c0_29 = arith.constant 0 : index
    %36 = vector.load %arg6[%c0_26, %c0_27, %c0_28, %c0_29] : memref<1x1x8x16xf32, #tpu.memory_space<vmem>>, vector<1x1x8x16xf32>
    %37 = vector.shape_cast %36 : vector<1x1x8x16xf32> to vector<8x16xf32>
    %c0_30 = arith.constant 0 : index
    %c0_31 = arith.constant 0 : index
    %c0_32 = arith.constant 0 : index
    %c0_33 = arith.constant 0 : index
    %38 = vector.load %arg7[%c0_30, %c0_31, %c0_32, %c0_33] : memref<1x1x8x24xf32, #tpu.memory_space<vmem>>, vector<1x1x8x24xf32>
    %39 = vector.shape_cast %38 : vector<1x1x8x24xf32> to vector<8x24xf32>
    %40 = tpu.concatenate %37, %39 in 1 : vector<8x16xf32>, vector<8x24xf32> -> vector<8x40xf32>
    %cst_34 = arith.constant dense<0.000000e+00> : vector<8x40xf32>
    %41 = tpu.matmul %35, %40, %cst_34 {dimension_numbers = #tpu.dot_dimension_numbers<[1], [0], [0], [1], [0, 0, 1, 1], [], []>} : vector<8x8xf32>, vector<8x40xf32>, vector<8x40xf32> -> vector<8x40xf32>
    %c0_35 = arith.constant 0 : index
    %c0_36 = arith.constant 0 : index
    %c0_37 = arith.constant 0 : index
    %c0_38 = arith.constant 0 : index
    %42 = vector.load %arg9[%c0_35, %c0_36, %c0_37, %c0_38] : memref<1x8x8x8xf32, #tpu.memory_space<vmem>>, vector<1x8x8x8xf32>
    %43 = vector.shape_cast %42 : vector<1x8x8x8xf32> to vector<8x8x8xf32>
    %44 = vector.shape_cast %35 : vector<8x8xf32> to vector<8x8x1xf32>
    %45 = vector.broadcast %44 : vector<8x8x1xf32> to vector<8x8x8xf32>
    %46 = arith.mulf %45, %43 : vector<8x8x8xf32>
    %cst_39 = arith.constant dense<0.000000e+00> : vector<8x8xf32>
    %47 = vector.multi_reduction <add>, %46, %cst_39 [1] : vector<8x8x8xf32> to vector<8x8xf32>
    %48 = tpu.concatenate %47, %41 in 1 : vector<8x8xf32>, vector<8x40xf32> -> vector<8x48xf32>
    %c0_40 = arith.constant 0 : index
    %c0_41 = arith.constant 0 : index
    %c0_42 = arith.constant 0 : index
    %c0_43 = arith.constant 0 : index
    %49 = vector.load %arg10[%c0_40, %c0_41, %c0_42, %c0_43] : memref<1x1x8x48xf32, #tpu.memory_space<vmem>>, vector<1x1x8x48xf32>
    %50 = vector.shape_cast %49 : vector<1x1x8x48xf32> to vector<8x48xf32>
    %51 = vector.shape_cast %48 : vector<8x48xf32> to vector<1x1x8x48xf32>
    tpu.vector_store %arg10[%c0_40, %c0_41, %c0_42, %c0_43], %51 {strides = array<i32>} : memref<1x1x8x48xf32, #tpu.memory_space<vmem>>, vector<1x1x8x48xf32>,
    return
  }
  func.func @transform_0(%arg0: i32, %arg1: i32) -> (i32, i32, i32, i32) {
    %c0_i32 = arith.constant 0 : i32
    %c0_i32_0 = arith.constant 0 : i32
    %c0_i32_1 = arith.constant 0 : i32
    return %arg0, %arg1, %c0_i32, %c0_i32_0 : i32, i32, i32, i32
  }
  func.func @transform_1(%arg0: i32, %arg1: i32) -> (i32, i32, i32, i32) {
    %c0_i32 = arith.constant 0 : i32
    %c0_i32_0 = arith.constant 0 : i32
    %c0_i32_1 = arith.constant 0 : i32
    return %arg0, %arg1, %c0_i32, %c0_i32_0 : i32, i32, i32, i32
  }
  func.func @transform_2(%arg0: i32, %arg1: i32) -> (i32, i32, i32, i32) {
    %c0_i32 = arith.constant 0 : i32
    %c0_i32_0 = arith.constant 0 : i32
    %c0_i32_1 = arith.constant 0 : i32
    return %arg0, %arg1, %c0_i32, %c0_i32_0 : i32, i32, i32, i32
  }
  func.func @transform_3(%arg0: i32, %arg1: i32) -> (i32, i32, i32, i32) {
    %c0_i32 = arith.constant 0 : i32
    %c0_i32_0 = arith.constant 0 : i32
    %c0_i32_1 = arith.constant 0 : i32
    return %arg0, %arg1, %c0_i32, %c0_i32_0 : i32, i32, i32, i32
  }
  func.func @transform_4(%arg0: i32, %arg1: i32) -> (i32, i32, i32, i32) {
    %c0_i32 = arith.constant 0 : i32
    %c0_i32_0 = arith.constant 0 : i32
    %c0_i32_1 = arith.constant 0 : i32
    return %arg0, %arg1, %c0_i32, %c0_i32_0 : i32, i32, i32, i32
  }
  func.func @transform_5(%arg0: i32, %arg1: i32) -> (i32, i32, i32, i32) {
    %c0_i32 = arith.constant 0 : i32
    %c0_i32_0 = arith.constant 0 : i32
    %c0_i32_1 = arith.constant 0 : i32
    return %arg0, %arg1, %c0_i32, %c0_i32_0 : i32, i32, i32, i32
  }
  func.func @transform_6(%arg0: i32, %arg1: i32) -> (i32, i32, i32, i32) {
    %c0_i32 = arith.constant 0 : i32
    %c0_i32_0 = arith.constant 0 : i32
    %c0_i32_1 = arith.constant 0 : i32
    return %arg0, %arg1, %c0_i32, %c0_i32_0 : i32, i32, i32, i32
  }
  func.func @transform_7(%arg0: i32, %arg1: i32) -> (i32, i32, i32, i32) {
    %c0_i32 = arith.constant 0 : i32
    %c0_i32_0 = arith.constant 0 : i32
    %c0_i32_1 = arith.constant 0 : i32
    %c0_i32_2 = arith.constant 0 : i32
    return %arg0, %c0_i32, %c0_i32_0, %c0_i32_1 : i32, i32, i32, i32
  }
  func.func @transform_8(%arg0: i32, %arg1: i32) -> (i32, i32, i32, i32) {
    %c0_i32 = arith.constant 0 : i32
    %c0_i32_0 = arith.constant 0 : i32
    %c0_i32_1 = arith.constant 0 : i32
    return %arg0, %arg1, %c0_i32, %c0_i32_0 : i32, i32, i32, i32
  }
}

module attributes {stable_mosaic.version = 11 : i64} {
  func.func @_matmul_bias_res_kernel(%arg0: i32, %arg1: memref<16x577xf32, #tpu.memory_space<vmem>>, %arg2: memref<577x32xf32, #tpu.memory_space<vmem>>, %arg3: memref<1x32xf32, #tpu.memory_space<vmem>>, %arg4: memref<16x32xf32, #tpu.memory_space<vmem>>, %arg5: memref<16x32xf32, #tpu.memory_space<vmem>>) attributes {dimension_semantics = [#tpu.dimension_semantics<parallel>], iteration_bounds = array<i64: 1>, scalar_prefetch = 0 : i64, scratch_operands = 0 : i64, tpu.core_type = #tpu.core_type<tc>, window_params = [{transform_indices = @transform_0, window_bounds = array<i64: 16, 577>}, {pipeline_mode = #tpu.pipeline_mode<synchronous>, transform_indices = @transform_1, window_bounds = array<i64: 577, 32>}, {pipeline_mode = #tpu.pipeline_mode<synchronous>, transform_indices = @transform_2, window_bounds = array<i64: 1, 32>}, {transform_indices = @transform_3, window_bounds = array<i64: 16, 32>}, {transform_indices = @transform_4, window_bounds = array<i64: 16, 32>}]} {
    %c0 = arith.constant 0 : index
    %c0_0 = arith.constant 0 : index
    %0 = vector.load %arg4[%c0, %c0_0] : memref<16x32xf32, #tpu.memory_space<vmem>>, vector<16x32xf32>
    %c0_1 = arith.constant 0 : index
    %c0_2 = arith.constant 0 : index
    %1 = vector.load %arg1[%c0_1, %c0_2] : memref<16x577xf32, #tpu.memory_space<vmem>>, vector<16x577xf32>
    %c0_3 = arith.constant 0 : index
    %c0_4 = arith.constant 0 : index
    %2 = vector.load %arg2[%c0_3, %c0_4] : memref<577x32xf32, #tpu.memory_space<vmem>>, vector<577x32xf32>
    %cst = arith.constant dense<0.000000e+00> : vector<16x32xf32>
    %3 = tpu.matmul %1, %2, %cst {dimension_numbers = #tpu.dot_dimension_numbers<[1], [0], [0], [1], [0, 0, 1, 1], [], []>} : vector<16x577xf32>, vector<577x32xf32>, vector<16x32xf32> -> vector<16x32xf32>
    %4 = arith.addf %0, %3 : vector<16x32xf32>
    %c0_5 = arith.constant 0 : index
    %c0_6 = arith.constant 0 : index
    %5 = vector.load %arg3[%c0_5, %c0_6] : memref<1x32xf32, #tpu.memory_space<vmem>>, vector<1x32xf32>
    %6 = vector.broadcast %5 : vector<1x32xf32> to vector<16x32xf32>
    %7 = arith.addf %4, %6 : vector<16x32xf32>
    %c0_7 = arith.constant 0 : index
    %c0_8 = arith.constant 0 : index
    %8 = vector.load %arg5[%c0_7, %c0_8] : memref<16x32xf32, #tpu.memory_space<vmem>>, vector<16x32xf32>
    tpu.vector_store %arg5[%c0_7, %c0_8], %7 {strides = array<i32>} : memref<16x32xf32, #tpu.memory_space<vmem>>, vector<16x32xf32>,
    return
  }
  func.func @transform_0(%arg0: i32) -> (i32, i32) {
    %c0_i32 = arith.constant 0 : i32
    %c0_i32_0 = arith.constant 0 : i32
    return %arg0, %c0_i32 : i32, i32
  }
  func.func @transform_1(%arg0: i32) -> (i32, i32) {
    %c0_i32 = arith.constant 0 : i32
    %c0_i32_0 = arith.constant 0 : i32
    %c0_i32_1 = arith.constant 0 : i32
    return %c0_i32, %c0_i32_0 : i32, i32
  }
  func.func @transform_2(%arg0: i32) -> (i32, i32) {
    %c0_i32 = arith.constant 0 : i32
    %c0_i32_0 = arith.constant 0 : i32
    %c0_i32_1 = arith.constant 0 : i32
    return %c0_i32, %c0_i32_0 : i32, i32
  }
  func.func @transform_3(%arg0: i32) -> (i32, i32) {
    %c0_i32 = arith.constant 0 : i32
    %c0_i32_0 = arith.constant 0 : i32
    return %arg0, %c0_i32 : i32, i32
  }
  func.func @transform_4(%arg0: i32) -> (i32, i32) {
    %c0_i32 = arith.constant 0 : i32
    %c0_i32_0 = arith.constant 0 : i32
    return %arg0, %c0_i32 : i32, i32
  }
}

module attributes {stable_mosaic.version = 11 : i64} {
  func.func @_post_ipa_kernel(%arg0: i32, %arg1: memref<16x32xf32, #tpu.memory_space<vmem>>, %arg2: memref<16x32xf32, #tpu.memory_space<vmem>>, %arg3: memref<2x32xf32, #tpu.memory_space<vmem>>, %arg4: memref<3x32x32xf32, #tpu.memory_space<vmem>>, %arg5: memref<3x32xf32, #tpu.memory_space<vmem>>, %arg6: memref<2x32xf32, #tpu.memory_space<vmem>>, %arg7: memref<32x6xf32, #tpu.memory_space<vmem>>, %arg8: memref<1x6xf32, #tpu.memory_space<vmem>>, %arg9: memref<2x32x16xf32, #tpu.memory_space<vmem>>, %arg10: memref<1x16xf32, #tpu.memory_space<vmem>>, %arg11: memref<4x16x16xf32, #tpu.memory_space<vmem>>, %arg12: memref<4x16xf32, #tpu.memory_space<vmem>>, %arg13: memref<16x4xf32, #tpu.memory_space<vmem>>, %arg14: memref<1x4xf32, #tpu.memory_space<vmem>>, %arg15: memref<16x32xf32, #tpu.memory_space<vmem>>, %arg16: memref<16x10xf32, #tpu.memory_space<vmem>>) attributes {dimension_semantics = [#tpu.dimension_semantics<parallel>], iteration_bounds = array<i64: 1>, scalar_prefetch = 0 : i64, scratch_operands = 0 : i64, tpu.core_type = #tpu.core_type<tc>, window_params = [{transform_indices = @transform_0, window_bounds = array<i64: 16, 32>}, {transform_indices = @transform_1, window_bounds = array<i64: 16, 32>}, {pipeline_mode = #tpu.pipeline_mode<synchronous>, transform_indices = @transform_2, window_bounds = array<i64: 2, 32>}, {pipeline_mode = #tpu.pipeline_mode<synchronous>, transform_indices = @transform_3, window_bounds = array<i64: 3, 32, 32>}, {pipeline_mode = #tpu.pipeline_mode<synchronous>, transform_indices = @transform_4, window_bounds = array<i64: 3, 32>}, {pipeline_mode = #tpu.pipeline_mode<synchronous>, transform_indices = @transform_5, window_bounds = array<i64: 2, 32>}, {pipeline_mode = #tpu.pipeline_mode<synchronous>, transform_indices = @transform_6, window_bounds = array<i64: 32, 6>}, {pipeline_mode = #tpu.pipeline_mode<synchronous>, transform_indices = @transform_7, window_bounds = array<i64: 1, 6>}, {pipeline_mode = #tpu.pipeline_mode<synchronous>, transform_indices = @transform_8, window_bounds = array<i64: 2, 32, 16>}, {pipeline_mode = #tpu.pipeline_mode<synchronous>, transform_indices = @transform_9, window_bounds = array<i64: 1, 16>}, {pipeline_mode = #tpu.pipeline_mode<synchronous>, transform_indices = @transform_10, window_bounds = array<i64: 4, 16, 16>}, {pipeline_mode = #tpu.pipeline_mode<synchronous>, transform_indices = @transform_11, window_bounds = array<i64: 4, 16>}, {pipeline_mode = #tpu.pipeline_mode<synchronous>, transform_indices = @transform_12, window_bounds = array<i64: 16, 4>}, {pipeline_mode = #tpu.pipeline_mode<synchronous>, transform_indices = @transform_13, window_bounds = array<i64: 1, 4>}, {transform_indices = @transform_14, window_bounds = array<i64: 16, 32>}, {transform_indices = @transform_15, window_bounds = array<i64: 16, 10>}]} {
    %c0 = arith.constant 0 : index
    %c0_0 = arith.constant 0 : index
    %c0_1 = arith.constant 0 : index
    %0 = vector.load %arg4[%c0, %c0_0, %c0_1] : memref<3x32x32xf32, #tpu.memory_space<vmem>>, vector<3x32x32xf32>
    %c0_2 = arith.constant 0 : index
    %c0_3 = arith.constant 0 : index
    %1 = vector.load %arg5[%c0_2, %c0_3] : memref<3x32xf32, #tpu.memory_space<vmem>>, vector<3x32xf32>
    %c0_4 = arith.constant 0 : index
    %c0_5 = arith.constant 0 : index
    %c0_6 = arith.constant 0 : index
    %2 = vector.load %arg11[%c0_4, %c0_5, %c0_6] : memref<4x16x16xf32, #tpu.memory_space<vmem>>, vector<4x16x16xf32>
    %c0_7 = arith.constant 0 : index
    %c0_8 = arith.constant 0 : index
    %3 = vector.load %arg12[%c0_7, %c0_8] : memref<4x16xf32, #tpu.memory_space<vmem>>, vector<4x16xf32>
    %c0_9 = arith.constant 0 : index
    %c0_10 = arith.constant 0 : index
    %c0_11 = arith.constant 0 : index
    %4 = vector.load %arg9[%c0_9, %c0_10, %c0_11] : memref<2x32x16xf32, #tpu.memory_space<vmem>>, vector<2x32x16xf32>
    %c0_12 = arith.constant 0 : index
    %c0_13 = arith.constant 0 : index
    %5 = vector.load %arg1[%c0_12, %c0_13] : memref<16x32xf32, #tpu.memory_space<vmem>>, vector<16x32xf32>
    %c0_14 = arith.constant 0 : index
    %c0_15 = arith.constant 0 : index
    %6 = vector.load %arg3[%c0_14, %c0_15] : memref<2x32xf32, #tpu.memory_space<vmem>>, vector<2x32xf32>
    %cst = arith.constant dense<0.000000e+00> : vector<16xf32>
    %7 = vector.multi_reduction <add>, %5, %cst [1] : vector<16x32xf32> to vector<16xf32>
    %8 = vector.shape_cast %7 : vector<16xf32> to vector<16x1xf32>
    %cst_16 = arith.constant 3.200000e+01 : f32
    %9 = vector.broadcast %cst_16 : f32 to vector<16x1xf32>
    %10 = arith.divf %8, %9 : vector<16x1xf32>
    %11 = vector.broadcast %10 : vector<16x1xf32> to vector<16x32xf32>
    %12 = arith.subf %5, %11 : vector<16x32xf32>
    %13 = arith.mulf %12, %12 : vector<16x32xf32>
    %cst_17 = arith.constant dense<0.000000e+00> : vector<16xf32>
    %14 = vector.multi_reduction <add>, %13, %cst_17 [1] : vector<16x32xf32> to vector<16xf32>
    %15 = vector.shape_cast %14 : vector<16xf32> to vector<16x1xf32>
    %cst_18 = arith.constant 3.200000e+01 : f32
    %16 = vector.broadcast %cst_18 : f32 to vector<16x1xf32>
    %17 = arith.divf %15, %16 : vector<16x1xf32>
    %18 = vector.broadcast %10 : vector<16x1xf32> to vector<16x32xf32>
    %19 = arith.subf %5, %18 : vector<16x32xf32>
    %cst_19 = arith.constant 9.99999974E-6 : f32
    %20 = vector.broadcast %cst_19 : f32 to vector<16x1xf32>
    %21 = arith.addf %17, %20 : vector<16x1xf32>
    %22 = math.rsqrt %21 : vector<16x1xf32>
    %23 = vector.broadcast %22 : vector<16x1xf32> to vector<16x32xf32>
    %24 = arith.mulf %19, %23 : vector<16x32xf32>
    %25 = vector.extract_strided_slice %6 {offsets = [0, 0], sizes = [1, 32], strides = [1, 1]} : vector<2x32xf32> to vector<1x32xf32>
    %26 = vector.broadcast %25 : vector<1x32xf32> to vector<16x32xf32>
    %27 = arith.mulf %24, %26 : vector<16x32xf32>
    %28 = vector.extract_strided_slice %6 {offsets = [1, 0], sizes = [1, 32], strides = [1, 1]} : vector<2x32xf32> to vector<1x32xf32>
    %29 = vector.broadcast %28 : vector<1x32xf32> to vector<16x32xf32>
    %30 = arith.addf %27, %29 : vector<16x32xf32>
    %31 = vector.extract_strided_slice %0 {offsets = [0, 0, 0], sizes = [1, 32, 32], strides = [1, 1, 1]} : vector<3x32x32xf32> to vector<1x32x32xf32>
    %32 = vector.shape_cast %31 : vector<1x32x32xf32> to vector<32x32xf32>
    %cst_20 = arith.constant dense<0.000000e+00> : vector<16x32xf32>
    %33 = tpu.matmul %30, %32, %cst_20 {dimension_numbers = #tpu.dot_dimension_numbers<[1], [0], [0], [1], [0, 0, 1, 1], [], []>} : vector<16x32xf32>, vector<32x32xf32>, vector<16x32xf32> -> vector<16x32xf32>
    %34 = vector.extract_strided_slice %1 {offsets = [0, 0], sizes = [1, 32], strides = [1, 1]} : vector<3x32xf32> to vector<1x32xf32>
    %35 = vector.broadcast %34 : vector<1x32xf32> to vector<16x32xf32>
    %36 = arith.addf %33, %35 : vector<16x32xf32>
    %cst_21 = arith.constant 0.000000e+00 : f32
    %37 = vector.broadcast %cst_21 : f32 to vector<16x32xf32>
    %38 = arith.maximumf %36, %37 : vector<16x32xf32>
    %39 = vector.extract_strided_slice %0 {offsets = [1, 0, 0], sizes = [1, 32, 32], strides = [1, 1, 1]} : vector<3x32x32xf32> to vector<1x32x32xf32>
    %40 = vector.shape_cast %39 : vector<1x32x32xf32> to vector<32x32xf32>
    %cst_22 = arith.constant dense<0.000000e+00> : vector<16x32xf32>
    %41 = tpu.matmul %38, %40, %cst_22 {dimension_numbers = #tpu.dot_dimension_numbers<[1], [0], [0], [1], [0, 0, 1, 1], [], []>} : vector<16x32xf32>, vector<32x32xf32>, vector<16x32xf32> -> vector<16x32xf32>
    %42 = vector.extract_strided_slice %1 {offsets = [1, 0], sizes = [1, 32], strides = [1, 1]} : vector<3x32xf32> to vector<1x32xf32>
    %43 = vector.broadcast %42 : vector<1x32xf32> to vector<16x32xf32>
    %44 = arith.addf %41, %43 : vector<16x32xf32>
    %cst_23 = arith.constant 0.000000e+00 : f32
    %45 = vector.broadcast %cst_23 : f32 to vector<16x32xf32>
    %46 = arith.maximumf %44, %45 : vector<16x32xf32>
    %47 = vector.extract_strided_slice %0 {offsets = [2, 0, 0], sizes = [1, 32, 32], strides = [1, 1, 1]} : vector<3x32x32xf32> to vector<1x32x32xf32>
    %48 = vector.shape_cast %47 : vector<1x32x32xf32> to vector<32x32xf32>
    %cst_24 = arith.constant dense<0.000000e+00> : vector<16x32xf32>
    %49 = tpu.matmul %46, %48, %cst_24 {dimension_numbers = #tpu.dot_dimension_numbers<[1], [0], [0], [1], [0, 0, 1, 1], [], []>} : vector<16x32xf32>, vector<32x32xf32>, vector<16x32xf32> -> vector<16x32xf32>
    %50 = vector.extract_strided_slice %1 {offsets = [2, 0], sizes = [1, 32], strides = [1, 1]} : vector<3x32xf32> to vector<1x32xf32>
    %51 = vector.broadcast %50 : vector<1x32xf32> to vector<16x32xf32>
    %52 = arith.addf %49, %51 : vector<16x32xf32>
    %53 = arith.addf %30, %52 : vector<16x32xf32>
    %c0_25 = arith.constant 0 : index
    %c0_26 = arith.constant 0 : index
    %54 = vector.load %arg6[%c0_25, %c0_26] : memref<2x32xf32, #tpu.memory_space<vmem>>, vector<2x32xf32>
    %cst_27 = arith.constant dense<0.000000e+00> : vector<16xf32>
    %55 = vector.multi_reduction <add>, %53, %cst_27 [1] : vector<16x32xf32> to vector<16xf32>
    %56 = vector.shape_cast %55 : vector<16xf32> to vector<16x1xf32>
    %cst_28 = arith.constant 3.200000e+01 : f32
    %57 = vector.broadcast %cst_28 : f32 to vector<16x1xf32>
    %58 = arith.divf %56, %57 : vector<16x1xf32>
    %59 = vector.broadcast %58 : vector<16x1xf32> to vector<16x32xf32>
    %60 = arith.subf %53, %59 : vector<16x32xf32>
    %61 = arith.mulf %60, %60 : vector<16x32xf32>
    %cst_29 = arith.constant dense<0.000000e+00> : vector<16xf32>
    %62 = vector.multi_reduction <add>, %61, %cst_29 [1] : vector<16x32xf32> to vector<16xf32>
    %63 = vector.shape_cast %62 : vector<16xf32> to vector<16x1xf32>
    %cst_30 = arith.constant 3.200000e+01 : f32
    %64 = vector.broadcast %cst_30 : f32 to vector<16x1xf32>
    %65 = arith.divf %63, %64 : vector<16x1xf32>
    %66 = vector.broadcast %58 : vector<16x1xf32> to vector<16x32xf32>
    %67 = arith.subf %53, %66 : vector<16x32xf32>
    %cst_31 = arith.constant 9.99999974E-6 : f32
    %68 = vector.broadcast %cst_31 : f32 to vector<16x1xf32>
    %69 = arith.addf %65, %68 : vector<16x1xf32>
    %70 = math.rsqrt %69 : vector<16x1xf32>
    %71 = vector.broadcast %70 : vector<16x1xf32> to vector<16x32xf32>
    %72 = arith.mulf %67, %71 : vector<16x32xf32>
    %73 = vector.extract_strided_slice %54 {offsets = [0, 0], sizes = [1, 32], strides = [1, 1]} : vector<2x32xf32> to vector<1x32xf32>
    %74 = vector.broadcast %73 : vector<1x32xf32> to vector<16x32xf32>
    %75 = arith.mulf %72, %74 : vector<16x32xf32>
    %76 = vector.extract_strided_slice %54 {offsets = [1, 0], sizes = [1, 32], strides = [1, 1]} : vector<2x32xf32> to vector<1x32xf32>
    %77 = vector.broadcast %76 : vector<1x32xf32> to vector<16x32xf32>
    %78 = arith.addf %75, %77 : vector<16x32xf32>
    %c0_32 = arith.constant 0 : index
    %c0_33 = arith.constant 0 : index
    %79 = vector.load %arg15[%c0_32, %c0_33] : memref<16x32xf32, #tpu.memory_space<vmem>>, vector<16x32xf32>
    tpu.vector_store %arg15[%c0_32, %c0_33], %78 {strides = array<i32>} : memref<16x32xf32, #tpu.memory_space<vmem>>, vector<16x32xf32>,
    %c0_34 = arith.constant 0 : index
    %c0_35 = arith.constant 0 : index
    %80 = vector.load %arg7[%c0_34, %c0_35] : memref<32x6xf32, #tpu.memory_space<vmem>>, vector<32x6xf32>
    %cst_36 = arith.constant dense<0.000000e+00> : vector<16x6xf32>
    %81 = tpu.matmul %78, %80, %cst_36 {dimension_numbers = #tpu.dot_dimension_numbers<[1], [0], [0], [1], [0, 0, 1, 1], [], []>} : vector<16x32xf32>, vector<32x6xf32>, vector<16x6xf32> -> vector<16x6xf32>
    %c0_37 = arith.constant 0 : index
    %c0_38 = arith.constant 0 : index
    %82 = vector.load %arg8[%c0_37, %c0_38] : memref<1x6xf32, #tpu.memory_space<vmem>>, vector<1x6xf32>
    %83 = vector.broadcast %82 : vector<1x6xf32> to vector<16x6xf32>
    %84 = arith.addf %81, %83 : vector<16x6xf32>
    %85 = vector.extract_strided_slice %4 {offsets = [0, 0, 0], sizes = [1, 32, 16], strides = [1, 1, 1]} : vector<2x32x16xf32> to vector<1x32x16xf32>
    %86 = vector.shape_cast %85 : vector<1x32x16xf32> to vector<32x16xf32>
    %cst_39 = arith.constant dense<0.000000e+00> : vector<16x16xf32>
    %87 = tpu.matmul %78, %86, %cst_39 {dimension_numbers = #tpu.dot_dimension_numbers<[1], [0], [0], [1], [0, 0, 1, 1], [], []>} : vector<16x32xf32>, vector<32x16xf32>, vector<16x16xf32> -> vector<16x16xf32>
    %c0_40 = arith.constant 0 : index
    %c0_41 = arith.constant 0 : index
    %88 = vector.load %arg2[%c0_40, %c0_41] : memref<16x32xf32, #tpu.memory_space<vmem>>, vector<16x32xf32>
    %89 = vector.extract_strided_slice %4 {offsets = [1, 0, 0], sizes = [1, 32, 16], strides = [1, 1, 1]} : vector<2x32x16xf32> to vector<1x32x16xf32>
    %90 = vector.shape_cast %89 : vector<1x32x16xf32> to vector<32x16xf32>
    %cst_42 = arith.constant dense<0.000000e+00> : vector<16x16xf32>
    %91 = tpu.matmul %88, %90, %cst_42 {dimension_numbers = #tpu.dot_dimension_numbers<[1], [0], [0], [1], [0, 0, 1, 1], [], []>} : vector<16x32xf32>, vector<32x16xf32>, vector<16x16xf32> -> vector<16x16xf32>
    %92 = arith.addf %87, %91 : vector<16x16xf32>
    %c0_43 = arith.constant 0 : index
    %c0_44 = arith.constant 0 : index
    %93 = vector.load %arg10[%c0_43, %c0_44] : memref<1x16xf32, #tpu.memory_space<vmem>>, vector<1x16xf32>
    %94 = vector.broadcast %93 : vector<1x16xf32> to vector<16x16xf32>
    %95 = arith.addf %92, %94 : vector<16x16xf32>
    %cst_45 = arith.constant 0.000000e+00 : f32
    %96 = vector.broadcast %cst_45 : f32 to vector<16x16xf32>
    %97 = arith.maximumf %95, %96 : vector<16x16xf32>
    %98 = vector.extract_strided_slice %2 {offsets = [0, 0, 0], sizes = [1, 16, 16], strides = [1, 1, 1]} : vector<4x16x16xf32> to vector<1x16x16xf32>
    %99 = vector.shape_cast %98 : vector<1x16x16xf32> to vector<16x16xf32>
    %cst_46 = arith.constant dense<0.000000e+00> : vector<16x16xf32>
    %100 = tpu.matmul %97, %99, %cst_46 {dimension_numbers = #tpu.dot_dimension_numbers<[1], [0], [0], [1], [0, 0, 1, 1], [], []>} : vector<16x16xf32>, vector<16x16xf32>, vector<16x16xf32> -> vector<16x16xf32>
    %101 = vector.extract_strided_slice %3 {offsets = [0, 0], sizes = [1, 16], strides = [1, 1]} : vector<4x16xf32> to vector<1x16xf32>
    %102 = vector.broadcast %101 : vector<1x16xf32> to vector<16x16xf32>
    %103 = arith.addf %100, %102 : vector<16x16xf32>
    %cst_47 = arith.constant 0.000000e+00 : f32
    %104 = vector.broadcast %cst_47 : f32 to vector<16x16xf32>
    %105 = arith.maximumf %103, %104 : vector<16x16xf32>
    %106 = vector.extract_strided_slice %2 {offsets = [1, 0, 0], sizes = [1, 16, 16], strides = [1, 1, 1]} : vector<4x16x16xf32> to vector<1x16x16xf32>
    %107 = vector.shape_cast %106 : vector<1x16x16xf32> to vector<16x16xf32>
    %cst_48 = arith.constant dense<0.000000e+00> : vector<16x16xf32>
    %108 = tpu.matmul %105, %107, %cst_48 {dimension_numbers = #tpu.dot_dimension_numbers<[1], [0], [0], [1], [0, 0, 1, 1], [], []>} : vector<16x16xf32>, vector<16x16xf32>, vector<16x16xf32> -> vector<16x16xf32>
    %109 = vector.extract_strided_slice %3 {offsets = [1, 0], sizes = [1, 16], strides = [1, 1]} : vector<4x16xf32> to vector<1x16xf32>
    %110 = vector.broadcast %109 : vector<1x16xf32> to vector<16x16xf32>
    %111 = arith.addf %108, %110 : vector<16x16xf32>
    %112 = arith.addf %95, %111 : vector<16x16xf32>
    %cst_49 = arith.constant 0.000000e+00 : f32
    %113 = vector.broadcast %cst_49 : f32 to vector<16x16xf32>
    %114 = arith.maximumf %112, %113 : vector<16x16xf32>
    %115 = vector.extract_strided_slice %2 {offsets = [2, 0, 0], sizes = [1, 16, 16], strides = [1, 1, 1]} : vector<4x16x16xf32> to vector<1x16x16xf32>
    %116 = vector.shape_cast %115 : vector<1x16x16xf32> to vector<16x16xf32>
    %cst_50 = arith.constant dense<0.000000e+00> : vector<16x16xf32>
    %117 = tpu.matmul %114, %116, %cst_50 {dimension_numbers = #tpu.dot_dimension_numbers<[1], [0], [0], [1], [0, 0, 1, 1], [], []>} : vector<16x16xf32>, vector<16x16xf32>, vector<16x16xf32> -> vector<16x16xf32>
    %118 = vector.extract_strided_slice %3 {offsets = [2, 0], sizes = [1, 16], strides = [1, 1]} : vector<4x16xf32> to vector<1x16xf32>
    %119 = vector.broadcast %118 : vector<1x16xf32> to vector<16x16xf32>
    %120 = arith.addf %117, %119 : vector<16x16xf32>
    %cst_51 = arith.constant 0.000000e+00 : f32
    %121 = vector.broadcast %cst_51 : f32 to vector<16x16xf32>
    %122 = arith.maximumf %120, %121 : vector<16x16xf32>
    %123 = vector.extract_strided_slice %2 {offsets = [3, 0, 0], sizes = [1, 16, 16], strides = [1, 1, 1]} : vector<4x16x16xf32> to vector<1x16x16xf32>
    %124 = vector.shape_cast %123 : vector<1x16x16xf32> to vector<16x16xf32>
    %cst_52 = arith.constant dense<0.000000e+00> : vector<16x16xf32>
    %125 = tpu.matmul %122, %124, %cst_52 {dimension_numbers = #tpu.dot_dimension_numbers<[1], [0], [0], [1], [0, 0, 1, 1], [], []>} : vector<16x16xf32>, vector<16x16xf32>, vector<16x16xf32> -> vector<16x16xf32>
    %126 = vector.extract_strided_slice %3 {offsets = [3, 0], sizes = [1, 16], strides = [1, 1]} : vector<4x16xf32> to vector<1x16xf32>
    %127 = vector.broadcast %126 : vector<1x16xf32> to vector<16x16xf32>
    %128 = arith.addf %125, %127 : vector<16x16xf32>
    %129 = arith.addf %112, %128 : vector<16x16xf32>
    %cst_53 = arith.constant 0.000000e+00 : f32
    %130 = vector.broadcast %cst_53 : f32 to vector<16x16xf32>
    %131 = arith.maximumf %129, %130 : vector<16x16xf32>
    %c0_54 = arith.constant 0 : index
    %c0_55 = arith.constant 0 : index
    %132 = vector.load %arg13[%c0_54, %c0_55] : memref<16x4xf32, #tpu.memory_space<vmem>>, vector<16x4xf32>
    %cst_56 = arith.constant dense<0.000000e+00> : vector<16x4xf32>
    %133 = tpu.matmul %131, %132, %cst_56 {dimension_numbers = #tpu.dot_dimension_numbers<[1], [0], [0], [1], [0, 0, 1, 1], [], []>} : vector<16x16xf32>, vector<16x4xf32>, vector<16x4xf32> -> vector<16x4xf32>
    %c0_57 = arith.constant 0 : index
    %c0_58 = arith.constant 0 : index
    %134 = vector.load %arg14[%c0_57, %c0_58] : memref<1x4xf32, #tpu.memory_space<vmem>>, vector<1x4xf32>
    %135 = vector.broadcast %134 : vector<1x4xf32> to vector<16x4xf32>
    %136 = arith.addf %133, %135 : vector<16x4xf32>
    %137 = tpu.concatenate %84, %136 in 1 : vector<16x6xf32>, vector<16x4xf32> -> vector<16x10xf32>
    %c0_59 = arith.constant 0 : index
    %c0_60 = arith.constant 0 : index
    %138 = vector.load %arg16[%c0_59, %c0_60] : memref<16x10xf32, #tpu.memory_space<vmem>>, vector<16x10xf32>
    tpu.vector_store %arg16[%c0_59, %c0_60], %137 {strides = array<i32>} : memref<16x10xf32, #tpu.memory_space<vmem>>, vector<16x10xf32>,
    return
  }
  func.func @transform_0(%arg0: i32) -> (i32, i32) {
    %c0_i32 = arith.constant 0 : i32
    %c0_i32_0 = arith.constant 0 : i32
    return %arg0, %c0_i32 : i32, i32
  }
  func.func @transform_1(%arg0: i32) -> (i32, i32) {
    %c0_i32 = arith.constant 0 : i32
    %c0_i32_0 = arith.constant 0 : i32
    return %arg0, %c0_i32 : i32, i32
  }
  func.func @transform_2(%arg0: i32) -> (i32, i32) {
    %c0_i32 = arith.constant 0 : i32
    %c0_i32_0 = arith.constant 0 : i32
    %c0_i32_1 = arith.constant 0 : i32
    return %c0_i32, %c0_i32_0 : i32, i32
  }
  func.func @transform_3(%arg0: i32) -> (i32, i32, i32) {
    %c0_i32 = arith.constant 0 : i32
    %c0_i32_0 = arith.constant 0 : i32
    %c0_i32_1 = arith.constant 0 : i32
    %c0_i32_2 = arith.constant 0 : i32
    return %c0_i32, %c0_i32_0, %c0_i32_1 : i32, i32, i32
  }
  func.func @transform_4(%arg0: i32) -> (i32, i32) {
    %c0_i32 = arith.constant 0 : i32
    %c0_i32_0 = arith.constant 0 : i32
    %c0_i32_1 = arith.constant 0 : i32
    return %c0_i32, %c0_i32_0 : i32, i32
  }
  func.func @transform_5(%arg0: i32) -> (i32, i32) {
    %c0_i32 = arith.constant 0 : i32
    %c0_i32_0 = arith.constant 0 : i32
    %c0_i32_1 = arith.constant 0 : i32
    return %c0_i32, %c0_i32_0 : i32, i32
  }
  func.func @transform_6(%arg0: i32) -> (i32, i32) {
    %c0_i32 = arith.constant 0 : i32
    %c0_i32_0 = arith.constant 0 : i32
    %c0_i32_1 = arith.constant 0 : i32
    return %c0_i32, %c0_i32_0 : i32, i32
  }
  func.func @transform_7(%arg0: i32) -> (i32, i32) {
    %c0_i32 = arith.constant 0 : i32
    %c0_i32_0 = arith.constant 0 : i32
    %c0_i32_1 = arith.constant 0 : i32
    return %c0_i32, %c0_i32_0 : i32, i32
  }
  func.func @transform_8(%arg0: i32) -> (i32, i32, i32) {
    %c0_i32 = arith.constant 0 : i32
    %c0_i32_0 = arith.constant 0 : i32
    %c0_i32_1 = arith.constant 0 : i32
    %c0_i32_2 = arith.constant 0 : i32
    return %c0_i32, %c0_i32_0, %c0_i32_1 : i32, i32, i32
  }
  func.func @transform_9(%arg0: i32) -> (i32, i32) {
    %c0_i32 = arith.constant 0 : i32
    %c0_i32_0 = arith.constant 0 : i32
    %c0_i32_1 = arith.constant 0 : i32
    return %c0_i32, %c0_i32_0 : i32, i32
  }
  func.func @transform_10(%arg0: i32) -> (i32, i32, i32) {
    %c0_i32 = arith.constant 0 : i32
    %c0_i32_0 = arith.constant 0 : i32
    %c0_i32_1 = arith.constant 0 : i32
    %c0_i32_2 = arith.constant 0 : i32
    return %c0_i32, %c0_i32_0, %c0_i32_1 : i32, i32, i32
  }
  func.func @transform_11(%arg0: i32) -> (i32, i32) {
    %c0_i32 = arith.constant 0 : i32
    %c0_i32_0 = arith.constant 0 : i32
    %c0_i32_1 = arith.constant 0 : i32
    return %c0_i32, %c0_i32_0 : i32, i32
  }
  func.func @transform_12(%arg0: i32) -> (i32, i32) {
    %c0_i32 = arith.constant 0 : i32
    %c0_i32_0 = arith.constant 0 : i32
    %c0_i32_1 = arith.constant 0 : i32
    return %c0_i32, %c0_i32_0 : i32, i32
  }
  func.func @transform_13(%arg0: i32) -> (i32, i32) {
    %c0_i32 = arith.constant 0 : i32
    %c0_i32_0 = arith.constant 0 : i32
    %c0_i32_1 = arith.constant 0 : i32
    return %c0_i32, %c0_i32_0 : i32, i32
  }
  func.func @transform_14(%arg0: i32) -> (i32, i32) {
    %c0_i32 = arith.constant 0 : i32
    %c0_i32_0 = arith.constant 0 : i32
    return %arg0, %c0_i32 : i32, i32
  }
  func.func @transform_15(%arg0: i32) -> (i32, i32) {
    %c0_i32 = arith.constant 0 : i32
    %c0_i32_0 = arith.constant 0 : i32
    return %arg0, %c0_i32 : i32, i32
  }
}

module attributes {stable_mosaic.version = 11 : i64} {
  func.func @_post_ipa_kernel(%arg0: i32, %arg1: memref<16x32xf32, #tpu.memory_space<vmem>>, %arg2: memref<16x32xf32, #tpu.memory_space<vmem>>, %arg3: memref<2x32xf32, #tpu.memory_space<vmem>>, %arg4: memref<3x32x32xf32, #tpu.memory_space<vmem>>, %arg5: memref<3x32xf32, #tpu.memory_space<vmem>>, %arg6: memref<2x32xf32, #tpu.memory_space<vmem>>, %arg7: memref<32x6xf32, #tpu.memory_space<vmem>>, %arg8: memref<1x6xf32, #tpu.memory_space<vmem>>, %arg9: memref<2x32x16xf32, #tpu.memory_space<vmem>>, %arg10: memref<1x16xf32, #tpu.memory_space<vmem>>, %arg11: memref<4x16x16xf32, #tpu.memory_space<vmem>>, %arg12: memref<4x16xf32, #tpu.memory_space<vmem>>, %arg13: memref<16x4xf32, #tpu.memory_space<vmem>>, %arg14: memref<1x4xf32, #tpu.memory_space<vmem>>, %arg15: memref<16x32xf32, #tpu.memory_space<vmem>>, %arg16: memref<16x10xf32, #tpu.memory_space<vmem>>) attributes {dimension_semantics = [#tpu.dimension_semantics<parallel>], iteration_bounds = array<i64: 1>, scalar_prefetch = 0 : i64, scratch_operands = 0 : i64, tpu.core_type = #tpu.core_type<tc>, window_params = [{transform_indices = @transform_0, window_bounds = array<i64: 16, 32>}, {transform_indices = @transform_1, window_bounds = array<i64: 16, 32>}, {pipeline_mode = #tpu.pipeline_mode<synchronous>, transform_indices = @transform_2, window_bounds = array<i64: 2, 32>}, {pipeline_mode = #tpu.pipeline_mode<synchronous>, transform_indices = @transform_3, window_bounds = array<i64: 3, 32, 32>}, {pipeline_mode = #tpu.pipeline_mode<synchronous>, transform_indices = @transform_4, window_bounds = array<i64: 3, 32>}, {pipeline_mode = #tpu.pipeline_mode<synchronous>, transform_indices = @transform_5, window_bounds = array<i64: 2, 32>}, {pipeline_mode = #tpu.pipeline_mode<synchronous>, transform_indices = @transform_6, window_bounds = array<i64: 32, 6>}, {pipeline_mode = #tpu.pipeline_mode<synchronous>, transform_indices = @transform_7, window_bounds = array<i64: 1, 6>}, {pipeline_mode = #tpu.pipeline_mode<synchronous>, transform_indices = @transform_8, window_bounds = array<i64: 2, 32, 16>}, {pipeline_mode = #tpu.pipeline_mode<synchronous>, transform_indices = @transform_9, window_bounds = array<i64: 1, 16>}, {pipeline_mode = #tpu.pipeline_mode<synchronous>, transform_indices = @transform_10, window_bounds = array<i64: 4, 16, 16>}, {pipeline_mode = #tpu.pipeline_mode<synchronous>, transform_indices = @transform_11, window_bounds = array<i64: 4, 16>}, {pipeline_mode = #tpu.pipeline_mode<synchronous>, transform_indices = @transform_12, window_bounds = array<i64: 16, 4>}, {pipeline_mode = #tpu.pipeline_mode<synchronous>, transform_indices = @transform_13, window_bounds = array<i64: 1, 4>}, {transform_indices = @transform_14, window_bounds = array<i64: 16, 32>}, {transform_indices = @transform_15, window_bounds = array<i64: 16, 10>}]} {
    %c0 = arith.constant 0 : index
    %c0_0 = arith.constant 0 : index
    %c0_1 = arith.constant 0 : index
    %0 = vector.load %arg4[%c0, %c0_0, %c0_1] : memref<3x32x32xf32, #tpu.memory_space<vmem>>, vector<3x32x32xf32>
    %c0_2 = arith.constant 0 : index
    %c0_3 = arith.constant 0 : index
    %1 = vector.load %arg5[%c0_2, %c0_3] : memref<3x32xf32, #tpu.memory_space<vmem>>, vector<3x32xf32>
    %c0_4 = arith.constant 0 : index
    %c0_5 = arith.constant 0 : index
    %c0_6 = arith.constant 0 : index
    %2 = vector.load %arg11[%c0_4, %c0_5, %c0_6] : memref<4x16x16xf32, #tpu.memory_space<vmem>>, vector<4x16x16xf32>
    %c0_7 = arith.constant 0 : index
    %c0_8 = arith.constant 0 : index
    %3 = vector.load %arg12[%c0_7, %c0_8] : memref<4x16xf32, #tpu.memory_space<vmem>>, vector<4x16xf32>
    %c0_9 = arith.constant 0 : index
    %c0_10 = arith.constant 0 : index
    %c0_11 = arith.constant 0 : index
    %4 = vector.load %arg9[%c0_9, %c0_10, %c0_11] : memref<2x32x16xf32, #tpu.memory_space<vmem>>, vector<2x32x16xf32>
    %c0_12 = arith.constant 0 : index
    %c0_13 = arith.constant 0 : index
    %5 = vector.load %arg1[%c0_12, %c0_13] : memref<16x32xf32, #tpu.memory_space<vmem>>, vector<16x32xf32>
    %c0_14 = arith.constant 0 : index
    %c0_15 = arith.constant 0 : index
    %6 = vector.load %arg3[%c0_14, %c0_15] : memref<2x32xf32, #tpu.memory_space<vmem>>, vector<2x32xf32>
    %cst = arith.constant dense<0.000000e+00> : vector<16xf32>
    %7 = vector.multi_reduction <add>, %5, %cst [1] : vector<16x32xf32> to vector<16xf32>
    %8 = vector.shape_cast %7 : vector<16xf32> to vector<16x1xf32>
    %cst_16 = arith.constant 3.200000e+01 : f32
    %9 = vector.broadcast %cst_16 : f32 to vector<16x1xf32>
    %10 = arith.divf %8, %9 : vector<16x1xf32>
    %11 = vector.broadcast %10 : vector<16x1xf32> to vector<16x32xf32>
    %12 = arith.subf %5, %11 : vector<16x32xf32>
    %13 = arith.mulf %12, %12 : vector<16x32xf32>
    %cst_17 = arith.constant dense<0.000000e+00> : vector<16xf32>
    %14 = vector.multi_reduction <add>, %13, %cst_17 [1] : vector<16x32xf32> to vector<16xf32>
    %15 = vector.shape_cast %14 : vector<16xf32> to vector<16x1xf32>
    %cst_18 = arith.constant 3.200000e+01 : f32
    %16 = vector.broadcast %cst_18 : f32 to vector<16x1xf32>
    %17 = arith.divf %15, %16 : vector<16x1xf32>
    %18 = vector.broadcast %10 : vector<16x1xf32> to vector<16x32xf32>
    %19 = arith.subf %5, %18 : vector<16x32xf32>
    %cst_19 = arith.constant 9.99999974E-6 : f32
    %20 = vector.broadcast %cst_19 : f32 to vector<16x1xf32>
    %21 = arith.addf %17, %20 : vector<16x1xf32>
    %22 = math.rsqrt %21 : vector<16x1xf32>
    %23 = vector.broadcast %22 : vector<16x1xf32> to vector<16x32xf32>
    %24 = arith.mulf %19, %23 : vector<16x32xf32>
    %25 = vector.extract_strided_slice %6 {offsets = [0, 0], sizes = [1, 32], strides = [1, 1]} : vector<2x32xf32> to vector<1x32xf32>
    %26 = vector.broadcast %25 : vector<1x32xf32> to vector<16x32xf32>
    %27 = arith.mulf %24, %26 : vector<16x32xf32>
    %28 = vector.extract_strided_slice %6 {offsets = [1, 0], sizes = [1, 32], strides = [1, 1]} : vector<2x32xf32> to vector<1x32xf32>
    %29 = vector.broadcast %28 : vector<1x32xf32> to vector<16x32xf32>
    %30 = arith.addf %27, %29 : vector<16x32xf32>
    %31 = vector.extract_strided_slice %0 {offsets = [0, 0, 0], sizes = [1, 32, 32], strides = [1, 1, 1]} : vector<3x32x32xf32> to vector<1x32x32xf32>
    %32 = vector.shape_cast %31 : vector<1x32x32xf32> to vector<32x32xf32>
    %cst_20 = arith.constant dense<0.000000e+00> : vector<16x32xf32>
    %33 = tpu.matmul %30, %32, %cst_20 {dimension_numbers = #tpu.dot_dimension_numbers<[1], [0], [0], [1], [0, 0, 1, 1], [], []>} : vector<16x32xf32>, vector<32x32xf32>, vector<16x32xf32> -> vector<16x32xf32>
    %34 = vector.extract_strided_slice %1 {offsets = [0, 0], sizes = [1, 32], strides = [1, 1]} : vector<3x32xf32> to vector<1x32xf32>
    %35 = vector.broadcast %34 : vector<1x32xf32> to vector<16x32xf32>
    %36 = arith.addf %33, %35 : vector<16x32xf32>
    %cst_21 = arith.constant 0.000000e+00 : f32
    %37 = vector.broadcast %cst_21 : f32 to vector<16x32xf32>
    %38 = arith.maximumf %36, %37 : vector<16x32xf32>
    %39 = vector.extract_strided_slice %0 {offsets = [1, 0, 0], sizes = [1, 32, 32], strides = [1, 1, 1]} : vector<3x32x32xf32> to vector<1x32x32xf32>
    %40 = vector.shape_cast %39 : vector<1x32x32xf32> to vector<32x32xf32>
    %cst_22 = arith.constant dense<0.000000e+00> : vector<16x32xf32>
    %41 = tpu.matmul %38, %40, %cst_22 {dimension_numbers = #tpu.dot_dimension_numbers<[1], [0], [0], [1], [0, 0, 1, 1], [], []>} : vector<16x32xf32>, vector<32x32xf32>, vector<16x32xf32> -> vector<16x32xf32>
    %42 = vector.extract_strided_slice %1 {offsets = [1, 0], sizes = [1, 32], strides = [1, 1]} : vector<3x32xf32> to vector<1x32xf32>
    %43 = vector.broadcast %42 : vector<1x32xf32> to vector<16x32xf32>
    %44 = arith.addf %41, %43 : vector<16x32xf32>
    %cst_23 = arith.constant 0.000000e+00 : f32
    %45 = vector.broadcast %cst_23 : f32 to vector<16x32xf32>
    %46 = arith.maximumf %44, %45 : vector<16x32xf32>
    %47 = vector.extract_strided_slice %0 {offsets = [2, 0, 0], sizes = [1, 32, 32], strides = [1, 1, 1]} : vector<3x32x32xf32> to vector<1x32x32xf32>
    %48 = vector.shape_cast %47 : vector<1x32x32xf32> to vector<32x32xf32>
    %cst_24 = arith.constant dense<0.000000e+00> : vector<16x32xf32>
    %49 = tpu.matmul %46, %48, %cst_24 {dimension_numbers = #tpu.dot_dimension_numbers<[1], [0], [0], [1], [0, 0, 1, 1], [], []>} : vector<16x32xf32>, vector<32x32xf32>, vector<16x32xf32> -> vector<16x32xf32>
    %50 = vector.extract_strided_slice %1 {offsets = [2, 0], sizes = [1, 32], strides = [1, 1]} : vector<3x32xf32> to vector<1x32xf32>
    %51 = vector.broadcast %50 : vector<1x32xf32> to vector<16x32xf32>
    %52 = arith.addf %49, %51 : vector<16x32xf32>
    %53 = arith.addf %30, %52 : vector<16x32xf32>
    %c0_25 = arith.constant 0 : index
    %c0_26 = arith.constant 0 : index
    %54 = vector.load %arg6[%c0_25, %c0_26] : memref<2x32xf32, #tpu.memory_space<vmem>>, vector<2x32xf32>
    %cst_27 = arith.constant dense<0.000000e+00> : vector<16xf32>
    %55 = vector.multi_reduction <add>, %53, %cst_27 [1] : vector<16x32xf32> to vector<16xf32>
    %56 = vector.shape_cast %55 : vector<16xf32> to vector<16x1xf32>
    %cst_28 = arith.constant 3.200000e+01 : f32
    %57 = vector.broadcast %cst_28 : f32 to vector<16x1xf32>
    %58 = arith.divf %56, %57 : vector<16x1xf32>
    %59 = vector.broadcast %58 : vector<16x1xf32> to vector<16x32xf32>
    %60 = arith.subf %53, %59 : vector<16x32xf32>
    %61 = arith.mulf %60, %60 : vector<16x32xf32>
    %cst_29 = arith.constant dense<0.000000e+00> : vector<16xf32>
    %62 = vector.multi_reduction <add>, %61, %cst_29 [1] : vector<16x32xf32> to vector<16xf32>
    %63 = vector.shape_cast %62 : vector<16xf32> to vector<16x1xf32>
    %cst_30 = arith.constant 3.200000e+01 : f32
    %64 = vector.broadcast %cst_30 : f32 to vector<16x1xf32>
    %65 = arith.divf %63, %64 : vector<16x1xf32>
    %66 = vector.broadcast %58 : vector<16x1xf32> to vector<16x32xf32>
    %67 = arith.subf %53, %66 : vector<16x32xf32>
    %cst_31 = arith.constant 9.99999974E-6 : f32
    %68 = vector.broadcast %cst_31 : f32 to vector<16x1xf32>
    %69 = arith.addf %65, %68 : vector<16x1xf32>
    %70 = math.rsqrt %69 : vector<16x1xf32>
    %71 = vector.broadcast %70 : vector<16x1xf32> to vector<16x32xf32>
    %72 = arith.mulf %67, %71 : vector<16x32xf32>
    %73 = vector.extract_strided_slice %54 {offsets = [0, 0], sizes = [1, 32], strides = [1, 1]} : vector<2x32xf32> to vector<1x32xf32>
    %74 = vector.broadcast %73 : vector<1x32xf32> to vector<16x32xf32>
    %75 = arith.mulf %72, %74 : vector<16x32xf32>
    %76 = vector.extract_strided_slice %54 {offsets = [1, 0], sizes = [1, 32], strides = [1, 1]} : vector<2x32xf32> to vector<1x32xf32>
    %77 = vector.broadcast %76 : vector<1x32xf32> to vector<16x32xf32>
    %78 = arith.addf %75, %77 : vector<16x32xf32>
    %c0_32 = arith.constant 0 : index
    %c0_33 = arith.constant 0 : index
    %79 = vector.load %arg15[%c0_32, %c0_33] : memref<16x32xf32, #tpu.memory_space<vmem>>, vector<16x32xf32>
    tpu.vector_store %arg15[%c0_32, %c0_33], %78 {strides = array<i32>} : memref<16x32xf32, #tpu.memory_space<vmem>>, vector<16x32xf32>,
    %c0_34 = arith.constant 0 : index
    %c0_35 = arith.constant 0 : index
    %80 = vector.load %arg7[%c0_34, %c0_35] : memref<32x6xf32, #tpu.memory_space<vmem>>, vector<32x6xf32>
    %cst_36 = arith.constant dense<0.000000e+00> : vector<16x6xf32>
    %81 = tpu.matmul %78, %80, %cst_36 {dimension_numbers = #tpu.dot_dimension_numbers<[1], [0], [0], [1], [0, 0, 1, 1], [], []>} : vector<16x32xf32>, vector<32x6xf32>, vector<16x6xf32> -> vector<16x6xf32>
    %c0_37 = arith.constant 0 : index
    %c0_38 = arith.constant 0 : index
    %82 = vector.load %arg8[%c0_37, %c0_38] : memref<1x6xf32, #tpu.memory_space<vmem>>, vector<1x6xf32>
    %83 = vector.broadcast %82 : vector<1x6xf32> to vector<16x6xf32>
    %84 = arith.addf %81, %83 : vector<16x6xf32>
    %85 = vector.extract_strided_slice %4 {offsets = [0, 0, 0], sizes = [1, 32, 16], strides = [1, 1, 1]} : vector<2x32x16xf32> to vector<1x32x16xf32>
    %86 = vector.shape_cast %85 : vector<1x32x16xf32> to vector<32x16xf32>
    %cst_39 = arith.constant dense<0.000000e+00> : vector<16x16xf32>
    %87 = tpu.matmul %78, %86, %cst_39 {dimension_numbers = #tpu.dot_dimension_numbers<[1], [0], [0], [1], [0, 0, 1, 1], [], []>} : vector<16x32xf32>, vector<32x16xf32>, vector<16x16xf32> -> vector<16x16xf32>
    %c0_40 = arith.constant 0 : index
    %c0_41 = arith.constant 0 : index
    %88 = vector.load %arg2[%c0_40, %c0_41] : memref<16x32xf32, #tpu.memory_space<vmem>>, vector<16x32xf32>
    %89 = vector.extract_strided_slice %4 {offsets = [1, 0, 0], sizes = [1, 32, 16], strides = [1, 1, 1]} : vector<2x32x16xf32> to vector<1x32x16xf32>
    %90 = vector.shape_cast %89 : vector<1x32x16xf32> to vector<32x16xf32>
    %cst_42 = arith.constant dense<0.000000e+00> : vector<16x16xf32>
    %91 = tpu.matmul %88, %90, %cst_42 {dimension_numbers = #tpu.dot_dimension_numbers<[1], [0], [0], [1], [0, 0, 1, 1], [], []>} : vector<16x32xf32>, vector<32x16xf32>, vector<16x16xf32> -> vector<16x16xf32>
    %92 = arith.addf %87, %91 : vector<16x16xf32>
    %c0_43 = arith.constant 0 : index
    %c0_44 = arith.constant 0 : index
    %93 = vector.load %arg10[%c0_43, %c0_44] : memref<1x16xf32, #tpu.memory_space<vmem>>, vector<1x16xf32>
    %94 = vector.broadcast %93 : vector<1x16xf32> to vector<16x16xf32>
    %95 = arith.addf %92, %94 : vector<16x16xf32>
    %cst_45 = arith.constant 0.000000e+00 : f32
    %96 = vector.broadcast %cst_45 : f32 to vector<16x16xf32>
    %97 = arith.maximumf %95, %96 : vector<16x16xf32>
    %98 = vector.extract_strided_slice %2 {offsets = [0, 0, 0], sizes = [1, 16, 16], strides = [1, 1, 1]} : vector<4x16x16xf32> to vector<1x16x16xf32>
    %99 = vector.shape_cast %98 : vector<1x16x16xf32> to vector<16x16xf32>
    %cst_46 = arith.constant dense<0.000000e+00> : vector<16x16xf32>
    %100 = tpu.matmul %97, %99, %cst_46 {dimension_numbers = #tpu.dot_dimension_numbers<[1], [0], [0], [1], [0, 0, 1, 1], [], []>} : vector<16x16xf32>, vector<16x16xf32>, vector<16x16xf32> -> vector<16x16xf32>
    %101 = vector.extract_strided_slice %3 {offsets = [0, 0], sizes = [1, 16], strides = [1, 1]} : vector<4x16xf32> to vector<1x16xf32>
    %102 = vector.broadcast %101 : vector<1x16xf32> to vector<16x16xf32>
    %103 = arith.addf %100, %102 : vector<16x16xf32>
    %cst_47 = arith.constant 0.000000e+00 : f32
    %104 = vector.broadcast %cst_47 : f32 to vector<16x16xf32>
    %105 = arith.maximumf %103, %104 : vector<16x16xf32>
    %106 = vector.extract_strided_slice %2 {offsets = [1, 0, 0], sizes = [1, 16, 16], strides = [1, 1, 1]} : vector<4x16x16xf32> to vector<1x16x16xf32>
    %107 = vector.shape_cast %106 : vector<1x16x16xf32> to vector<16x16xf32>
    %cst_48 = arith.constant dense<0.000000e+00> : vector<16x16xf32>
    %108 = tpu.matmul %105, %107, %cst_48 {dimension_numbers = #tpu.dot_dimension_numbers<[1], [0], [0], [1], [0, 0, 1, 1], [], []>} : vector<16x16xf32>, vector<16x16xf32>, vector<16x16xf32> -> vector<16x16xf32>
    %109 = vector.extract_strided_slice %3 {offsets = [1, 0], sizes = [1, 16], strides = [1, 1]} : vector<4x16xf32> to vector<1x16xf32>
    %110 = vector.broadcast %109 : vector<1x16xf32> to vector<16x16xf32>
    %111 = arith.addf %108, %110 : vector<16x16xf32>
    %112 = arith.addf %95, %111 : vector<16x16xf32>
    %cst_49 = arith.constant 0.000000e+00 : f32
    %113 = vector.broadcast %cst_49 : f32 to vector<16x16xf32>
    %114 = arith.maximumf %112, %113 : vector<16x16xf32>
    %115 = vector.extract_strided_slice %2 {offsets = [2, 0, 0], sizes = [1, 16, 16], strides = [1, 1, 1]} : vector<4x16x16xf32> to vector<1x16x16xf32>
    %116 = vector.shape_cast %115 : vector<1x16x16xf32> to vector<16x16xf32>
    %cst_50 = arith.constant dense<0.000000e+00> : vector<16x16xf32>
    %117 = tpu.matmul %114, %116, %cst_50 {dimension_numbers = #tpu.dot_dimension_numbers<[1], [0], [0], [1], [0, 0, 1, 1], [], []>} : vector<16x16xf32>, vector<16x16xf32>, vector<16x16xf32> -> vector<16x16xf32>
    %118 = vector.extract_strided_slice %3 {offsets = [2, 0], sizes = [1, 16], strides = [1, 1]} : vector<4x16xf32> to vector<1x16xf32>
    %119 = vector.broadcast %118 : vector<1x16xf32> to vector<16x16xf32>
    %120 = arith.addf %117, %119 : vector<16x16xf32>
    %cst_51 = arith.constant 0.000000e+00 : f32
    %121 = vector.broadcast %cst_51 : f32 to vector<16x16xf32>
    %122 = arith.maximumf %120, %121 : vector<16x16xf32>
    %123 = vector.extract_strided_slice %2 {offsets = [3, 0, 0], sizes = [1, 16, 16], strides = [1, 1, 1]} : vector<4x16x16xf32> to vector<1x16x16xf32>
    %124 = vector.shape_cast %123 : vector<1x16x16xf32> to vector<16x16xf32>
    %cst_52 = arith.constant dense<0.000000e+00> : vector<16x16xf32>
    %125 = tpu.matmul %122, %124, %cst_52 {dimension_numbers = #tpu.dot_dimension_numbers<[1], [0], [0], [1], [0, 0, 1, 1], [], []>} : vector<16x16xf32>, vector<16x16xf32>, vector<16x16xf32> -> vector<16x16xf32>
    %126 = vector.extract_strided_slice %3 {offsets = [3, 0], sizes = [1, 16], strides = [1, 1]} : vector<4x16xf32> to vector<1x16xf32>
    %127 = vector.broadcast %126 : vector<1x16xf32> to vector<16x16xf32>
    %128 = arith.addf %125, %127 : vector<16x16xf32>
    %129 = arith.addf %112, %128 : vector<16x16xf32>
    %cst_53 = arith.constant 0.000000e+00 : f32
    %130 = vector.broadcast %cst_53 : f32 to vector<16x16xf32>
    %131 = arith.maximumf %129, %130 : vector<16x16xf32>
    %c0_54 = arith.constant 0 : index
    %c0_55 = arith.constant 0 : index
    %132 = vector.load %arg13[%c0_54, %c0_55] : memref<16x4xf32, #tpu.memory_space<vmem>>, vector<16x4xf32>
    %cst_56 = arith.constant dense<0.000000e+00> : vector<16x4xf32>
    %133 = tpu.matmul %131, %132, %cst_56 {dimension_numbers = #tpu.dot_dimension_numbers<[1], [0], [0], [1], [0, 0, 1, 1], [], []>} : vector<16x16xf32>, vector<16x4xf32>, vector<16x4xf32> -> vector<16x4xf32>
    %c0_57 = arith.constant 0 : index
    %c0_58 = arith.constant 0 : index
    %134 = vector.load %arg14[%c0_57, %c0_58] : memref<1x4xf32, #tpu.memory_space<vmem>>, vector<1x4xf32>
    %135 = vector.broadcast %134 : vector<1x4xf32> to vector<16x4xf32>
    %136 = arith.addf %133, %135 : vector<16x4xf32>
    %137 = tpu.concatenate %84, %136 in 1 : vector<16x6xf32>, vector<16x4xf32> -> vector<16x10xf32>
    %c0_59 = arith.constant 0 : index
    %c0_60 = arith.constant 0 : index
    %138 = vector.load %arg16[%c0_59, %c0_60] : memref<16x10xf32, #tpu.memory_space<vmem>>, vector<16x10xf32>
    tpu.vector_store %arg16[%c0_59, %c0_60], %137 {strides = array<i32>} : memref<16x10xf32, #tpu.memory_space<vmem>>, vector<16x10xf32>,
    return
  }
  func.func @transform_0(%arg0: i32) -> (i32, i32) {
    %c0_i32 = arith.constant 0 : i32
    %c0_i32_0 = arith.constant 0 : i32
    return %arg0, %c0_i32 : i32, i32
  }
  func.func @transform_1(%arg0: i32) -> (i32, i32) {
    %c0_i32 = arith.constant 0 : i32
    %c0_i32_0 = arith.constant 0 : i32
    return %arg0, %c0_i32 : i32, i32
  }
  func.func @transform_2(%arg0: i32) -> (i32, i32) {
    %c0_i32 = arith.constant 0 : i32
    %c0_i32_0 = arith.constant 0 : i32
    %c0_i32_1 = arith.constant 0 : i32
    return %c0_i32, %c0_i32_0 : i32, i32
  }
  func.func @transform_3(%arg0: i32) -> (i32, i32, i32) {
    %c0_i32 = arith.constant 0 : i32
    %c0_i32_0 = arith.constant 0 : i32
    %c0_i32_1 = arith.constant 0 : i32
    %c0_i32_2 = arith.constant 0 : i32
    return %c0_i32, %c0_i32_0, %c0_i32_1 : i32, i32, i32
  }
  func.func @transform_4(%arg0: i32) -> (i32, i32) {
    %c0_i32 = arith.constant 0 : i32
    %c0_i32_0 = arith.constant 0 : i32
    %c0_i32_1 = arith.constant 0 : i32
    return %c0_i32, %c0_i32_0 : i32, i32
  }
  func.func @transform_5(%arg0: i32) -> (i32, i32) {
    %c0_i32 = arith.constant 0 : i32
    %c0_i32_0 = arith.constant 0 : i32
    %c0_i32_1 = arith.constant 0 : i32
    return %c0_i32, %c0_i32_0 : i32, i32
  }
  func.func @transform_6(%arg0: i32) -> (i32, i32) {
    %c0_i32 = arith.constant 0 : i32
    %c0_i32_0 = arith.constant 0 : i32
    %c0_i32_1 = arith.constant 0 : i32
    return %c0_i32, %c0_i32_0 : i32, i32
  }
  func.func @transform_7(%arg0: i32) -> (i32, i32) {
    %c0_i32 = arith.constant 0 : i32
    %c0_i32_0 = arith.constant 0 : i32
    %c0_i32_1 = arith.constant 0 : i32
    return %c0_i32, %c0_i32_0 : i32, i32
  }
  func.func @transform_8(%arg0: i32) -> (i32, i32, i32) {
    %c0_i32 = arith.constant 0 : i32
    %c0_i32_0 = arith.constant 0 : i32
    %c0_i32_1 = arith.constant 0 : i32
    %c0_i32_2 = arith.constant 0 : i32
    return %c0_i32, %c0_i32_0, %c0_i32_1 : i32, i32, i32
  }
  func.func @transform_9(%arg0: i32) -> (i32, i32) {
    %c0_i32 = arith.constant 0 : i32
    %c0_i32_0 = arith.constant 0 : i32
    %c0_i32_1 = arith.constant 0 : i32
    return %c0_i32, %c0_i32_0 : i32, i32
  }
  func.func @transform_10(%arg0: i32) -> (i32, i32, i32) {
    %c0_i32 = arith.constant 0 : i32
    %c0_i32_0 = arith.constant 0 : i32
    %c0_i32_1 = arith.constant 0 : i32
    %c0_i32_2 = arith.constant 0 : i32
    return %c0_i32, %c0_i32_0, %c0_i32_1 : i32, i32, i32
  }
  func.func @transform_11(%arg0: i32) -> (i32, i32) {
    %c0_i32 = arith.constant 0 : i32
    %c0_i32_0 = arith.constant 0 : i32
    %c0_i32_1 = arith.constant 0 : i32
    return %c0_i32, %c0_i32_0 : i32, i32
  }
  func.func @transform_12(%arg0: i32) -> (i32, i32) {
    %c0_i32 = arith.constant 0 : i32
    %c0_i32_0 = arith.constant 0 : i32
    %c0_i32_1 = arith.constant 0 : i32
    return %c0_i32, %c0_i32_0 : i32, i32
  }
  func.func @transform_13(%arg0: i32) -> (i32, i32) {
    %c0_i32 = arith.constant 0 : i32
    %c0_i32_0 = arith.constant 0 : i32
    %c0_i32_1 = arith.constant 0 : i32
    return %c0_i32, %c0_i32_0 : i32, i32
  }
  func.func @transform_14(%arg0: i32) -> (i32, i32) {
    %c0_i32 = arith.constant 0 : i32
    %c0_i32_0 = arith.constant 0 : i32
    return %arg0, %c0_i32 : i32, i32
  }
  func.func @transform_15(%arg0: i32) -> (i32, i32) {
    %c0_i32 = arith.constant 0 : i32
    %c0_i32_0 = arith.constant 0 : i32
    return %arg0, %c0_i32 : i32, i32
  }
}

</mosaic_0001>

<bundles_post_ra>
// kernel: structure_module_forward.10
= control target key start
LH: loop header
LB: loop body
LE: loop exit
PB: predicated region body
PF: predicated region fallthrough
CT: control target
= control target key end

     0   :  { %vm22_vm0 = vcmask 261120   ;;  %v50_v22 = vlaneseq  ;;  %s274_s0 = inlined_call_operand.vmem [shape: f32[16,32], index: 0, kind: input, shape index: {}]   ;;  %s275_s2 = inlined_call_operand.vmem [shape: f32[32,32], index: 2, kind: input, shape index: {}]   ;;  %s276_s1 = inlined_call_operand.vmem [shape: f32[2,32], index: 1, kind: input, shape index: {}]   ;;  %s277_s4 = inlined_call_operand.vmem [shape: f32[16,32], index: 4, kind: output, shape index: {0}]   ;;  %s278_s3 = inlined_call_operand.vmem [shape: f32[1,32], index: 3, kind: input, shape index: {}]   ;;  %s279_s5 = inlined_call_operand.vmem [shape: f32[16,32], index: 5, kind: output, shape index: {1}]  }
   0x1   :  { %v19_v0 = vld [vmem:[%s274_s0] sm:$0xff]  ;;  %v20_v1 = vld [vmem:[%s274_s0 + $0x8] sm:$0xff]  ;;  %v66_v16 = vld [vmem:[%s275_s2 + $0x10] sm:$0xff] }
   0x2   :  { %v23_v2 = vsel %vm22_vm0, %v19_v0, 0.0  ;;  %v26_v3 = vsel %vm22_vm0, %v20_v1, 0.0  ;;  %v64_v14 = vld [vmem:[%s275_s2] sm:$0xff]  ;;  %v65_v15 = vld [vmem:[%s275_s2 + $0x8] sm:$0xff]  ;;  %v67_v18 = vld [vmem:[%s275_s2 + $0x18] sm:$0xff]  ;;  %v51_v26 = vshrl.u32 %v50_v22, 7 }
   0x3   :  { %24 = vadd.xlane.f32.xlu0 %v23_v2  ;;  %v186_v17 = vpack.c.bf16 %v65_v15, %v64_v14  ;;  %v190_v19 = vpack.c.bf16 %v67_v18, %v66_v16  ;;  %v21_v29 = vld [vmem:[%s276_s1] sm:$0x3] }
   0x4   :  { %v52_v28 = vsub.s32 0, %v51_v26  ;;  %v58_v30 = vsub.s32 1, %v51_v26  ;;  %v166_v41 = vld [vmem:[%s278_s3] ss:$0 sm:$0xff] }
   0x5   :  { %187 = vmatprep.subr.bf16.mxu0 %v186_v17 }
   0x6   :  { %189 = vmatpush3.bf16.msra.mxu0 %v186_v17  ;;  %v53_v31 = vrot.slane %v21_v29, %v52_v28  ;;  %v59_v34 = vrot.slane %v21_v29, %v58_v30 }
   0x7   :  { %27 = vadd.xlane.f32.xlu0 %v26_v3  ;;  %191 = vmatprep.subr.bf16.mxu0 %v190_v19 }
   0xa   :  { %193 = vmatpush3.bf16.msra.mxu0 %v190_v19 }
  0x90   :  { %v25_v4 = vpop.xlane.xlu0 %24 }
  0x91   :  { %v30_v5 = vmul.f32 0.03125, %v25_v4 }
  0x93   :  { %v32_v6 = vsub.f32 %v19_v0, %v30_v5 }
  0x94   :  { %v28_v7 = vpop.xlane.xlu0 %27 }
  0x95   :  { %v31_v8 = vmul.f32 0.03125, %v28_v7  ;;  %v34_v9 = vmul.f32 %v32_v6, %v32_v6 }
  0x97   :  { %v33_v10 = vsub.f32 %v20_v1, %v31_v8  ;;  %v36_v11 = vsel %vm22_vm0, %v34_v9, 0.0 }
  0x98   :  { %37 = vadd.xlane.f32.xlu1 %v36_v11 }
  0x99   :  { %v35_v12 = vmul.f32 %v33_v10, %v33_v10 }
  0x9b   :  { %v39_v13 = vsel %vm22_vm0, %v35_v12, 0.0 }
  0x9c   :  { %40 = vadd.xlane.f32.xlu1 %v39_v13 }
 0x125   :  { %v38_v20 = vpop.xlane.xlu1 %37 }
 0x126   :  { %v42_v21 = vmul.f32 0.03125, %v38_v20 }
 0x128   :  { %v44_v23 = vadd.f32 1e-05, %v42_v21 }
 0x129   :  { %v41_v24 = vpop.xlane.xlu1 %40 }
 0x12a   :  { %194 = vrsqrt.f32 %v44_v23  ;;  %v43_v25 = vmul.f32 0.03125, %v41_v24 }
 0x12c   :  { %v45_v27 = vadd.f32 1e-05, %v43_v25 }
 0x12e   :  { %196 = vrsqrt.f32 %v45_v27 }
 0x134   :  { %v195_v32 = vpop.eup %194 }
 0x135   :  { %v48_v33 = vmul.f32 %v195_v32, %v32_v6 }
 0x137   :  { %v54_v35 = vmul.f32 %v53_v31, %v48_v33 }
 0x138   :  { %v197_v36 = vpop.eup %196 }
 0x139   :  { %v49_v37 = vmul.f32 %v197_v36, %v33_v10  ;;  %v60_v38 = vadd.f32 %v59_v34, %v54_v35 }
 0x13b   :  { %v55_v39 = vmul.f32 %v53_v31, %v49_v37  ;;  %62 = vst.msk [vmem:[%s277_s4] sm:$0xff] %vm22_vm0, %v60_v38  ;;  %183 = vmatprep.mubr.msk.f32.mxu0 %vm22_vm0, %v60_v38 }
 0x13d   :  { %v61_v40 = vadd.f32 %v59_v34, %v55_v39 }
 0x13f   :  { %63 = vst.msk [vmem:[%s277_s4 + $0x8] sm:$0xff] %vm22_vm0, %v61_v40  ;;  %184 = vmatmul.mubr.msk.f32.vlgmr.msra.gmra.mrb[0].mxu0 %vm22_vm0, %v61_v40 }
 0x212   :  { %v185_v42 = vpop.f32.mrb[0].mxu0 }
 0x213   :  { %v153_v43 = vadd.f32 %v185_v42, %v166_v41  ;;  %v147_v44 = vpop.f32.mrb[1].mxu0 }
 0x214   :  { %v148_v45 = vadd.f32 %v166_v41, %v147_v44 }
 0x215   :  { %157 = vst.msk [vmem:[%s279_s5 + $0x8] sm:$0xff] %vm22_vm0, %v153_v43 }
 0x216   :  { %156 = vst.msk [vmem:[%s279_s5] sm:$0xff] %vm22_vm0, %v148_v45 }

// kernel: structure_module_forward.12
= control target key start
LH: loop header
LB: loop body
LE: loop exit
PB: predicated region body
PF: predicated region fallthrough
CT: control target
= control target key end

     0   :  { %v529_v3 = vmov 0.0   ;;  %vm49_vm0 = vcmask 261120   ;;  %s731_s1 = inlined_call_operand.vmem [shape: f32[32,1152], index: 1, kind: input, shape index: {}]   ;;  %s732_s0 = inlined_call_operand.vmem [shape: f32[16,32], index: 0, kind: input, shape index: {}]   ;;  %s733_s2 = inlined_call_operand.vmem [shape: f32[16,1152], index: 2, kind: output, shape index: {}]  }
   0x1   :  { %v14_v0 = vld [vmem:[%s731_s1 + $0x8] sm:$0xff]  ;;  %v23_v1 = vld [vmem:[%s731_s1 + $0x50] sm:$0xff]  ;;  %v13_v2 = vld [vmem:[%s731_s1] sm:$0xff]  ;;  %120 = vmatprep.mubr.f32.mxu0 %v529_v3  ;;  %197 = vmatprep.mubr.f32.mxu1 %v529_v3 }
   0x2   :  { %v488_v4 = vpack.c.bf16 %v23_v1, %v14_v0  ;;  %v22_v5 = vld [vmem:[%s731_s1 + $0x48] sm:$0xff]  ;;  %v32_v6 = vld [vmem:[%s731_s1 + $0x98] sm:$0xff]  ;;  %v41_v7 = vld [vmem:[%s731_s1 + $0xe0] sm:$0xff] }
   0x3   :  { %v490_v8 = vpack.c.bf16 %v22_v5, %v13_v2  ;;  %v492_v9 = vpack.c.bf16 %v41_v7, %v32_v6  ;;  %v16_v10 = vld [vmem:[%s731_s1 + $0x18] sm:$0xff]  ;;  %v25_v11 = vld [vmem:[%s731_s1 + $0x60] sm:$0xff]  ;;  %v31_v12 = vld [vmem:[%s731_s1 + $0x90] sm:$0xff] }
   0x4   :  { %489 = vmatprep.subr.bf16.mxu0 %v488_v4  ;;  %v496_v13 = vpack.c.bf16 %v25_v11, %v16_v10  ;;  %v40_v14 = vld [vmem:[%s731_s1 + $0xd8] sm:$0xff]  ;;  %v15_v15 = vld [vmem:[%s731_s1 + $0x10] sm:$0xff]  ;;  %v34_v19 = vld [vmem:[%s731_s1 + $0xa8] sm:$0xff] }
   0x5   :  { %v24_v16 = vld [vmem:[%s731_s1 + $0x58] sm:$0xff]  ;;  %491 = vmatpush1.bf16.msra.mxu0 %v490_v8  ;;  %v494_v17 = vpack.c.bf16 %v40_v14, %v31_v12  ;;  %v43_v20 = vld [vmem:[%s731_s1 + $0xf0] sm:$0xff]  ;;  %v18_v22 = vld [vmem:[%s731_s1 + $0x28] sm:$0xff] }
   0x6   :  { %v498_v18 = vpack.c.bf16 %v24_v16, %v15_v15  ;;  %493 = vmatprep.subr.bf16.mxu0 %v492_v9  ;;  %497 = vmatprep.subr.bf16.mxu1 %v496_v13  ;;  %v500_v21 = vpack.c.bf16 %v43_v20, %v34_v19  ;;  %v27_v23 = vld [vmem:[%s731_s1 + $0x70] sm:$0xff]  ;;  %v33_v24 = vld [vmem:[%s731_s1 + $0xa0] sm:$0xff]  ;;  %v42_v26 = vld [vmem:[%s731_s1 + $0xe8] sm:$0xff] }
   0x7   :  { %v504_v25 = vpack.c.bf16 %v27_v23, %v18_v22  ;;  %v17_v27 = vld [vmem:[%s731_s1 + $0x20] sm:$0xff]  ;;  %v26_v28 = vld [vmem:[%s731_s1 + $0x68] sm:$0xff]  ;;  %v502_v30 = vpack.c.bf16 %v42_v26, %v33_v24  ;;  %v36_v31 = vld [vmem:[%s731_s1 + $0xb8] sm:$0xff] }
   0x8   :  { %499 = vmatpush1.bf16.msra.mxu1 %v498_v18  ;;  %v11_v29 = vld [vmem:[%s732_s0] sm:$0xff]  ;;  %v506_v33 = vpack.c.bf16 %v26_v28, %v17_v27  ;;  %v20_v34 = vld [vmem:[%s731_s1 + $0x38] sm:$0xff]  ;;  %v35_v36 = vld [vmem:[%s731_s1 + $0xb0] sm:$0xff] }
   0x9   :  { %501 = vmatprep.subr.bf16.mxu1 %v500_v21  ;;  %v45_v32 = vld [vmem:[%s731_s1 + $0x100] sm:$0xff]  ;;  %495 = vmatpush1.bf16.msra.mxu0 %v494_v17  ;;  %v44_v39 = vld [vmem:[%s731_s1 + $0xf8] sm:$0xff]  ;;  %v19_v40 = vld [vmem:[%s731_s1 + $0x30] sm:$0xff] }
   0xa   :  { %v29_v35 = vld [vmem:[%s731_s1 + $0x80] sm:$0xff]  ;;  %505 = vmatprep.subr.bf16.mxu0 %v504_v25  ;;  %v508_v37 = vpack.c.bf16 %v45_v32, %v36_v31  ;;  %v28_v41 = vld [vmem:[%s731_s1 + $0x78] sm:$0xff]  ;;  %v38_v43 = vld [vmem:[%s731_s1 + $0xc8] sm:$0xff]  ;;  %v510_v51 = vpack.c.bf16 %v44_v39, %v35_v36 }
   0xb   :  { %v512_v38 = vpack.c.bf16 %v29_v35, %v20_v34  ;;  %v514_v42 = vpack.c.bf16 %v28_v41, %v19_v40  ;;  %v47_v44 = vld [vmem:[%s731_s1 + $0x110] sm:$0xff]  ;;  %v21_v45 = vld [vmem:[%s731_s1 + $0x40] sm:$0xff]  ;;  %v30_v47 = vld [vmem:[%s731_s1 + $0x88] sm:$0xff] }
   0xc   :  { %503 = vmatpush1.bf16.msra.mxu1 %v502_v30  ;;  %461 = vmatmul.mubr.msk.f32.vlgmr.msra.gmra.mrb[0].mxu0 %vm49_vm0, %v11_v29  ;;  %v516_v46 = vpack.c.bf16 %v47_v44, %v38_v43  ;;  %v37_v48 = vld [vmem:[%s731_s1 + $0xc0] sm:$0xff]  ;;  %v46_v49 = vld [vmem:[%s731_s1 + $0x108] sm:$0xff]  ;;  %v520_v52 = vpack.c.bf16 %v30_v47, %v21_v45  ;;  %v39_v54 = vld [vmem:[%s731_s1 + $0xd0] sm:$0xff] }
   0xd   :  { %513 = vmatprep.subr.bf16.mxu1 %v512_v38  ;;  %507 = vmatpush1.bf16.msra.mxu0 %v506_v33  ;;  %v12_v50 = vld [vmem:[%s732_s0 + $0x8] sm:$0xff]  ;;  %v518_v53 = vpack.c.bf16 %v46_v49, %v37_v48  ;;  %v48_v55 = vld [vmem:[%s731_s1 + $0x118] sm:$0xff] }
   0xe   :  { %126 = vmatprep.mubr.f32.mxu0 %v529_v3  ;;  %509 = vmatprep.subr.bf16.mxu0 %v508_v37  ;;  %v524_v56 = vpack.c.bf16 %v48_v55, %v39_v54 }
   0xf   :  { %463 = vmatmul.mubr.msk.f32.vlgmr.msra.gmra.mrb[0].mxu1 %vm49_vm0, %v11_v29 }
  0x10   :  { %515 = vmatpush1.bf16.msra.mxu1 %v514_v42  ;;  %203 = vmatprep.mubr.f32.mxu1 %v529_v3 }
  0x11   :  { %462 = vmatmul.mubr.msk.f32.gmra.mrb[2].mxu0 %vm49_vm0, %v12_v50  ;;  %517 = vmatprep.subr.bf16.mxu1 %v516_v46 }
  0x12   :  { %511 = vmatpush1.bf16.msra.mxu0 %v510_v51  ;;  %274 = vmatprep.mubr.f32.mxu0 %v529_v3 }
  0x13   :  { %464 = vmatmul.mubr.msk.f32.gmra.mrb[2].mxu1 %vm49_vm0, %v12_v50  ;;  %521 = vmatprep.subr.bf16.mxu0 %v520_v52 }
  0x14   :  { %519 = vmatpush1.bf16.msra.mxu1 %v518_v53  ;;  %351 = vmatprep.mubr.f32.mxu1 %v529_v3 }
  0x15   :  { %465 = vmatmul.mubr.msk.f32.vlgmr.msra.gmra.mrb[4].mxu0 %vm49_vm0, %v11_v29 }
  0x16   :  { %523 = vmatpush3.bf16.msra.mxu0 %v520_v52  ;;  %280 = vmatprep.mubr.f32.mxu0 %v529_v3 }
  0x17   :  { %467 = vmatmul.mubr.msk.f32.vlgmr.msra.gmra.mrb[4].mxu1 %vm49_vm0, %v11_v29  ;;  %525 = vmatprep.subr.bf16.mxu0 %v524_v56 }
  0x18   :  { %357 = vmatprep.mubr.f32.mxu1 %v529_v3 }
  0x19   :  { %466 = vmatmul.mubr.msk.f32.gmra.mrb[6].mxu0 %vm49_vm0, %v12_v50 }
  0x1a   :  { %527 = vmatpush3.bf16.msra.mxu0 %v524_v56  ;;  %485 = vmatprep.mubr.msk.f32.mxu0 %vm49_vm0, %v11_v29 }
  0x1b   :  { %468 = vmatmul.mubr.msk.f32.gmra.mrb[6].mxu1 %vm49_vm0, %v12_v50 }
  0x1d   :  { %486 = vmatmul.mubr.msk.f32.vlgmr.msra.gmra.mrb[8].mxu0 %vm49_vm0, %v12_v50 }
  0xdf   :  { %v122_v57 = vpop.f32.mrb[0].mxu0 }
  0xe0   :  { %439 = vst [vmem:[%s733_s2] sm:$0xff] %v122_v57  ;;  %v124_v58 = vpop.f32.mrb[1].mxu0 }
  0xe1   :  { %440 = vst [vmem:[%s733_s2 + $0x8] sm:$0xff] %v124_v58 }
  0xe2   :  { %v199_v59 = vpop.f32.mrb[0].mxu1 }
  0xe3   :  { %441 = vst [vmem:[%s733_s2 + $0x10] sm:$0xff] %v199_v59  ;;  %v201_v60 = vpop.f32.mrb[1].mxu1 }
  0xe4   :  { %v128_v61 = vpop.f32.mrb[2].mxu0  ;;  %442 = vst [vmem:[%s733_s2 + $0x18] sm:$0xff] %v201_v60 }
  0xe5   :  { %448 = vst [vmem:[%s733_s2 + $0x48] sm:$0xff] %v128_v61  ;;  %v130_v62 = vpop.f32.mrb[3].mxu0 }
  0xe6   :  { %449 = vst [vmem:[%s733_s2 + $0x50] sm:$0xff] %v130_v62  ;;  %v205_v63 = vpop.f32.mrb[2].mxu1 }
  0xe7   :  { %450 = vst [vmem:[%s733_s2 + $0x58] sm:$0xff] %v205_v63  ;;  %v207_v0 = vpop.f32.mrb[3].mxu1 }
  0xe8   :  { %v276_v1 = vpop.f32.mrb[4].mxu0  ;;  %451 = vst [vmem:[%s733_s2 + $0x60] sm:$0xff] %v207_v0 }
  0xe9   :  { %443 = vst [vmem:[%s733_s2 + $0x20] sm:$0xff] %v276_v1  ;;  %v278_v2 = vpop.f32.mrb[5].mxu0 }
  0xea   :  { %444 = vst [vmem:[%s733_s2 + $0x28] sm:$0xff] %v278_v2  ;;  %v353_v3 = vpop.f32.mrb[4].mxu1 }
  0xeb   :  { %445 = vst [vmem:[%s733_s2 + $0x30] sm:$0xff] %v353_v3  ;;  %v355_v4 = vpop.f32.mrb[5].mxu1 }
  0xec   :  { %v282_v5 = vpop.f32.mrb[6].mxu0  ;;  %446 = vst [vmem:[%s733_s2 + $0x38] sm:$0xff] %v355_v4 }
  0xed   :  { %452 = vst [vmem:[%s733_s2 + $0x68] sm:$0xff] %v282_v5  ;;  %v284_v6 = vpop.f32.mrb[7].mxu0 }
  0xee   :  { %453 = vst [vmem:[%s733_s2 + $0x70] sm:$0xff] %v284_v6  ;;  %v359_v7 = vpop.f32.mrb[6].mxu1 }
  0xef   :  { %454 = vst [vmem:[%s733_s2 + $0x78] sm:$0xff] %v359_v7  ;;  %v361_v8 = vpop.f32.mrb[7].mxu1 }
  0xf0   :  { %v487_v9 = vpop.f32.mrb[8].mxu0  ;;  %455 = vst [vmem:[%s733_s2 + $0x80] sm:$0xff] %v361_v8 }
  0xf1   :  { %456 = vst [vmem:[%s733_s2 + $0x88] sm:$0xff] %v487_v9  ;;  %v430_v10 = vpop.f32.mrb[9].mxu0 }
  0xf2   :  { %447 = vst [vmem:[%s733_s2 + $0x40] sm:$0xff] %v430_v10 }

// kernel: structure_module_forward.11
= control target key start
LH: loop header
LB: loop body
LE: loop exit
PB: predicated region body
PF: predicated region fallthrough
CT: control target
= control target key end

     0   :  { %vm36_vm0 = vcmask 64512   ;;  %vm503_vm1 = vcmask 97280   ;;  %s1041_s0 = inlined_call_operand.vmem [shape: f32[128,8], index: 0, kind: input, shape index: {}]   ;;  %s1042_s2 = inlined_call_operand.vmem [shape: f32[8,12], index: 2, kind: input, shape index: {}]   ;;  %s1043_s1 = inlined_call_operand.vmem [shape: f32[2,8], index: 1, kind: input, shape index: {}]   ;;  %s1044_s4 = inlined_call_operand.vmem [shape: f32[128,8], index: 4, kind: output, shape index: {0}]   ;;  %s1045_s3 = inlined_call_operand.vmem [shape: f32[1,12], index: 3, kind: input, shape index: {}]   ;;  %s1046_s5 = inlined_call_operand.vmem [shape: f32[128,12], index: 5, kind: output, shape index: {1}]  }
   0x1   :  { %v19_v0 = vld [vmem:[%s1041_s0] sm:$0xff]  ;;  %v20_v1 = vld [vmem:[%s1041_s0 + $0x8] sm:$0xff]  ;;  %v21_v8 = vld [vmem:[%s1041_s0 + $0x10] sm:$0xff] }
   0x2   :  { %v27_v2 = vld [vmem:[%s1041_s0 + $0x40] sm:$0xff]  ;;  %v37_v3 = vsel %vm36_vm0, %v19_v0, 0.0  ;;  %v40_v4 = vsel %vm36_vm0, %v20_v1, 0.0  ;;  %v28_v5 = vld [vmem:[%s1041_s0 + $0x48] sm:$0xff]  ;;  %v29_v9 = vld [vmem:[%s1041_s0 + $0x50] sm:$0xff]  ;;  %v43_v10 = vsel %vm36_vm0, %v21_v8, 0.0 }
   0x3   :  { %38 = vadd.xlane.f32.xlu0 %v37_v3  ;;  %41 = vadd.xlane.f32.xlu1 %v40_v4  ;;  %v61_v6 = vsel %vm36_vm0, %v27_v2, 0.0  ;;  %v64_v7 = vsel %vm36_vm0, %v28_v5, 0.0  ;;  %v67_v11 = vsel %vm36_vm0, %v29_v9, 0.0  ;;  %v679_v12 = vld [vmem:[%s1041_s0 + $0x18] sm:$0xff]  ;;  %v693_v16 = vld [vmem:[%s1041_s0 + $0x20] sm:$0xff]  ;;  %v707_v20 = vld [vmem:[%s1041_s0 + $0x28] sm:$0xff] }
   0x4   :  { %v684_v13 = vld [vmem:[%s1041_s0 + $0x58] sm:$0xff]  ;;  %v46_v14 = vsel %vm36_vm0, %v679_v12, 0.0  ;;  %v698_v17 = vld [vmem:[%s1041_s0 + $0x60] sm:$0xff]  ;;  %v49_v18 = vsel %vm36_vm0, %v693_v16, 0.0  ;;  %v712_v21 = vld [vmem:[%s1041_s0 + $0x68] sm:$0xff]  ;;  %v52_v22 = vsel %vm36_vm0, %v707_v20, 0.0 }
   0x5   :  { %v70_v15 = vsel %vm36_vm0, %v684_v13, 0.0  ;;  %v73_v19 = vsel %vm36_vm0, %v698_v17, 0.0  ;;  %v76_v23 = vsel %vm36_vm0, %v712_v21, 0.0  ;;  %v721_v24 = vld [vmem:[%s1041_s0 + $0x30] sm:$0xff]  ;;  %v735_v28 = vld [vmem:[%s1041_s0 + $0x38] sm:$0xff] }
   0x6   :  { %v726_v25 = vld [vmem:[%s1041_s0 + $0x70] sm:$0xff]  ;;  %v55_v26 = vsel %vm36_vm0, %v721_v24, 0.0  ;;  %v740_v29 = vld [vmem:[%s1041_s0 + $0x78] sm:$0xff]  ;;  %v58_v30 = vsel %vm36_vm0, %v735_v28, 0.0 }
   0x7   :  { %62 = vadd.xlane.f32.xlu0 %v61_v6  ;;  %65 = vadd.xlane.f32.xlu1 %v64_v7  ;;  %v79_v27 = vsel %vm36_vm0, %v726_v25, 0.0  ;;  %v82_v31 = vsel %vm36_vm0, %v740_v29, 0.0 }
   0xb   :  { %44 = vadd.xlane.f32.xlu0 %v43_v10  ;;  %68 = vadd.xlane.f32.xlu1 %v67_v11 }
   0xf   :  { %47 = vadd.xlane.f32.xlu0 %v46_v14  ;;  %71 = vadd.xlane.f32.xlu1 %v70_v15 }
  0x13   :  { %50 = vadd.xlane.f32.xlu0 %v49_v18  ;;  %74 = vadd.xlane.f32.xlu1 %v73_v19 }
  0x17   :  { %53 = vadd.xlane.f32.xlu0 %v52_v22  ;;  %77 = vadd.xlane.f32.xlu1 %v76_v23 }
  0x1b   :  { %56 = vadd.xlane.f32.xlu0 %v55_v26  ;;  %80 = vadd.xlane.f32.xlu1 %v79_v27 }
  0x1f   :  { %59 = vadd.xlane.f32.xlu0 %v58_v30  ;;  %83 = vadd.xlane.f32.xlu1 %v82_v31 }
  0x90   :  { %v39_v32 = vpop.xlane.xlu0 %38  ;;  %v42_v33 = vpop.xlane.xlu1 %41 }
  0x91   :  { %v86_v34 = vmul.f32 0.125, %v39_v32  ;;  %v87_v35 = vmul.f32 0.125, %v42_v33 }
  0x93   :  { %v746_v36 = vsub.f32 %v19_v0, %v86_v34  ;;  %v748_v37 = vsub.f32 %v20_v1, %v87_v35 }
  0x94   :  { %v63_v38 = vpop.xlane.xlu0 %62  ;;  %v66_v39 = vpop.xlane.xlu1 %65 }
  0x95   :  { %v94_v40 = vmul.f32 0.125, %v63_v38  ;;  %v95_v41 = vmul.f32 0.125, %v66_v39  ;;  %v118_v42 = vmul.f32 %v746_v36, %v746_v36  ;;  %v119_v43 = vmul.f32 %v748_v37, %v748_v37 }
  0x97   :  { %v754_v44 = vsub.f32 %v27_v2, %v94_v40  ;;  %v756_v45 = vsub.f32 %v28_v5, %v95_v41  ;;  %v134_v46 = vsel %vm36_vm0, %v118_v42, 0.0  ;;  %v137_v49 = vsel %vm36_vm0, %v119_v43, 0.0 }
  0x98   :  { %135 = vadd.xlane.f32.xlu0 %v134_v46  ;;  %v45_v47 = vpop.xlane.xlu0 %44  ;;  %v69_v48 = vpop.xlane.xlu1 %68 }
  0x99   :  { %v88_v50 = vmul.f32 0.125, %v45_v47  ;;  %v96_v51 = vmul.f32 0.125, %v69_v48  ;;  %v126_v52 = vmul.f32 %v754_v44, %v754_v44  ;;  %v127_v53 = vmul.f32 %v756_v45, %v756_v45 }
  0x9b   :  { %v764_v54 = vsub.f32 %v21_v8, %v88_v50  ;;  %v766_v55 = vsub.f32 %v29_v9, %v96_v51  ;;  %v158_v56 = vsel %vm36_vm0, %v126_v52, 0.0  ;;  %v161_v59 = vsel %vm36_vm0, %v127_v53, 0.0 }
  0x9c   :  { %138 = vadd.xlane.f32.xlu0 %v137_v49  ;;  %159 = vadd.xlane.f32.xlu1 %v158_v56  ;;  %v48_v57 = vpop.xlane.xlu0 %47  ;;  %v72_v58 = vpop.xlane.xlu1 %71 }
  0x9d   :  { %v89_v60 = vmul.f32 0.125, %v48_v57  ;;  %v97_v61 = vmul.f32 0.125, %v72_v58  ;;  %v120_v62 = vmul.f32 %v764_v54, %v764_v54  ;;  %v128_v63 = vmul.f32 %v766_v55, %v766_v55 }
  0x9e   :  { %v246_v57 = vlaneseq }
  0x9f   :  { %v775_v0 = vsub.f32 %v679_v12, %v89_v60  ;;  %v778_v1 = vsub.f32 %v684_v13, %v97_v61  ;;  %v140_v2 = vsel %vm36_vm0, %v120_v62, 0.0  ;;  %v164_v5 = vsel %vm36_vm0, %v128_v63, 0.0 }
  0xa0   :  { %162 = vadd.xlane.f32.xlu1 %v161_v59  ;;  %141 = vadd.xlane.f32.xlu0 %v140_v2  ;;  %v51_v3 = vpop.xlane.xlu0 %50  ;;  %v75_v4 = vpop.xlane.xlu1 %74  ;;  %v247_v63 = vshrl.u32 %v246_v57, 7 }
  0xa1   :  { %v90_v6 = vmul.f32 0.125, %v51_v3  ;;  %v98_v7 = vmul.f32 0.125, %v75_v4  ;;  %v121_v8 = vmul.f32 %v775_v0, %v775_v0  ;;  %v129_v9 = vmul.f32 %v778_v1, %v778_v1 }
  0xa3   :  { %v787_v10 = vsub.f32 %v693_v16, %v90_v6  ;;  %v790_v11 = vsub.f32 %v698_v17, %v98_v7  ;;  %v143_v12 = vsel %vm36_vm0, %v121_v8, 0.0  ;;  %v167_v15 = vsel %vm36_vm0, %v129_v9, 0.0 }
  0xa4   :  { %165 = vadd.xlane.f32.xlu1 %v164_v5  ;;  %144 = vadd.xlane.f32.xlu0 %v143_v12  ;;  %v54_v13 = vpop.xlane.xlu0 %53  ;;  %v78_v14 = vpop.xlane.xlu1 %77  ;;  %v248_v8 = vsub.s32 0, %v247_v63 }
  0xa5   :  { %v91_v18 = vmul.f32 0.125, %v54_v13  ;;  %v99_v19 = vmul.f32 0.125, %v78_v14  ;;  %v122_v22 = vmul.f32 %v787_v10, %v787_v10  ;;  %v130_v16 = vmul.f32 %v790_v11, %v790_v11  ;;  %v35_v13 = vld [vmem:[%s1043_s1] sm:$0x3] }
  0xa7   :  { %v799_v23 = vsub.f32 %v707_v20, %v91_v18  ;;  %v802_v17 = vsub.f32 %v712_v21, %v99_v19  ;;  %v146_v26 = vsel %vm36_vm0, %v122_v22, 0.0  ;;  %v170_v31 = vsel %vm36_vm0, %v130_v16, 0.0 }
  0xa8   :  { %168 = vadd.xlane.f32.xlu1 %v167_v15  ;;  %147 = vadd.xlane.f32.xlu0 %v146_v26  ;;  %v57_v27 = vpop.xlane.xlu0 %56  ;;  %v81_v30 = vpop.xlane.xlu1 %80  ;;  %v268_v18 = vsub.s32 1, %v247_v63  ;;  %v842_v16 = vrot.slane %v35_v13, %v248_v8 }
  0xa9   :  { %v92_v32 = vmul.f32 0.125, %v57_v27  ;;  %v100_v33 = vmul.f32 0.125, %v81_v30  ;;  %v123_v34 = vmul.f32 %v799_v23, %v799_v23  ;;  %v131_v20 = vmul.f32 %v802_v17, %v802_v17 }
  0xab   :  { %v811_v35 = vsub.f32 %v721_v24, %v92_v32  ;;  %v814_v21 = vsub.f32 %v726_v25, %v100_v33  ;;  %v149_v38 = vsel %vm36_vm0, %v123_v34, 0.0  ;;  %v173_v41 = vsel %vm36_vm0, %v131_v20, 0.0 }
  0xac   :  { %171 = vadd.xlane.f32.xlu1 %v170_v31  ;;  %150 = vadd.xlane.f32.xlu0 %v149_v38  ;;  %v60_v39 = vpop.xlane.xlu0 %59  ;;  %v84_v40 = vpop.xlane.xlu1 %83  ;;  %v845_v34 = vrot.slane %v35_v13, %v268_v18 }
  0xad   :  { %v93_v42 = vmul.f32 0.125, %v60_v39  ;;  %v101_v43 = vmul.f32 0.125, %v84_v40  ;;  %v124_v46 = vmul.f32 %v811_v35, %v811_v35  ;;  %v132_v24 = vmul.f32 %v814_v21, %v814_v21 }
  0xaf   :  { %v823_v47 = vsub.f32 %v735_v28, %v93_v42  ;;  %v826_v25 = vsub.f32 %v740_v29, %v101_v43  ;;  %v152_v48 = vsel %vm36_vm0, %v124_v46, 0.0  ;;  %v176_v49 = vsel %vm36_vm0, %v132_v24, 0.0  ;;  %v302_v29 = vld [vmem:[%s1042_s2] sm:$0xff] }
  0xb0   :  { %174 = vadd.xlane.f32.xlu1 %v173_v41  ;;  %153 = vadd.xlane.f32.xlu0 %v152_v48 }
  0xb1   :  { %v125_v50 = vmul.f32 %v823_v47, %v823_v47  ;;  %v133_v51 = vmul.f32 %v826_v25, %v826_v25  ;;  %562 = vmatprep.subr.mxu0 %v302_v29  ;;  %588 = vmatprep.subr.mxu1 %v302_v29 }
  0xb2   :  { %563 = vmatpush3.msra.mxu0 %v302_v29  ;;  %589 = vmatpush3.msra.mxu1 %v302_v29 }
  0xb3   :  { %v155_v52 = vsel %vm36_vm0, %v125_v50, 0.0  ;;  %v179_v28 = vsel %vm36_vm0, %v133_v51, 0.0 }
  0xb4   :  { %177 = vadd.xlane.f32.xlu1 %v176_v49  ;;  %156 = vadd.xlane.f32.xlu0 %v155_v52 }
  0xb8   :  { %180 = vadd.xlane.f32.xlu1 %v179_v28 }
 0x125   :  { %v136_v53 = vpop.xlane.xlu0 %135 }
 0x126   :  { %v182_v56 = vmul.f32 0.125, %v136_v53 }
 0x128   :  { %v198_v58 = vadd.f32 1e-05, %v182_v56 }
 0x129   :  { %v160_v59 = vpop.xlane.xlu1 %159  ;;  %v139_v60 = vpop.xlane.xlu0 %138 }
 0x12a   :  { %590 = vrsqrt.f32 %v198_v58  ;;  %v190_v61 = vmul.f32 0.125, %v160_v59  ;;  %v183_v62 = vmul.f32 0.125, %v139_v60 }
 0x12c   :  { %v206_v2 = vadd.f32 1e-05, %v190_v61  ;;  %v199_v3 = vadd.f32 1e-05, %v183_v62 }
 0x12d   :  { %v163_v4 = vpop.xlane.xlu1 %162  ;;  %v142_v5 = vpop.xlane.xlu0 %141 }
 0x12e   :  { %592 = vrsqrt.f32 %v206_v2  ;;  %v191_v6 = vmul.f32 0.125, %v163_v4  ;;  %v184_v7 = vmul.f32 0.125, %v142_v5 }
 0x12f   :  { %594 = vrsqrt.f32 %v199_v3 }
 0x130   :  { %v207_v9 = vadd.f32 1e-05, %v191_v6  ;;  %v200_v12 = vadd.f32 1e-05, %v184_v7 }
 0x131   :  { %v166_v14 = vpop.xlane.xlu1 %165  ;;  %v145_v15 = vpop.xlane.xlu0 %144 }
 0x132   :  { %596 = vrsqrt.f32 %v207_v9  ;;  %v192_v19 = vmul.f32 0.125, %v166_v14  ;;  %v185_v22 = vmul.f32 0.125, %v145_v15 }
 0x133   :  { %598 = vrsqrt.f32 %v200_v12 }
 0x134   :  { %v591_v26 = vpop.eup %590  ;;  %v208_v27 = vadd.f32 1e-05, %v192_v19  ;;  %v201_v30 = vadd.f32 1e-05, %v185_v22 }
 0x135   :  { %v169_v31 = vpop.xlane.xlu1 %168  ;;  %v148_v32 = vpop.xlane.xlu0 %147  ;;  %v230_v33 = vmul.f32 %v591_v26, %v746_v36 }
 0x136   :  { %600 = vrsqrt.f32 %v208_v27  ;;  %v193_v20 = vmul.f32 0.125, %v169_v31  ;;  %v186_v38 = vmul.f32 0.125, %v148_v32 }
 0x137   :  { %602 = vrsqrt.f32 %v201_v30  ;;  %v250_v39 = vmul.f32 %v842_v16, %v230_v33 }
 0x138   :  { %v593_v40 = vpop.eup %592  ;;  %v209_v41 = vadd.f32 1e-05, %v193_v20  ;;  %v202_v42 = vadd.f32 1e-05, %v186_v38 }
 0x139   :  { %v595_v43 = vpop.eup %594  ;;  %v172_v46 = vpop.xlane.xlu1 %171  ;;  %v270_v48 = vadd.f32 %v845_v34, %v250_v39  ;;  %v238_v49 = vmul.f32 %v593_v40, %v754_v44 }
 0x13a   :  { %v151_v24 = vpop.xlane.xlu0 %150  ;;  %604 = vrsqrt.f32 %v209_v41  ;;  %v194_v36 = vmul.f32 0.125, %v172_v46  ;;  %v231_v51 = vmul.f32 %v595_v43, %v748_v37 }
 0x13b   :  { %v187_v50 = vmul.f32 0.125, %v151_v24  ;;  %606 = vrsqrt.f32 %v202_v42  ;;  %286 = vst.msk [vmem:[%s1044_s4] sm:$0xff] %vm36_vm0, %v270_v48  ;;  %564 = vmatprep.mubr.msk.f32.mxu0 %vm36_vm0, %v270_v48  ;;  %v258_v52 = vmul.f32 %v842_v16, %v238_v49 }
 0x13c   :  { %v597_v28 = vpop.eup %596  ;;  %v210_v29 = vadd.f32 1e-05, %v194_v36  ;;  %v251_v44 = vmul.f32 %v842_v16, %v231_v51 }
 0x13d   :  { %v203_v53 = vadd.f32 1e-05, %v187_v50  ;;  %v599_v56 = vpop.eup %598  ;;  %v175_v57 = vpop.xlane.xlu1 %174  ;;  %v278_v37 = vadd.f32 %v845_v34, %v258_v52  ;;  %v239_v59 = vmul.f32 %v597_v28, %v756_v45 }
 0x13e   :  { %v154_v58 = vpop.xlane.xlu0 %153  ;;  %608 = vrsqrt.f32 %v210_v29  ;;  %v195_v60 = vmul.f32 0.125, %v175_v57  ;;  %v271_v62 = vadd.f32 %v845_v34, %v251_v44  ;;  %v232_v63 = vmul.f32 %v599_v56, %v764_v54 }
 0x13f   :  { %v188_v61 = vmul.f32 0.125, %v154_v58  ;;  %610 = vrsqrt.f32 %v203_v53  ;;  %294 = vst.msk [vmem:[%s1044_s4 + $0x40] sm:$0xff] %vm36_vm0, %v278_v37  ;;  %576 = vmatprep.mubr.msk.f32.mxu1 %vm36_vm0, %v278_v37  ;;  %v259_v2 = vmul.f32 %v842_v16, %v239_v59 }
 0x140   :  { %v601_v3 = vpop.eup %600  ;;  %v211_v4 = vadd.f32 1e-05, %v195_v60  ;;  %287 = vst.msk [vmem:[%s1044_s4 + $0x8] sm:$0xff] %vm36_vm0, %v271_v62  ;;  %565 = vmatmul.mubr.msk.f32.vlgmr.msra.gmra.mrb[0].mxu0 %vm36_vm0, %v271_v62  ;;  %v252_v8 = vmul.f32 %v842_v16, %v232_v63 }
 0x141   :  { %v204_v45 = vadd.f32 1e-05, %v188_v61  ;;  %v603_v5 = vpop.eup %602  ;;  %v178_v6 = vpop.xlane.xlu1 %177  ;;  %v279_v9 = vadd.f32 %v845_v34, %v259_v2  ;;  %v240_v54 = vmul.f32 %v601_v3, %v766_v55 }
 0x142   :  { %v157_v7 = vpop.xlane.xlu0 %156  ;;  %612 = vrsqrt.f32 %v211_v4  ;;  %v196_v12 = vmul.f32 0.125, %v178_v6  ;;  %v233_v14 = vmul.f32 %v603_v5, %v775_v0  ;;  %v272_v15 = vadd.f32 %v845_v34, %v252_v8 }
 0x143   :  { %v189_v13 = vmul.f32 0.125, %v157_v7  ;;  %614 = vrsqrt.f32 %v204_v45  ;;  %295 = vst.msk [vmem:[%s1044_s4 + $0x48] sm:$0xff] %vm36_vm0, %v279_v9  ;;  %577 = vmatmul.mubr.msk.f32.vlgmr.msra.gmra.mrb[0].mxu1 %vm36_vm0, %v279_v9  ;;  %v260_v18 = vmul.f32 %v842_v16, %v240_v54 }
 0x144   :  { %v605_v19 = vpop.eup %604  ;;  %v212_v22 = vadd.f32 1e-05, %v196_v12  ;;  %v253_v26 = vmul.f32 %v842_v16, %v233_v14  ;;  %288 = vst.msk [vmem:[%s1044_s4 + $0x10] sm:$0xff] %vm36_vm0, %v272_v15  ;;  %567 = vmatprep.mubr.msk.f32.mxu0 %vm36_vm0, %v272_v15 }
 0x145   :  { %v205_v55 = vadd.f32 1e-05, %v189_v13  ;;  %v607_v27 = vpop.eup %606  ;;  %v181_v0 = vpop.xlane.xlu1 %180  ;;  %v280_v30 = vadd.f32 %v845_v34, %v260_v18  ;;  %v241_v31 = vmul.f32 %v605_v19, %v778_v1 }
 0x146   :  { %616 = vrsqrt.f32 %v212_v22  ;;  %v197_v32 = vmul.f32 0.125, %v181_v0  ;;  %v273_v33 = vadd.f32 %v845_v34, %v253_v26  ;;  %v234_v20 = vmul.f32 %v607_v27, %v787_v10 }
 0x147   :  { %618 = vrsqrt.f32 %v205_v55  ;;  %296 = vst.msk [vmem:[%s1044_s4 + $0x50] sm:$0xff] %vm36_vm0, %v280_v30  ;;  %579 = vmatprep.mubr.msk.f32.mxu1 %vm36_vm0, %v280_v30  ;;  %v261_v38 = vmul.f32 %v842_v16, %v241_v31 }
 0x148   :  { %v609_v39 = vpop.eup %608  ;;  %v213_v40 = vadd.f32 1e-05, %v197_v32  ;;  %289 = vst.msk [vmem:[%s1044_s4 + $0x18] sm:$0xff] %vm36_vm0, %v273_v33  ;;  %568 = vmatmul.mubr.msk.f32.gmra.mrb[2].mxu0 %vm36_vm0, %v273_v33  ;;  %v254_v1 = vmul.f32 %v842_v16, %v234_v20 }
 0x149   :  { %v611_v10 = vpop.eup %610  ;;  %v281_v41 = vadd.f32 %v845_v34, %v261_v38  ;;  %v242_v42 = vmul.f32 %v609_v39, %v790_v11 }
 0x14a   :  { %620 = vrsqrt.f32 %v213_v40  ;;  %v274_v43 = vadd.f32 %v845_v34, %v254_v1  ;;  %v235_v46 = vmul.f32 %v611_v10, %v799_v23 }
 0x14b   :  { %297 = vst.msk [vmem:[%s1044_s4 + $0x58] sm:$0xff] %vm36_vm0, %v281_v41  ;;  %580 = vmatmul.mubr.msk.f32.gmra.mrb[2].mxu1 %vm36_vm0, %v281_v41  ;;  %v262_v24 = vmul.f32 %v842_v16, %v242_v42 }
 0x14c   :  { %v613_v48 = vpop.eup %612  ;;  %290 = vst.msk [vmem:[%s1044_s4 + $0x20] sm:$0xff] %vm36_vm0, %v274_v43  ;;  %570 = vmatprep.mubr.msk.f32.mxu0 %vm36_vm0, %v274_v43  ;;  %v255_v11 = vmul.f32 %v842_v16, %v235_v46 }
 0x14d   :  { %v615_v23 = vpop.eup %614  ;;  %v282_v49 = vadd.f32 %v845_v34, %v262_v24  ;;  %v243_v36 = vmul.f32 %v613_v48, %v802_v17 }
 0x14e   :  { %v275_v50 = vadd.f32 %v845_v34, %v255_v11  ;;  %v236_v51 = vmul.f32 %v615_v23, %v811_v35 }
 0x14f   :  { %298 = vst.msk [vmem:[%s1044_s4 + $0x60] sm:$0xff] %vm36_vm0, %v282_v49  ;;  %582 = vmatprep.mubr.msk.f32.mxu1 %vm36_vm0, %v282_v49  ;;  %v263_v52 = vmul.f32 %v842_v16, %v243_v36 }
 0x150   :  { %v617_v28 = vpop.eup %616  ;;  %291 = vst.msk [vmem:[%s1044_s4 + $0x28] sm:$0xff] %vm36_vm0, %v275_v50  ;;  %571 = vmatmul.mubr.msk.f32.gmra.mrb[4].mxu0 %vm36_vm0, %v275_v50  ;;  %v256_v17 = vmul.f32 %v842_v16, %v236_v51 }
 0x151   :  { %v619_v35 = vpop.eup %618  ;;  %v283_v29 = vadd.f32 %v845_v34, %v263_v52  ;;  %v244_v53 = vmul.f32 %v617_v28, %v814_v21 }
 0x152   :  { %v276_v44 = vadd.f32 %v845_v34, %v256_v17  ;;  %v237_v56 = vmul.f32 %v619_v35, %v823_v47 }
 0x153   :  { %299 = vst.msk [vmem:[%s1044_s4 + $0x68] sm:$0xff] %vm36_vm0, %v283_v29  ;;  %583 = vmatmul.mubr.msk.f32.gmra.mrb[4].mxu1 %vm36_vm0, %v283_v29  ;;  %v264_v57 = vmul.f32 %v842_v16, %v244_v53 }
 0x154   :  { %v621_v58 = vpop.eup %620  ;;  %292 = vst.msk [vmem:[%s1044_s4 + $0x30] sm:$0xff] %vm36_vm0, %v276_v44  ;;  %573 = vmatprep.mubr.msk.f32.mxu0 %vm36_vm0, %v276_v44  ;;  %v257_v21 = vmul.f32 %v842_v16, %v237_v56 }
 0x155   :  { %v284_v47 = vadd.f32 %v845_v34, %v264_v57  ;;  %v245_v37 = vmul.f32 %v621_v58, %v826_v25 }
 0x156   :  { %v277_v59 = vadd.f32 %v845_v34, %v257_v21 }
 0x157   :  { %300 = vst.msk [vmem:[%s1044_s4 + $0x70] sm:$0xff] %vm36_vm0, %v284_v47  ;;  %585 = vmatprep.mubr.msk.f32.mxu1 %vm36_vm0, %v284_v47  ;;  %v265_v60 = vmul.f32 %v842_v16, %v245_v37  ;;  %v528_v16 = vld [vmem:[%s1045_s3] ss:$0 sm:$0xff] }
 0x158   :  { %293 = vst.msk [vmem:[%s1044_s4 + $0x38] sm:$0xff] %vm36_vm0, %v277_v59  ;;  %574 = vmatmul.mubr.msk.f32.gmra.mrb[6].mxu0 %vm36_vm0, %v277_v59 }
 0x159   :  { %v285_v25 = vadd.f32 %v845_v34, %v265_v60 }
 0x15b   :  { %301 = vst.msk [vmem:[%s1044_s4 + $0x78] sm:$0xff] %vm36_vm0, %v285_v25  ;;  %586 = vmatmul.mubr.msk.f32.gmra.mrb[6].mxu1 %vm36_vm0, %v285_v25 }
 0x213   :  { %v566_v61 = vpop.f32.mrb[0].mxu0 }
 0x214   :  { %v430_v62 = vadd.f32 %v566_v61, %v528_v16  ;;  %v424_v63 = vpop.f32.mrb[1].mxu0 }
 0x215   :  { %v425_v2 = vadd.f32 %v528_v16, %v424_v63 }
 0x216   :  { %505 = vst.msk [vmem:[%s1046_s5 + $0x8] sm:$0xff] %vm503_vm1, %v430_v62  ;;  %v578_v34 = vpop.f32.mrb[0].mxu1 }
 0x217   :  { %504 = vst.msk [vmem:[%s1046_s5] sm:$0xff] %vm503_vm1, %v425_v2  ;;  %v470_v3 = vadd.f32 %v578_v34, %v528_v16  ;;  %v464_v4 = vpop.f32.mrb[1].mxu1 }
 0x218   :  { %v465_v45 = vadd.f32 %v528_v16, %v464_v4 }
 0x219   :  { %513 = vst.msk [vmem:[%s1046_s5 + $0x48] sm:$0xff] %vm503_vm1, %v470_v3 }
 0x21a   :  { %512 = vst.msk [vmem:[%s1046_s5 + $0x40] sm:$0xff] %vm503_vm1, %v465_v45 }
 0x21b   :  { %v569_v5 = vpop.f32.mrb[2].mxu0 }
 0x21c   :  { %v440_v6 = vadd.f32 %v569_v5, %v528_v16  ;;  %v434_v7 = vpop.f32.mrb[3].mxu0 }
 0x21d   :  { %v435_v8 = vadd.f32 %v528_v16, %v434_v7 }
 0x21e   :  { %507 = vst.msk [vmem:[%s1046_s5 + $0x18] sm:$0xff] %vm503_vm1, %v440_v6  ;;  %v581_v9 = vpop.f32.mrb[2].mxu1 }
 0x21f   :  { %506 = vst.msk [vmem:[%s1046_s5 + $0x10] sm:$0xff] %vm503_vm1, %v435_v8  ;;  %v480_v54 = vadd.f32 %v581_v9, %v528_v16  ;;  %v474_v12 = vpop.f32.mrb[3].mxu1 }
 0x220   :  { %v475_v13 = vadd.f32 %v528_v16, %v474_v12 }
 0x221   :  { %515 = vst.msk [vmem:[%s1046_s5 + $0x58] sm:$0xff] %vm503_vm1, %v480_v54 }
 0x222   :  { %514 = vst.msk [vmem:[%s1046_s5 + $0x50] sm:$0xff] %vm503_vm1, %v475_v13 }
 0x223   :  { %v572_v14 = vpop.f32.mrb[4].mxu0 }
 0x224   :  { %v450_v15 = vadd.f32 %v572_v14, %v528_v16  ;;  %v444_v18 = vpop.f32.mrb[5].mxu0 }
 0x225   :  { %v445_v19 = vadd.f32 %v528_v16, %v444_v18 }
 0x226   :  { %509 = vst.msk [vmem:[%s1046_s5 + $0x28] sm:$0xff] %vm503_vm1, %v450_v15  ;;  %v584_v22 = vpop.f32.mrb[4].mxu1 }
 0x227   :  { %508 = vst.msk [vmem:[%s1046_s5 + $0x20] sm:$0xff] %vm503_vm1, %v445_v19  ;;  %v490_v55 = vadd.f32 %v584_v22, %v528_v16  ;;  %v484_v26 = vpop.f32.mrb[5].mxu1 }
 0x228   :  { %v485_v27 = vadd.f32 %v528_v16, %v484_v26 }
 0x229   :  { %517 = vst.msk [vmem:[%s1046_s5 + $0x68] sm:$0xff] %vm503_vm1, %v490_v55 }
 0x22a   :  { %516 = vst.msk [vmem:[%s1046_s5 + $0x60] sm:$0xff] %vm503_vm1, %v485_v27 }
 0x22b   :  { %v575_v0 = vpop.f32.mrb[6].mxu0 }
 0x22c   :  { %v460_v30 = vadd.f32 %v575_v0, %v528_v16  ;;  %v454_v31 = vpop.f32.mrb[7].mxu0 }
 0x22d   :  { %v455_v32 = vadd.f32 %v528_v16, %v454_v31 }
 0x22e   :  { %511 = vst.msk [vmem:[%s1046_s5 + $0x38] sm:$0xff] %vm503_vm1, %v460_v30  ;;  %v587_v33 = vpop.f32.mrb[6].mxu1 }
 0x22f   :  { %510 = vst.msk [vmem:[%s1046_s5 + $0x30] sm:$0xff] %vm503_vm1, %v455_v32  ;;  %v500_v20 = vadd.f32 %v587_v33, %v528_v16  ;;  %v494_v38 = vpop.f32.mrb[7].mxu1 }
 0x230   :  { %v495_v39 = vadd.f32 %v528_v16, %v494_v38 }
 0x231   :  { %519 = vst.msk [vmem:[%s1046_s5 + $0x78] sm:$0xff] %vm503_vm1, %v500_v20 }
 0x232   :  { %518 = vst.msk [vmem:[%s1046_s5 + $0x70] sm:$0xff] %vm503_vm1, %v495_v39 }

// kernel: structure_module_forward.13
= control target key start
LH: loop header
LB: loop body
LE: loop exit
PB: predicated region body
PF: predicated region fallthrough
CT: control target
= control target key end

     0   :  { %s1280_s27 = smov 0   ;;  %s1282_s28 = smov 0   ;;  %s1386_s0 = inlined_call_operand.vmem [shape: f32[2,12,8,16], index: 0, kind: input, shape index: {}]   ;;  %s1387_s1 = inlined_call_operand.vmem [shape: f32[2,12,8,16], index: 1, kind: input, shape index: {}]   ;;  %s1388_s2 = inlined_call_operand.vmem [shape: f32[2,12,8,12], index: 2, kind: input, shape index: {}]   ;;  %s1389_s3 = inlined_call_operand.vmem [shape: f32[2,12,8,12], index: 3, kind: input, shape index: {}]   ;;  %s1390_s4 = inlined_call_operand.vmem [shape: f32[2,12,8,16], index: 4, kind: input, shape index: {}]   ;;  %s1391_s5 = inlined_call_operand.vmem [shape: f32[2,12,8,24], index: 5, kind: input, shape index: {}]   ;;  %s1392_s6 = inlined_call_operand.vmem [shape: f32[2,12,8,8], index: 6, kind: input, shape index: {}]   ;;  %s1393_s7 = inlined_call_operand.vmem [shape: f32[2,8,8,8], index: 7, kind: input, shape index: {}]   ;;  %s1394_s8 = inlined_call_operand.vmem [shape: f32[2,12,8,48], index: 8, kind: output, shape index: {}]  }
   0x1   :  { %s1284_s29 = smov 0   ;;  %s1286_s30 = smov 0  }
   0x2   :  { %s1288_s9 = smov 0  }
   0x3 LB: > { %s27_s10 = sadd.s32 1, %s1221_s29  ;;  %s30_s11 = sadd.s32 1, %s1225_s30  ;;  %s1229_s9 = sphi %s1288_s9, %s18_s9   ;;  %s1225_s30 = sphi %s1286_s30, %s1398_s30   ;;  %s1221_s29 = sphi %s1284_s29, %s1397_s29   ;;  %s1217_s28 = sphi %s1282_s28, %s1396_s28   ;;  %s1213_s27 = sphi %s1280_s27, %s1395_s27  }
   0x4   : > { %p28_p0 = scmp.ge.s32.totalorder %s27_s10, 12  ;;  %p1111_p1 = scmp.ge.s32.totalorder %s1229_s9, 1 }
   0x5   : > { %p381_p2 = scmp.lt.s32.totalorder %s1229_s9, 25 }
   0x6   : > { %s1400_s10 = smov (%p28_p0, %s27_s10), 0  ;;  %s1402_s11 = smov (!%p28_p0, %s30_s11), %s1225_s30 }
   0x7   : > { %p382_p3 = pnand %p1111_p1, %p381_p2  ;;  %p32_p4 = scmp.ge.s32.totalorder %s1402_s11, 2 }
   0x8   : > { %p474_p5 = scmp.lt.s32.totalorder (!%p382_p3), %s1217_s28, 1  ;;  %p476_p6 = scmp.lt.s32.totalorder (!%p382_p3), %s1213_s27, 11  ;;  %vm548_vm0 = vcmask (!%p382_p3), 97280   ;;  %v1232_v5 = vmov (!%p382_p3), 0.0   ;;  %vm1233_vm1 = vmmov (!%p382_p3), 0   ;;  %vm560_vm2 = vcmask (!%p382_p3), 130048  }
   0x9   : > { %s1404_s11 = smov (%p32_p4, %s1402_s11), 0  ;;  %385 = sbr.rel (%p382_p3) target bundleno = 1036 (0x40c), region = 52 }
   0xa   : > { %s1231_s21 = smov (!%p382_p3), 16   ;;  %1132 = vmatprep.subr.mxu0 (!%p382_p3), %v1232_v5  ;;  %1137 = vmatprep.subr.mxu1 (!%p382_p3), %v1232_v5  ;;  %vm562_vm3 = vcmask (!%p382_p3), 228352   ;;  %vm573_vm4 = vcmask (!%p382_p3), 236544   ;;  %vm651_vm5 = vcmask (!%p382_p3), 64512   ;;  %v751_v33 = vlaneseq (!%p382_p3) }
   0xb   : > { %1134 = vmatprep.mubr.msk.f32.mxu0 (!%p382_p3), %vm1233_vm1, %v1232_v5  ;;  %1139 = vmatprep.mubr.msk.f32.mxu1 (!%p382_p3), %vm1233_vm1, %v1232_v5  ;;  %vm879_vm6 = vcmask (!%p382_p3), 1041409   ;;  %vm881_vm7 = vcmask (!%p382_p3), 1042434   ;;  %vm883_vm8 = vcmask (!%p382_p3), 1043459   ;;  %vm885_vm9 = vcmask (!%p382_p3), 1044484  }
   0xc   : > { %v752_v36 = vshrl.u32 (!%p382_p3), %v751_v33, 7  ;;  %vm887_vm10 = vcmask (!%p382_p3), 1045509   ;;  %vm889_vm11 = vcmask (!%p382_p3), 1046534   ;;  %vm891_vm12 = vcmask (!%p382_p3), 1047559  }
   0xd   : > { %vm899_vm13 = vcmask (!%p382_p3), 392192  }
   0xe   : > { %v760_v37 = vsub.s32 (!%p382_p3), 1, %v752_v36  ;;  %v753_v38 = vsub.s32 (!%p382_p3), 0, %v752_v36  ;;  %v767_v43 = vsub.s32 (!%p382_p3), 2, %v752_v36  ;;  %v795_v44 = vsub.s32 (!%p382_p3), 6, %v752_v36 }
   0xf   : > { %v774_v47 = vsub.s32 (!%p382_p3), 3, %v752_v36  ;;  %v781_v49 = vsub.s32 (!%p382_p3), 4, %v752_v36  ;;  %v788_v51 = vsub.s32 (!%p382_p3), 5, %v752_v36  ;;  %v802_v53 = vsub.s32 (!%p382_p3), 7, %v752_v36 }
  0x10   : > { %s1406_s28 = smov (!%p474_p5, %s1217_s28), 1  ;;  %s1408_s27 = smov (!%p476_p6, %s1213_s27), 11 }
  0x11   : > { %s1142_s12 = smul.u32 12, %s1406_s28  ;;  %s1127_s23 = sshll.u32 %s1406_s28, 6 }
  0x12   : > { %s534_s26 = scalar_lea.vmem %s1393_s7, %s1127_s23 }
  0x13   : > { %s479_s13 = sadd.s32 %s1142_s12, %s1408_s27  ;;  %v743_v61 = vld [vmem:[%s534_s26] sm:$0xff]  ;;  %v744_v63 = vld [vmem:[%s534_s26 + $0x8] sm:$0xff] }
  0x14   : > { %s1313_s14 = sshll.u32 %s479_s13, 3  ;;  %v747_v5 = vld [vmem:[%s534_s26 + $0x20] sm:$0xff] }
  0x15   : > { %s505_s17 = scalar_lea.vmem %s1389_s3, %s1313_s14  ;;  %s497_s20 = scalar_lea.vmem %s1388_s2, %s1313_s14 }
  0x16   : > { %v546_v0 = vld [vmem:[%s505_s17] sm:$0xff]  ;;  %s481_s24 = scalar_lea.vmem %s1386_s0, %s1313_s14  ;;  %s489_s27 = scalar_lea.vmem %s1387_s1, %s1313_s14 }
  0x17   : > { %v545_v1 = vld [vmem:[%s497_s20] sm:$0xff]  ;;  %v552_v2 = vmul.f32 %v546_v0, %v546_v0  ;;  %v564_v4 = vmul.f32 2.0, %v546_v0  ;;  %s529_s15 = scalar_lea.vmem %s1392_s6, %s1313_s14  ;;  %s521_s18 = scalar_lea.vmem %s1391_s5, %s1313_s14  ;;  %v745_v0 = vld [vmem:[%s534_s26 + $0x10] sm:$0xff] }
  0x18   : > { %557 = vrot.lane.b32.xlu1 %v545_v1, %s1231_s21  ;;  %v547_v6 = vmul.f32 %v545_v1, %v545_v1  ;;  %v543_v10 = vld [vmem:[%s481_s24] sm:$0xff]  ;;  %s513_s22 = scalar_lea.vmem %s1390_s4, %s1313_s14  ;;  %v746_v1 = vld [vmem:[%s534_s26 + $0x18] sm:$0xff]  ;;  %s542_s12 = scalar_lea.vmem %s1394_s8, %s1313_s14 }
  0x19   : > { %v553_v3 = vsel %vm548_vm0, %v552_v2, 0.0  ;;  %v544_v11 = vld [vmem:[%s489_s27] sm:$0xff] }
  0x1a   : > { %554 = vadd.xlane.f32.xlu0 %v553_v3  ;;  %v549_v7 = vsel %vm548_vm0, %v547_v6, 0.0  ;;  %v572_v18 = vld [vmem:[%s529_s15] sm:$0xff] }
  0x1b   : > { %v664_v30 = vld [vmem:[%s521_s18] sm:$0xff] }
  0x1c   : > { %v663_v32 = vld [vmem:[%s513_s22] sm:$0xff] }
  0x30   : > { %567 = vrot.lane.b32.xlu0 %v564_v4, %s1231_s21 }
  0x3c   : > { %550 = vadd.xlane.f32.xlu1 %v549_v7  ;;  %v748_v7 = vld [vmem:[%s534_s26 + $0x28] sm:$0xff] }
  0x8a   : > { %v558_v9 = vpop.permute.xlu1 %557 }
  0x8b   : > { %v561_v14 = vsel %vm560_vm2, %v543_v10, %v558_v9 }
  0x8c   : > { %v563_v17 = vsel %vm562_vm3, %v561_v14, 1.0  ;;  %v750_v14 = vld [vmem:[%s534_s26 + $0x38] sm:$0xff] }
  0xa7   : > { %v555_v8 = vpop.xlane.xlu0 %554 }
  0xa8   : > { %v565_v12 = vsub.f32 0.0, %v555_v8 }
  0xab   : > { %v568_v13 = vpop.permute.xlu0 %567 }
  0xac   : > { %v570_v15 = vsel %vm560_vm2, %v544_v11, %v568_v13 }
  0xad   : > { %v571_v16 = vsel %vm562_vm3, %v570_v15, %v565_v12 }
  0xae   : > { %1133 = vmatpush3.xpose.msk.msra.mxu0 %vm573_vm4, %v571_v16  ;;  %v749_v16 = vld [vmem:[%s534_s26 + $0x30] sm:$0xff] }
  0xb1   : > { %1135 = vmatmul.mubr.msk.f32.vlgmr.msra.gmra.mrb[0].mxu0 %vm573_vm4, %v563_v17 }
  0xc9   : > { %v551_v20 = vpop.xlane.xlu1 %550 }
 0x184   : > { %v646_v19 = vpop.f32.mrb[0].mxu0 }
 0x185   : > { %v647_v21 = vadd.f32 %v646_v19, %v572_v18  ;;  %v1136_v22 = vpop.f32.mrb[1].mxu0 }
 0x187   : > { %v650_v23 = vsub.f32 %v647_v21, %v551_v20 }
 0x189   : > { %v652_v24 = vsel %vm651_vm5, %v650_v23, -inf }
 0x18a   : > { %653 = vmax.xlane.f32.xlu0 %v652_v24 }
 0x217   : > { %v654_v25 = vpop.xlane.xlu0 %653 }
 0x218   : > { %v655_v26 = vsub.f32 %v650_v23, %v654_v25 }
 0x21a   : > { %v656_v27 = vmul.f32 1.442695, %v655_v26 }
 0x21c   : > { %1187 = vpow2.f32 %v656_v27 }
 0x226   : > { %v1188_v28 = vpop.eup %1187 }
 0x227   : > { %v658_v29 = vsel %vm651_vm5, %v1188_v28, 0.0 }
 0x228   : > { %659 = vadd.xlane.f32.xlu1 %v658_v29 }
 0x239   : > { %666 = vrot.lane.b32.xlu1 %v664_v30, %s1231_s21  ;;  %s1234_s21 = smov 8  }
 0x2b5   : > { %v660_v31 = vpop.xlane.xlu1 %659 }
 0x2b6   : > { %1189 = vrcp.f32 %v660_v31 }
 0x2b9   : > { %v667_v34 = vpop.permute.xlu1 %666 }
 0x2ba   : > { %v669_v35 = vsel %vm560_vm2, %v663_v32, %v667_v34 }
 0x2bb   : > { %1138 = vmatpush3.msra.mxu1 %v669_v35 }
 0x2c0   : > { %v1190_v39 = vpop.eup %1189 }
 0x2c1   : > { %v662_v40 = vmul.f32 %v1190_v39, %v1188_v28 }
 0x2c3   : > { %1140 = vmatmul.mubr.msk.f32.vlgmr.msra.gmra.mrb[0].mxu1 %vm651_vm5, %v662_v40  ;;  %v761_v41 = vrot.slane %v662_v40, %v760_v37  ;;  %v754_v42 = vrot.slane %v662_v40, %v753_v38  ;;  %v768_v45 = vrot.slane %v662_v40, %v767_v43  ;;  %v796_v46 = vrot.slane %v662_v40, %v795_v44 }
 0x2c4   : > { %v775_v48 = vrot.slane %v662_v40, %v774_v47  ;;  %v782_v50 = vrot.slane %v662_v40, %v781_v49  ;;  %v789_v52 = vrot.slane %v662_v40, %v788_v51  ;;  %v803_v54 = vrot.slane %v662_v40, %v802_v53 }
 0x2c5   : > { %763 = vbcast.lane.b32.xlu1 %v761_v41, 256  ;;  %756 = vbcast.lane.b32.xlu0 %v754_v42, 256 }
 0x2c9   : > { %770 = vbcast.lane.b32.xlu1 %v768_v45, 256  ;;  %798 = vbcast.lane.b32.xlu0 %v796_v46, 256 }
 0x2cd   : > { %777 = vbcast.lane.b32.xlu1 %v775_v48, 256 }
 0x2d1   : > { %784 = vbcast.lane.b32.xlu1 %v782_v50, 256 }
 0x2d5   : > { %791 = vbcast.lane.b32.xlu1 %v789_v52, 256 }
 0x2d9   : > { %805 = vbcast.lane.b32.xlu1 %v803_v54, 256 }
 0x337   : > { %v764_v57 = vpop.permute.xlu1 %763  ;;  %v757_v62 = vpop.permute.xlu0 %756 }
 0x338   : > { %v807_v3 = vmul.f32 %v757_v62, %v743_v61  ;;  %v808_v4 = vmul.f32 %v764_v57, %v744_v63 }
 0x33a   : > { %v815_v10 = vsel %vm651_vm5, %v807_v3, 0.0  ;;  %v822_v11 = vsel %vm651_vm5, %v808_v4, 0.0 }
 0x33b   : > { %v771_v58 = vpop.permute.xlu1 %770  ;;  %v799_v17 = vpop.permute.xlu0 %798  ;;  %v816_v19 = vrot.slane %v815_v10, 4  ;;  %v823_v20 = vrot.slane %v822_v11, 4 }
 0x33c   : > { %v809_v6 = vmul.f32 %v771_v58, %v745_v0  ;;  %v813_v25 = vmul.f32 %v799_v17, %v749_v16 }
 0x33d   : > { %v817_v28 = vadd.f32 %v816_v19, %v815_v10  ;;  %v824_v29 = vadd.f32 %v823_v20, %v822_v11 }
 0x33e   : > { %v829_v13 = vsel %vm651_vm5, %v809_v6, 0.0  ;;  %v857_v33 = vsel %vm651_vm5, %v813_v25, 0.0 }
 0x33f   : > { %v778_v59 = vpop.permute.xlu1 %777  ;;  %v830_v22 = vrot.slane %v829_v13, 4  ;;  %v818_v36 = vrot.slane %v817_v28, 2  ;;  %v825_v37 = vrot.slane %v824_v29, 2  ;;  %v858_v40 = vrot.slane %v857_v33, 4 }
 0x340   : > { %v810_v8 = vmul.f32 %v778_v59, %v746_v1 }
 0x341   : > { %v831_v31 = vadd.f32 %v830_v22, %v829_v13  ;;  %v819_v44 = vadd.f32 %v818_v36, %v817_v28  ;;  %v826_v45 = vadd.f32 %v825_v37, %v824_v29  ;;  %v859_v48 = vadd.f32 %v858_v40, %v857_v33 }
 0x342   : > { %v836_v18 = vsel %vm651_vm5, %v810_v8, 0.0 }
 0x343   : > { %v785_v60 = vpop.permute.xlu1 %784  ;;  %v837_v26 = vrot.slane %v836_v18, 4  ;;  %v832_v41 = vrot.slane %v831_v31, 2  ;;  %v820_v52 = vrot.slane %v819_v44, 1  ;;  %v827_v53 = vrot.slane %v826_v45, 1 }
 0x344   : > { %v811_v9 = vmul.f32 %v785_v60, %v747_v5 }
 0x345   : > { %v838_v34 = vadd.f32 %v837_v26, %v836_v18  ;;  %v833_v49 = vadd.f32 %v832_v41, %v831_v31  ;;  %v821_v60 = vadd.f32 %v820_v52, %v819_v44  ;;  %v828_v61 = vadd.f32 %v827_v53, %v826_v45 }
 0x346   : > { %v843_v21 = vsel %vm651_vm5, %v811_v9, 0.0 }
 0x347   : > { %v792_v2 = vpop.permute.xlu1 %791  ;;  %v844_v27 = vrot.slane %v843_v21, 4  ;;  %v839_v42 = vrot.slane %v838_v34, 2  ;;  %v834_v57 = vrot.slane %v833_v49, 1  ;;  %v880_v4 = vsel %vm879_vm6, %v828_v61, %v821_v60 }
 0x348   : > { %v812_v12 = vmul.f32 %v792_v2, %v748_v7 }
 0x349   : > { %v845_v35 = vadd.f32 %v844_v27, %v843_v21  ;;  %v840_v50 = vadd.f32 %v839_v42, %v838_v34  ;;  %v835_v1 = vadd.f32 %v834_v57, %v833_v49 }
 0x34a   : > { %v850_v23 = vsel %vm651_vm5, %v812_v12, 0.0 }
 0x34b   : > { %v806_v15 = vpop.permute.xlu1 %805  ;;  %v851_v30 = vrot.slane %v850_v23, 4  ;;  %v846_v43 = vrot.slane %v845_v35, 2  ;;  %v841_v58 = vrot.slane %v840_v50, 1  ;;  %v882_v8 = vsel %vm881_vm7, %v835_v1, %v880_v4 }
 0x34c   : > { %v814_v24 = vmul.f32 %v806_v15, %v750_v14 }
 0x34d   : > { %v852_v38 = vadd.f32 %v851_v30, %v850_v23  ;;  %v847_v51 = vadd.f32 %v846_v43, %v845_v35  ;;  %v842_v2 = vadd.f32 %v841_v58, %v840_v50 }
 0x34e   : > { %v864_v32 = vsel %vm651_vm5, %v814_v24, 0.0 }
 0x34f   : > { %v865_v39 = vrot.slane %v864_v32, 4  ;;  %v853_v46 = vrot.slane %v852_v38, 2  ;;  %v848_v59 = vrot.slane %v847_v51, 1  ;;  %v884_v9 = vsel %vm883_vm8, %v842_v2, %v882_v8 }
 0x351   : > { %v866_v47 = vadd.f32 %v865_v39, %v864_v32  ;;  %v854_v54 = vadd.f32 %v853_v46, %v852_v38  ;;  %v849_v3 = vadd.f32 %v848_v59, %v847_v51 }
 0x353   : > { %v855_v62 = vrot.slane %v854_v54, 1  ;;  %v886_v10 = vsel %vm885_vm9, %v849_v3, %v884_v9 }
 0x355   : > { %v856_v5 = vadd.f32 %v855_v62, %v854_v54 }
 0x357   : > { %v888_v12 = vsel %vm887_vm10, %v856_v5, %v886_v10 }
 0x396   : > { %v739_v55 = vpop.f32.mrb[0].mxu1 }
 0x397   : > { %895 = vrot.lane.b32.xlu0 %v739_v55, %s1234_s21  ;;  %v1141_v56 = vpop.f32.mrb[1].mxu1  ;;  %v867_v55 = vrot.slane %v866_v47, 2 }
 0x398   : > { %v860_v56 = vrot.slane %v859_v48, 2 }
 0x399   : > { %v868_v63 = vadd.f32 %v867_v55, %v866_v47 }
 0x39a   : > { %v861_v0 = vadd.f32 %v860_v56, %v859_v48 }
 0x39b   : > { %v869_v6 = vrot.slane %v868_v63, 1 }
 0x39c   : > { %v862_v7 = vrot.slane %v861_v0, 1 }
 0x39d   : > { %v870_v11 = vadd.f32 %v869_v6, %v868_v63 }
 0x39e   : > { %v863_v13 = vadd.f32 %v862_v7, %v861_v0 }
 0x3a0   : > { %v890_v14 = vsel %vm889_vm11, %v863_v13, %v888_v12 }
 0x3a1   : > { %v892_v16 = vsel %vm891_vm12, %v870_v11, %v890_v14 }
 0x409   : > { %v896_v15 = vpop.permute.xlu0 %895 }
 0x40a   : > { %v898_v17 = vsel %vm651_vm5, %v892_v16, %v896_v15 }
 0x40b   : > { %900 = vst.msk [vmem:[%s542_s12] sm:$0xff] %vm899_vm13, %v898_v17 }
 0x40c PF: > { %s18_s9 = sadd.s32 1, %s1229_s9   ;;  %s1395_s27 = smov %s1221_s29 }
 0x40d   : > { %p15_p7 = scmp.ge.s32.totalorder %s18_s9, 26   ;;  %s1396_s28 = smov %s1225_s30 }
 0x40e   : > { %s1397_s29 = smov %s1400_s10  ;;  %s1398_s30 = smov %s1404_s11 }
 0x40f   :  { %17 = sbr.rel (!%p15_p7) target bundleno = 3 (0x3), region = 103 }

// kernel: structure_module_forward.14
= control target key start
LH: loop header
LB: loop body
LE: loop exit
PB: predicated region body
PF: predicated region fallthrough
CT: control target
= control target key end

     0   :  { %vm102_vm0 = vcmask 531456   ;;  %vm109_vm1 = vcmask 1040384   ;;  %vm349_vm2 = vcmask 261120   ;;  %s837_s1 = inlined_call_operand.vmem [shape: f32[577,32], index: 1, kind: input, shape index: {}]   ;;  %s838_s0 = inlined_call_operand.vmem [shape: f32[16,577], index: 0, kind: input, shape index: {}]   ;;  %s839_s3 = inlined_call_operand.vmem [shape: f32[16,32], index: 3, kind: input, shape index: {}]   ;;  %s840_s2 = inlined_call_operand.vmem [shape: f32[1,32], index: 2, kind: input, shape index: {}]   ;;  %s841_s4 = inlined_call_operand.vmem [shape: f32[16,32], index: 4, kind: output, shape index: {}]  }
   0x1   :  { %v45_v0 = vld [vmem:[%s837_s1 + $0x80] sm:$0xff]  ;;  %v46_v1 = vld [vmem:[%s837_s1 + $0x88] sm:$0xff]  ;;  %v47_v11 = vld [vmem:[%s837_s1 + $0x90] sm:$0xff] }
   0x2   :  { %v77_v2 = vld [vmem:[%s837_s1 + $0x180] sm:$0xff]  ;;  %v468_v3 = vpack.c.bf16 %v46_v1, %v45_v0  ;;  %v78_v4 = vld [vmem:[%s837_s1 + $0x188] sm:$0xff]  ;;  %v48_v13 = vld [vmem:[%s837_s1 + $0x98] sm:$0xff] }
   0x3   :  { %v29_v5 = vld [vmem:[%s837_s1] sm:$0xff]  ;;  %v30_v6 = vld [vmem:[%s837_s1 + $0x8] sm:$0xff]  ;;  %v500_v7 = vpack.c.bf16 %v78_v4, %v77_v2  ;;  %v79_v14 = vld [vmem:[%s837_s1 + $0x190] sm:$0xff]  ;;  %v472_v16 = vpack.c.bf16 %v48_v13, %v47_v11 }
   0x4   :  { %v470_v8 = vpack.c.bf16 %v30_v6, %v29_v5  ;;  %v61_v9 = vld [vmem:[%s837_s1 + $0x100] sm:$0xff]  ;;  %v62_v10 = vld [vmem:[%s837_s1 + $0x108] sm:$0xff]  ;;  %469 = vmatprep.subr.bf16.mxu0 %v468_v3  ;;  %v80_v15 = vld [vmem:[%s837_s1 + $0x198] sm:$0xff] }
   0x5   :  { %v502_v12 = vpack.c.bf16 %v62_v10, %v61_v9  ;;  %501 = vmatprep.subr.bf16.mxu1 %v500_v7  ;;  %v504_v17 = vpack.c.bf16 %v80_v15, %v79_v14  ;;  %v31_v18 = vld [vmem:[%s837_s1 + $0x10] sm:$0xff]  ;;  %v32_v19 = vld [vmem:[%s837_s1 + $0x18] sm:$0xff]  ;;  %v49_v23 = vld [vmem:[%s837_s1 + $0xa0] sm:$0xff] }
   0x6   :  { %471 = vmatpush3.bf16.msra.mxu0 %v470_v8  ;;  %v63_v20 = vld [vmem:[%s837_s1 + $0x110] sm:$0xff]  ;;  %v474_v21 = vpack.c.bf16 %v32_v19, %v31_v18  ;;  %v64_v22 = vld [vmem:[%s837_s1 + $0x118] sm:$0xff]  ;;  %v50_v24 = vld [vmem:[%s837_s1 + $0xa8] sm:$0xff] }
   0x7   :  { %503 = vmatpush3.bf16.msra.mxu1 %v502_v12  ;;  %473 = vmatprep.subr.bf16.mxu0 %v472_v16  ;;  %v506_v25 = vpack.c.bf16 %v64_v22, %v63_v20  ;;  %v476_v26 = vpack.c.bf16 %v50_v24, %v49_v23  ;;  %v81_v27 = vld [vmem:[%s837_s1 + $0x1a0] sm:$0xff]  ;;  %v82_v28 = vld [vmem:[%s837_s1 + $0x1a8] sm:$0xff]  ;;  %v51_v35 = vld [vmem:[%s837_s1 + $0xb0] sm:$0xff] }
   0x8   :  { %505 = vmatprep.subr.bf16.mxu1 %v504_v17  ;;  %v33_v29 = vld [vmem:[%s837_s1 + $0x20] sm:$0xff]  ;;  %v508_v30 = vpack.c.bf16 %v82_v28, %v81_v27  ;;  %v34_v31 = vld [vmem:[%s837_s1 + $0x28] sm:$0xff]  ;;  %v52_v36 = vld [vmem:[%s837_s1 + $0xb8] sm:$0xff] }
   0x9   :  { %v65_v32 = vld [vmem:[%s837_s1 + $0x120] sm:$0xff]  ;;  %v66_v33 = vld [vmem:[%s837_s1 + $0x128] sm:$0xff]  ;;  %v478_v34 = vpack.c.bf16 %v34_v31, %v33_v29  ;;  %v83_v37 = vld [vmem:[%s837_s1 + $0x1b0] sm:$0xff]  ;;  %v480_v39 = vpack.c.bf16 %v52_v36, %v51_v35 }
   0xa   :  { %475 = vmatpush3.bf16.msra.mxu0 %v474_v21  ;;  %v510_v38 = vpack.c.bf16 %v66_v33, %v65_v32  ;;  %v84_v40 = vld [vmem:[%s837_s1 + $0x1b8] sm:$0xff]  ;;  %v35_v41 = vld [vmem:[%s837_s1 + $0x30] sm:$0xff]  ;;  %v53_v46 = vld [vmem:[%s837_s1 + $0xc0] sm:$0xff] }
   0xb   :  { %507 = vmatpush3.bf16.msra.mxu1 %v506_v25  ;;  %477 = vmatprep.subr.bf16.mxu0 %v476_v26  ;;  %v36_v42 = vld [vmem:[%s837_s1 + $0x38] sm:$0xff]  ;;  %v512_v43 = vpack.c.bf16 %v84_v40, %v83_v37  ;;  %v67_v44 = vld [vmem:[%s837_s1 + $0x130] sm:$0xff]  ;;  %v54_v47 = vld [vmem:[%s837_s1 + $0xc8] sm:$0xff] }
   0xc   :  { %509 = vmatprep.subr.bf16.mxu1 %v508_v30  ;;  %v68_v45 = vld [vmem:[%s837_s1 + $0x138] sm:$0xff]  ;;  %v85_v48 = vld [vmem:[%s837_s1 + $0x1c0] sm:$0xff]  ;;  %v86_v49 = vld [vmem:[%s837_s1 + $0x1c8] sm:$0xff]  ;;  %v482_v50 = vpack.c.bf16 %v36_v42, %v35_v41  ;;  %v484_v52 = vpack.c.bf16 %v54_v47, %v53_v46 }
   0xd   :  { %v514_v51 = vpack.c.bf16 %v68_v45, %v67_v44  ;;  %v37_v53 = vld [vmem:[%s837_s1 + $0x40] sm:$0xff]  ;;  %v38_v54 = vld [vmem:[%s837_s1 + $0x48] sm:$0xff]  ;;  %v516_v56 = vpack.c.bf16 %v86_v49, %v85_v48  ;;  %v55_v58 = vld [vmem:[%s837_s1 + $0xd0] sm:$0xff] }
   0xe   :  { %479 = vmatpush3.bf16.msra.mxu0 %v478_v34  ;;  %v69_v55 = vld [vmem:[%s837_s1 + $0x140] sm:$0xff]  ;;  %v70_v57 = vld [vmem:[%s837_s1 + $0x148] sm:$0xff]  ;;  %v56_v59 = vld [vmem:[%s837_s1 + $0xd8] sm:$0xff]  ;;  %v486_v62 = vpack.c.bf16 %v38_v54, %v37_v53 }
   0xf   :  { %511 = vmatpush3.bf16.msra.mxu1 %v510_v38  ;;  %481 = vmatprep.subr.bf16.mxu0 %v480_v39  ;;  %v87_v60 = vld [vmem:[%s837_s1 + $0x1d0] sm:$0xff]  ;;  %v88_v61 = vld [vmem:[%s837_s1 + $0x1d8] sm:$0xff]  ;;  %v518_v63 = vpack.c.bf16 %v70_v57, %v69_v55  ;;  %v488_v0 = vpack.c.bf16 %v56_v59, %v55_v58  ;;  %v57_v6 = vld [vmem:[%s837_s1 + $0xe0] sm:$0xff] }
  0x10   :  { %513 = vmatprep.subr.bf16.mxu1 %v512_v43  ;;  %v39_v1 = vld [vmem:[%s837_s1 + $0x50] sm:$0xff]  ;;  %v40_v2 = vld [vmem:[%s837_s1 + $0x58] sm:$0xff]  ;;  %v520_v4 = vpack.c.bf16 %v88_v61, %v87_v60  ;;  %v58_v7 = vld [vmem:[%s837_s1 + $0xe8] sm:$0xff] }
  0x11   :  { %v71_v3 = vld [vmem:[%s837_s1 + $0x150] sm:$0xff]  ;;  %v72_v5 = vld [vmem:[%s837_s1 + $0x158] sm:$0xff]  ;;  %v89_v8 = vld [vmem:[%s837_s1 + $0x1e0] sm:$0xff]  ;;  %v490_v10 = vpack.c.bf16 %v40_v2, %v39_v1  ;;  %v492_v14 = vpack.c.bf16 %v58_v7, %v57_v6 }
  0x12   :  { %483 = vmatpush3.bf16.msra.mxu0 %v482_v50  ;;  %v90_v9 = vld [vmem:[%s837_s1 + $0x1e8] sm:$0xff]  ;;  %v41_v11 = vld [vmem:[%s837_s1 + $0x60] sm:$0xff]  ;;  %v522_v13 = vpack.c.bf16 %v72_v5, %v71_v3  ;;  %v22_v17 = vld [vmem:[%s838_s0 + $0x18] sm:$0xff] }
  0x13   :  { %515 = vmatpush3.bf16.msra.mxu1 %v514_v51  ;;  %485 = vmatprep.subr.bf16.mxu0 %v484_v52  ;;  %v42_v12 = vld [vmem:[%s837_s1 + $0x68] sm:$0xff]  ;;  %v73_v15 = vld [vmem:[%s837_s1 + $0x160] sm:$0xff]  ;;  %v524_v18 = vpack.c.bf16 %v90_v9, %v89_v8  ;;  %v59_v20 = vld [vmem:[%s837_s1 + $0xf0] sm:$0xff] }
  0x14   :  { %517 = vmatprep.subr.bf16.mxu1 %v516_v56  ;;  %v20_v16 = vld [vmem:[%s838_s0 + $0x8] sm:$0xff]  ;;  %v60_v21 = vld [vmem:[%s837_s1 + $0xf8] sm:$0xff]  ;;  %v91_v22 = vld [vmem:[%s837_s1 + $0x1f0] sm:$0xff]  ;;  %252 = vmatprep.mubr.f32.mxu1 %v22_v17  ;;  %v494_v24 = vpack.c.bf16 %v42_v12, %v41_v11 }
  0x15   :  { %v74_v19 = vld [vmem:[%s837_s1 + $0x168] sm:$0xff]  ;;  %177 = vmatprep.mubr.f32.mxu0 %v20_v16  ;;  %v92_v23 = vld [vmem:[%s837_s1 + $0x1f8] sm:$0xff]  ;;  %v496_v26 = vpack.c.bf16 %v60_v21, %v59_v20  ;;  %v43_v27 = vld [vmem:[%s837_s1 + $0x70] sm:$0xff] }
  0x16   :  { %487 = vmatpush3.bf16.msra.mxu0 %v486_v62  ;;  %v526_v25 = vpack.c.bf16 %v74_v19, %v73_v15  ;;  %v44_v28 = vld [vmem:[%s837_s1 + $0x78] sm:$0xff]  ;;  %v75_v29 = vld [vmem:[%s837_s1 + $0x170] sm:$0xff]  ;;  %v528_v30 = vpack.c.bf16 %v92_v23, %v91_v22  ;;  %v93_v32 = vld [vmem:[%s837_s1 + $0x200] sm:$0xff] }
  0x17   :  { %519 = vmatpush3.bf16.msra.mxu1 %v518_v63  ;;  %489 = vmatprep.subr.bf16.mxu0 %v488_v0  ;;  %v76_v31 = vld [vmem:[%s837_s1 + $0x178] sm:$0xff]  ;;  %v94_v33 = vld [vmem:[%s837_s1 + $0x208] sm:$0xff]  ;;  %v498_v34 = vpack.c.bf16 %v44_v28, %v43_v27  ;;  %v95_v37 = vld [vmem:[%s837_s1 + $0x210] sm:$0xff] }
  0x18   :  { %521 = vmatprep.subr.bf16.mxu1 %v520_v4  ;;  %v530_v35 = vpack.c.bf16 %v76_v31, %v75_v29  ;;  %v532_v36 = vpack.c.bf16 %v94_v33, %v93_v32  ;;  %v96_v38 = vld [vmem:[%s837_s1 + $0x218] sm:$0xff]  ;;  %v19_v39 = vld [vmem:[%s838_s0] sm:$0xff]  ;;  %v21_v40 = vld [vmem:[%s838_s0 + $0x10] sm:$0xff] }
  0x19   :  { %v536_v41 = vpack.c.bf16 %v96_v38, %v95_v37  ;;  %v97_v42 = vld [vmem:[%s837_s1 + $0x220] sm:$0xff]  ;;  %v98_v43 = vld [vmem:[%s837_s1 + $0x228] sm:$0xff]  ;;  %v25_v44 = vld [vmem:[%s838_s0 + $0x30] sm:$0xff] }
  0x1a   :  { %491 = vmatpush3.bf16.msra.mxu0 %v490_v10  ;;  %v27_v45 = vld [vmem:[%s838_s0 + $0x40] sm:$0xff]  ;;  %v24_v46 = vld [vmem:[%s838_s0 + $0x28] sm:$0xff]  ;;  %v540_v47 = vpack.c.bf16 %v98_v43, %v97_v42  ;;  %v26_v48 = vld [vmem:[%s838_s0 + $0x38] sm:$0xff] }
  0x1b   :  { %523 = vmatpush3.bf16.msra.mxu1 %v522_v13  ;;  %493 = vmatprep.subr.bf16.mxu0 %v492_v14  ;;  %v99_v49 = vld [vmem:[%s837_s1 + $0x230] sm:$0xff]  ;;  %v100_v50 = vld [vmem:[%s837_s1 + $0x238] sm:$0xff]  ;;  %v23_v51 = vld [vmem:[%s838_s0 + $0x20] sm:$0xff] }
  0x1c   :  { %525 = vmatprep.subr.bf16.mxu1 %v524_v18  ;;  %v544_v52 = vpack.c.bf16 %v100_v50, %v99_v49  ;;  %v101_v53 = vld [vmem:[%s837_s1 + $0x240] sm:$0x1]  ;;  %v28_v54 = vld [vmem:[%s838_s0 + $0x48] sm:$0xff] }
  0x1d   :  { %v18_v5 = vld [vmem:[%s839_s3 + $0x8] sm:$0xff]  ;;  %v17_v8 = vld [vmem:[%s839_s3] sm:$0xff] }
  0x1e   :  { %495 = vmatpush3.bf16.msra.mxu0 %v494_v24  ;;  %v359_v10 = vld [vmem:[%s840_s2] ss:$0 sm:$0xff] }
  0x1f   :  { %527 = vmatpush3.bf16.msra.mxu1 %v526_v25  ;;  %497 = vmatprep.subr.bf16.mxu0 %v496_v26 }
  0x20   :  { %529 = vmatprep.subr.bf16.mxu1 %v528_v30 }
  0x22   :  { %499 = vmatpush3.bf16.msra.mxu0 %v498_v34 }
  0x23   :  { %531 = vmatpush3.bf16.msra.mxu1 %v530_v35  ;;  %533 = vmatprep.subr.bf16.mxu0 %v532_v36 }
  0x25   :  { %178 = vmatmul.mubr.f32.vlgmr.msra.gmra.mrb[0].mxu0 %v19_v39 }
  0x26   :  { %253 = vmatmul.mubr.f32.vlgmr.msra.gmra.mrb[0].mxu1 %v21_v40  ;;  %535 = vmatpush3.bf16.msra.mxu0 %v532_v36 }
  0x27   :  { %537 = vmatprep.subr.bf16.mxu0 %v536_v41  ;;  %182 = vmatprep.mubr.f32.mxu0 %v25_v44 }
  0x28   :  { %257 = vmatprep.mubr.f32.mxu1 %v27_v45 }
  0x29   :  { %183 = vmatmul.mubr.f32.gmra.mrb[2].mxu0 %v24_v46 }
  0x2a   :  { %539 = vmatpush3.bf16.msra.mxu0 %v536_v41  ;;  %258 = vmatmul.mubr.f32.gmra.mrb[2].mxu1 %v26_v48 }
  0x2b   :  { %541 = vmatprep.subr.bf16.mxu0 %v540_v47  ;;  %465 = vmatprep.mubr.msk.f32.mxu0 %vm102_vm0, %v23_v51 }
  0x2e   :  { %543 = vmatpush3.bf16.msra.mxu0 %v540_v47 }
  0x2f   :  { %545 = vmatprep.subr.bf16.mxu0 %v544_v52 }
  0x32   :  { %547 = vmatpush3.bf16.msra.mxu0 %v544_v52 }
  0x33   :  { %463 = vmatprep.subr.msk.mxu0 %vm109_vm1, %v101_v53 }
  0x36   :  { %464 = vmatpush3.msk.msra.mxu0 %vm109_vm1, %v101_v53 }
  0x37   :  { %466 = vmatmul.mubr.msk.f32.vlgmr.msra.gmra.mrb[4].mxu0 %vm102_vm0, %v28_v54 }
  0xf8   :  { %v392_v55 = vpop.f32.mrb[0].mxu0 }
  0xf9   :  { %v430_v56 = vpop.f32.mrb[0].mxu1  ;;  %v393_v57 = vpop.f32.mrb[1].mxu0 }
  0xfa   :  { %v394_v58 = vadd.f32 %v393_v57, %v392_v55  ;;  %v431_v59 = vpop.f32.mrb[1].mxu1 }
  0xfb   :  { %v432_v60 = vadd.f32 %v431_v59, %v430_v56 }
  0xfc   :  { %v395_v61 = vpop.f32.mrb[2].mxu0 }
  0xfd   :  { %v433_v62 = vpop.f32.mrb[2].mxu1  ;;  %v396_v63 = vpop.f32.mrb[3].mxu0  ;;  %v255_v0 = vadd.f32 %v432_v60, %v394_v58 }
  0xfe   :  { %v397_v1 = vadd.f32 %v396_v63, %v395_v61  ;;  %v434_v2 = vpop.f32.mrb[3].mxu1 }
  0xff   :  { %v435_v3 = vadd.f32 %v434_v2, %v433_v62 }
 0x101   :  { %v260_v4 = vadd.f32 %v435_v3, %v397_v1 }
 0x10a   :  { %v467_v6 = vpop.f32.mrb[4].mxu0 }
 0x10b   :  { %v335_v7 = vadd.f32 %v467_v6, %v260_v4  ;;  %v329_v9 = vpop.f32.mrb[5].mxu0 }
 0x10c   :  { %v330_v11 = vadd.f32 %v329_v9, %v255_v0 }
 0x10d   :  { %v339_v12 = vadd.f32 %v335_v7, %v18_v5 }
 0x10e   :  { %v338_v13 = vadd.f32 %v330_v11, %v17_v8 }
 0x10f   :  { %v348_v14 = vadd.f32 %v359_v10, %v339_v12 }
 0x110   :  { %v347_v15 = vadd.f32 %v359_v10, %v338_v13 }
 0x111   :  { %351 = vst.msk [vmem:[%s841_s4 + $0x8] sm:$0xff] %vm349_vm2, %v348_v14 }
 0x112   :  { %350 = vst.msk [vmem:[%s841_s4] sm:$0xff] %vm349_vm2, %v347_v15 }

// kernel: structure_module_forward.15
= control target key start
LH: loop header
LB: loop body
LE: loop exit
PB: predicated region body
PF: predicated region fallthrough
CT: control target
= control target key end

     0   :  { %vm82_vm0 = vcmask 261120   ;;  %v110_v25 = vlaneseq  ;;  %vm689_vm1 = vcmask 130048   ;;  %s1411_s23 = smov 6   ;;  %vm1136_vm2 = vcmask 48128   ;;  %s1699_s0 = inlined_call_operand.vmem [shape: f32[16,32], index: 0, kind: input, shape index: {}]   ;;  %s1700_s3 = inlined_call_operand.vmem [shape: f32[3,32,32], index: 3, kind: input, shape index: {}]   ;;  %s1701_s2 = inlined_call_operand.vmem [shape: f32[2,32], index: 2, kind: input, shape index: {}]   ;;  %s1702_s4 = inlined_call_operand.vmem [shape: f32[3,32], index: 4, kind: input, shape index: {}]   ;;  %s1703_s8 = inlined_call_operand.vmem [shape: f32[2,32,16], index: 8, kind: input, shape index: {}]   ;;  %s1704_s6 = inlined_call_operand.vmem [shape: f32[32,6], index: 6, kind: input, shape index: {}]   ;;  %s1705_s1 = inlined_call_operand.vmem [shape: f32[16,32], index: 1, kind: input, shape index: {}]   ;;  %s1706_s5 = inlined_call_operand.vmem [shape: f32[2,32], index: 5, kind: input, shape index: {}]   ;;  %s1707_s14 = inlined_call_operand.vmem [shape: f32[16,32], index: 14, kind: output, shape index: {0}]   ;;  %s1708_s10 = inlined_call_operand.vmem [shape: f32[4,16,16], index: 10, kind: input, shape index: {}]   ;;  %s1709_s9 = inlined_call_operand.vmem [shape: f32[1,16], index: 9, kind: input, shape index: {}]   ;;  %s1710_s11 = inlined_call_operand.vmem [shape: f32[4,16], index: 11, kind: input, shape index: {}]   ;;  %s1711_s12 = inlined_call_operand.vmem [shape: f32[16,4], index: 12, kind: input, shape index: {}]   ;;  %s1712_s13 = inlined_call_operand.vmem [shape: f32[1,4], index: 13, kind: input, shape index: {}]   ;;  %s1713_s7 = inlined_call_operand.vmem [shape: f32[1,6], index: 7, kind: input, shape index: {}]   ;;  %s1714_s15 = inlined_call_operand.vmem [shape: f32[16,10], index: 15, kind: output, shape index: {1}]  }
   0x1   :  { %v79_v0 = vld [vmem:[%s1699_s0] sm:$0xff]  ;;  %v80_v1 = vld [vmem:[%s1699_s0 + $0x8] sm:$0xff]  ;;  %v51_v16 = vld [vmem:[%s1700_s3 + $0x10] sm:$0xff]  ;;  %vm1139_vm3 = vcmask 80896  }
   0x2   :  { %v83_v2 = vsel %vm82_vm0, %v79_v0, 0.0  ;;  %v86_v3 = vsel %vm82_vm0, %v80_v1, 0.0  ;;  %v49_v14 = vld [vmem:[%s1700_s3] sm:$0xff]  ;;  %v50_v15 = vld [vmem:[%s1700_s3 + $0x8] sm:$0xff]  ;;  %v52_v18 = vld [vmem:[%s1700_s3 + $0x18] sm:$0xff]  ;;  %v1520_v29 = vshrl.u32 %v110_v25, 7 }
   0x3   :  { %84 = vadd.xlane.f32.xlu0 %v83_v2  ;;  %v1332_v17 = vpack.c.bf16 %v50_v15, %v49_v14  ;;  %v1336_v19 = vpack.c.bf16 %v52_v18, %v51_v16  ;;  %v53_v20 = vld [vmem:[%s1700_s3 + $0x20] sm:$0xff]  ;;  %v54_v21 = vld [vmem:[%s1700_s3 + $0x28] sm:$0xff]  ;;  %v55_v44 = vld [vmem:[%s1700_s3 + $0x30] sm:$0xff] }
   0x4   :  { %v1340_v22 = vpack.c.bf16 %v54_v21, %v53_v20  ;;  %v1523_v31 = vsub.s32 0, %v1520_v29  ;;  %v81_v32 = vld [vmem:[%s1701_s2] sm:$0x3]  ;;  %v1529_v33 = vsub.s32 1, %v1520_v29  ;;  %v56_v45 = vld [vmem:[%s1700_s3 + $0x38] sm:$0xff]  ;;  %v58_v48 = vld [vmem:[%s1700_s3 + $0x48] sm:$0xff] }
   0x5   :  { %1333 = vmatprep.subr.bf16.mxu0 %v1332_v17  ;;  %v1344_v46 = vpack.c.bf16 %v56_v45, %v55_v44  ;;  %v57_v47 = vld [vmem:[%s1700_s3 + $0x40] sm:$0xff]  ;;  %v59_v58 = vld [vmem:[%s1700_s3 + $0x50] sm:$0xff]  ;;  %v60_v59 = vld [vmem:[%s1700_s3 + $0x58] sm:$0xff] }
   0x6   :  { %1335 = vmatpush3.bf16.msra.mxu0 %v1332_v17  ;;  %1341 = vmatprep.subr.bf16.mxu1 %v1340_v22  ;;  %v113_v34 = vrot.slane %v81_v32, %v1523_v31  ;;  %v119_v37 = vrot.slane %v81_v32, %v1529_v33  ;;  %v1348_v49 = vpack.c.bf16 %v58_v48, %v57_v47  ;;  %v61_v50 = vld [vmem:[%s1702_s4] sm:$0x7]  ;;  %v76_v25 = vld [vmem:[%s1703_s8 + $0x28] sm:$0xff]  ;;  %v427_v45 = vld [vmem:[%s1704_s6 + $0x18] sm:$0xff] }
   0x7   :  { %87 = vadd.xlane.f32.xlu0 %v86_v3  ;;  %1337 = vmatprep.subr.bf16.mxu0 %v1336_v19  ;;  %v125_v51 = vrot.slane %v61_v50, %v1523_v31  ;;  %v1352_v60 = vpack.c.bf16 %v60_v59, %v59_v58  ;;  %v212_v61 = vrot.slane %v61_v50, %v1529_v33  ;;  %v71_v32 = vld [vmem:[%s1703_s8] sm:$0xff] }
   0x8   :  { %1343 = vmatpush3.bf16.msra.mxu1 %v1340_v22 }
   0x9   :  { %1345 = vmatprep.subr.bf16.mxu1 %v1344_v46 }
   0xa   :  { %1339 = vmatpush3.bf16.msra.mxu0 %v1336_v19 }
   0xb   :  { %1349 = vmatprep.subr.bf16.mxu0 %v1348_v49 }
   0xc   :  { %1347 = vmatpush3.bf16.msra.mxu1 %v1344_v46 }
  0x90   :  { %v85_v4 = vpop.xlane.xlu0 %84 }
  0x91   :  { %v90_v5 = vmul.f32 0.03125, %v85_v4  ;;  %v298_v4 = vsub.s32 2, %v1520_v29 }
  0x93   :  { %v92_v6 = vsub.f32 %v79_v0, %v90_v5  ;;  %v299_v5 = vrot.slane %v61_v50, %v298_v4 }
  0x94   :  { %v88_v7 = vpop.xlane.xlu0 %87 }
  0x95   :  { %v91_v8 = vmul.f32 0.03125, %v88_v7  ;;  %v94_v9 = vmul.f32 %v92_v6, %v92_v6 }
  0x97   :  { %v93_v10 = vsub.f32 %v80_v1, %v91_v8  ;;  %v96_v11 = vsel %vm82_vm0, %v94_v9, 0.0 }
  0x98   :  { %97 = vadd.xlane.f32.xlu1 %v96_v11 }
  0x99   :  { %v95_v12 = vmul.f32 %v93_v10, %v93_v10 }
  0x9b   :  { %v99_v13 = vsel %vm82_vm0, %v95_v12, 0.0 }
  0x9c   :  { %100 = vadd.xlane.f32.xlu1 %v99_v13 }
 0x125   :  { %v98_v23 = vpop.xlane.xlu1 %97 }
 0x126   :  { %v102_v24 = vmul.f32 0.03125, %v98_v23 }
 0x128   :  { %v104_v26 = vadd.f32 1e-05, %v102_v24  ;;  %v75_v24 = vld [vmem:[%s1703_s8 + $0x20] sm:$0xff] }
 0x129   :  { %v101_v27 = vpop.xlane.xlu1 %100 }
 0x12a   :  { %1403 = vrsqrt.f32 %v104_v26  ;;  %v103_v28 = vmul.f32 0.03125, %v101_v27  ;;  %v1364_v26 = vpack.c.bf16 %v76_v25, %v75_v24  ;;  %v77_v27 = vld [vmem:[%s1703_s8 + $0x30] sm:$0xff]  ;;  %v66_v24 = vld [vmem:[%s1708_s10 + $0x20] sm:$0xff]  ;;  %v67_v25 = vld [vmem:[%s1708_s10 + $0x28] sm:$0xff] }
 0x12c   :  { %v105_v30 = vadd.f32 1e-05, %v103_v28  ;;  %v78_v28 = vld [vmem:[%s1703_s8 + $0x38] sm:$0xff] }
 0x12e   :  { %1405 = vrsqrt.f32 %v105_v30  ;;  %v1368_v30 = vpack.c.bf16 %v78_v28, %v77_v27 }
 0x134   :  { %v1404_v35 = vpop.eup %1403 }
 0x135   :  { %v108_v36 = vmul.f32 %v1404_v35, %v92_v6  ;;  %v424_v35 = vld [vmem:[%s1704_s6] sm:$0xff] }
 0x137   :  { %v114_v38 = vmul.f32 %v113_v34, %v108_v36  ;;  %v516_v36 = vld [vmem:[%s1705_s1] sm:$0xff] }
 0x138   :  { %v1406_v39 = vpop.eup %1405 }
 0x139   :  { %v109_v40 = vmul.f32 %v1406_v39, %v93_v10  ;;  %v120_v41 = vadd.f32 %v119_v37, %v114_v38  ;;  %v425_v38 = vld [vmem:[%s1704_s6 + $0x8] sm:$0xff] }
 0x13a   :  { %v517_v39 = vld [vmem:[%s1705_s1 + $0x8] sm:$0xff] }
 0x13b   :  { %v115_v42 = vmul.f32 %v113_v34, %v109_v40  ;;  %1239 = vmatprep.mubr.msk.f32.mxu0 %vm82_vm0, %v120_v41  ;;  %v72_v34 = vld [vmem:[%s1703_s8 + $0x8] sm:$0xff]  ;;  %v1356_v40 = vpack.c.bf16 %v425_v38, %v424_v35  ;;  %v68_v38 = vld [vmem:[%s1708_s10 + $0x30] sm:$0xff] }
 0x13d   :  { %v121_v43 = vadd.f32 %v119_v37, %v115_v42  ;;  %v1372_v37 = vpack.c.bf16 %v72_v34, %v71_v32  ;;  %v74_v42 = vld [vmem:[%s1703_s8 + $0x18] sm:$0xff]  ;;  %1357 = vmatprep.subr.bf16.mxu1 %v1356_v40 }
 0x13f   :  { %1240 = vmatmul.mubr.msk.f32.vlgmr.msra.gmra.mrb[0].mxu0 %vm82_vm0, %v121_v43 }
 0x140   :  { %1351 = vmatpush3.bf16.msra.mxu0 %v1348_v49 }
 0x141   :  { %1353 = vmatprep.subr.bf16.mxu0 %v1352_v60 }
 0x144   :  { %1355 = vmatpush3.bf16.msra.mxu0 %v1352_v60 }
 0x145   :  { %1365 = vmatprep.subr.bf16.mxu0 %v1364_v26 }
 0x212   :  { %v1241_v52 = vpop.f32.mrb[0].mxu0 }
 0x213   :  { %v204_v53 = vadd.f32 %v1241_v52, %v125_v51  ;;  %v198_v54 = vpop.f32.mrb[1].mxu0 }
 0x214   :  { %v199_v55 = vadd.f32 %v198_v54, %v125_v51 }
 0x215   :  { %v208_v57 = vmax.f32 %v204_v53, 0.0  ;;  %v383_v53 = vld [vmem:[%s1706_s5] sm:$0x3] }
 0x216   :  { %v207_v56 = vmax.f32 %v199_v55, 0.0  ;;  %v413_v54 = vrot.slane %v383_v53, %v1523_v31  ;;  %v419_v58 = vrot.slane %v383_v53, %v1529_v33 }
 0x218   :  { %1250 = vmatprep.mubr.msk.f32.mxu1 %vm82_vm0, %v207_v56 }
 0x219   :  { %1251 = vmatmul.mubr.msk.f32.vlgmr.msra.gmra.mrb[0].mxu1 %vm82_vm0, %v208_v57 }
 0x21a   :  { %1359 = vmatpush3.bf16.msra.mxu1 %v1356_v40 }
 0x2ec   :  { %v1252_v62 = vpop.f32.mrb[0].mxu1 }
 0x2ed   :  { %v291_v63 = vadd.f32 %v1252_v62, %v212_v61  ;;  %v285_v0 = vpop.f32.mrb[1].mxu1 }
 0x2ee   :  { %v286_v1 = vadd.f32 %v285_v0, %v212_v61  ;;  %v62_v0 = vld [vmem:[%s1708_s10] sm:$0xff] }
 0x2ef   :  { %v295_v3 = vmax.f32 %v291_v63, 0.0 }
 0x2f0   :  { %v294_v2 = vmax.f32 %v286_v1, 0.0  ;;  %v63_v1 = vld [vmem:[%s1708_s10 + $0x8] sm:$0xff] }
 0x2f2   :  { %1261 = vmatprep.mubr.msk.f32.mxu0 %vm82_vm0, %v294_v2  ;;  %v1380_v2 = vpack.c.bf16 %v63_v1, %v62_v0 }
 0x2f3   :  { %1262 = vmatmul.mubr.msk.f32.vlgmr.msra.gmra.mrb[2].mxu0 %vm82_vm0, %v295_v3  ;;  %v1163_v3 = vld [vmem:[%s1709_s9] ss:$0 sm:$0xff] }
 0x2f4   :  { %1367 = vmatpush3.bf16.msra.mxu0 %v1364_v26  ;;  %1283 = vmatprep.mubr.msk.f32.mxu0 %vm82_vm0, %v516_v36  ;;  %v1388_v26 = vpack.c.bf16 %v67_v25, %v66_v24 }
 0x2f5   :  { %1369 = vmatprep.subr.bf16.mxu0 %v1368_v30 }
 0x2f8   :  { %1371 = vmatpush3.bf16.msra.mxu0 %v1368_v30 }
 0x2f9   :  { %1373 = vmatprep.subr.bf16.mxu0 %v1372_v37 }
 0x2fb   :  { %1284 = vmatmul.mubr.msk.f32.vlgmr.msra.gmra.mrb[4].mxu0 %vm82_vm0, %v517_v39 }
 0x2fc   :  { %1375 = vmatpush3.bf16.msra.mxu0 %v1372_v37 }
 0x3c6   :  { %v1263_v6 = vpop.f32.mrb[2].mxu0 }
 0x3c7   :  { %v378_v7 = vadd.f32 %v1263_v6, %v299_v5  ;;  %v372_v8 = vpop.f32.mrb[3].mxu0 }
 0x3c8   :  { %v373_v9 = vadd.f32 %v372_v8, %v299_v5 }
 0x3c9   :  { %v382_v10 = vadd.f32 %v378_v7, %v121_v43  ;;  %v426_v43 = vld [vmem:[%s1704_s6 + $0x10] sm:$0xff] }
 0x3ca   :  { %v381_v11 = vadd.f32 %v373_v9, %v120_v41  ;;  %v73_v41 = vld [vmem:[%s1703_s8 + $0x10] sm:$0xff]  ;;  %v1360_v46 = vpack.c.bf16 %v427_v45, %v426_v43 }
 0x3cb   :  { %v387_v12 = vsel %vm82_vm0, %v382_v10, 0.0  ;;  %v1376_v44 = vpack.c.bf16 %v74_v42, %v73_v41 }
 0x3cc   :  { %388 = vadd.xlane.f32.xlu1 %v387_v12  ;;  %v384_v13 = vsel %vm82_vm0, %v381_v11, 0.0  ;;  %1361 = vmatprep.subr.bf16.mxu1 %v1360_v46 }
 0x3cd   :  { %385 = vadd.xlane.f32.xlu0 %v384_v13  ;;  %1377 = vmatprep.subr.bf16.mxu0 %v1376_v44  ;;  %v64_v13 = vld [vmem:[%s1708_s10 + $0x10] sm:$0xff] }
 0x3ce   :  { %1379 = vmatpush3.bf16.msra.mxu0 %v1376_v44  ;;  %1363 = vmatpush3.bf16.msra.mxu1 %v1360_v46 }
 0x3cf   :  { %1381 = vmatprep.subr.bf16.mxu1 %v1380_v2 }
 0x459   :  { %v389_v14 = vpop.xlane.xlu1 %388 }
 0x45a   :  { %v391_v15 = vmul.f32 0.03125, %v389_v14  ;;  %v386_v16 = vpop.xlane.xlu0 %385  ;;  %v65_v14 = vld [vmem:[%s1708_s10 + $0x18] sm:$0xff] }
 0x45b   :  { %v390_v17 = vmul.f32 0.03125, %v386_v16  ;;  %v70_v16 = vld [vmem:[%s1710_s11] sm:$0xf] }
 0x45c   :  { %v393_v18 = vsub.f32 %v382_v10, %v391_v15  ;;  %v1384_v15 = vpack.c.bf16 %v65_v14, %v64_v13  ;;  %v865_v40 = vrot.slane %v70_v16, %v298_v4  ;;  %v951_v4 = vsub.s32 3, %v1520_v29 }
 0x45d   :  { %v392_v19 = vsub.f32 %v381_v11, %v390_v17  ;;  %v688_v17 = vrot.slane %v70_v16, %v1523_v31  ;;  %v776_v31 = vrot.slane %v70_v16, %v1529_v33  ;;  %v69_v33 = vld [vmem:[%s1708_s10 + $0x38] sm:$0xff] }
 0x45e   :  { %v395_v20 = vmul.f32 %v393_v18, %v393_v18  ;;  %v1392_v39 = vpack.c.bf16 %v69_v33, %v68_v38 }
 0x45f   :  { %v394_v21 = vmul.f32 %v392_v19, %v392_v19 }
 0x460   :  { %v399_v22 = vsel %vm82_vm0, %v395_v20, 0.0 }
 0x461   :  { %400 = vadd.xlane.f32.xlu1 %v399_v22  ;;  %v396_v23 = vsel %vm82_vm0, %v394_v21, 0.0 }
 0x462   :  { %397 = vadd.xlane.f32.xlu0 %v396_v23 }
 0x4ee   :  { %v401_v47 = vpop.xlane.xlu1 %400 }
 0x4ef   :  { %v403_v48 = vmul.f32 0.03125, %v401_v47  ;;  %v398_v49 = vpop.xlane.xlu0 %397  ;;  %v1038_v47 = vld [vmem:[%s1711_s12] sm:$0xff] }
 0x4f0   :  { %v402_v50 = vmul.f32 0.03125, %v398_v49 }
 0x4f1   :  { %v405_v51 = vadd.f32 1e-05, %v403_v48  ;;  %v1039_v48 = vld [vmem:[%s1711_s12 + $0x8] sm:$0xff] }
 0x4f2   :  { %v404_v52 = vadd.f32 1e-05, %v402_v50  ;;  %v1396_v49 = vpack.c.bf16 %v1039_v48, %v1038_v47  ;;  %v952_v50 = vrot.slane %v70_v16, %v951_v4 }
 0x4f3   :  { %1407 = vrsqrt.f32 %v405_v51 }
 0x4f4   :  { %1409 = vrsqrt.f32 %v404_v52  ;;  %1397 = vmatprep.subr.bf16.mxu0 %v1396_v49 }
 0x4fd   :  { %v1408_v55 = vpop.eup %1407 }
 0x4fe   :  { %v1410_v56 = vpop.eup %1409  ;;  %v409_v57 = vmul.f32 %v1408_v55, %v393_v18 }
 0x4ff   :  { %v408_v59 = vmul.f32 %v1410_v56, %v392_v19 }
 0x500   :  { %v415_v60 = vmul.f32 %v413_v54, %v409_v57 }
 0x501   :  { %v414_v61 = vmul.f32 %v413_v54, %v408_v59  ;;  %v1172_v59 = vld [vmem:[%s1712_s13] ss:$0 sm:$0xff] }
 0x502   :  { %v421_v62 = vadd.f32 %v419_v58, %v415_v60 }
 0x503   :  { %v420_v63 = vadd.f32 %v419_v58, %v414_v61 }
 0x504   :  { %423 = vst.msk [vmem:[%s1707_s14 + $0x8] sm:$0xff] %vm82_vm0, %v421_v62 }
 0x505   :  { %422 = vst.msk [vmem:[%s1707_s14] sm:$0xff] %vm82_vm0, %v420_v63  ;;  %1272 = vmatprep.mubr.msk.f32.mxu1 %vm82_vm0, %v420_v63  ;;  %1294 = vmatprep.mubr.msk.f32.mxu0 %vm82_vm0, %v420_v63  ;;  %v1156_v63 = vld [vmem:[%s1713_s7] ss:$0 sm:$0xff] }
 0x506   :  { %1273 = vmatmul.mubr.msk.f32.vlgmr.msra.gmra.mrb[2].mxu1 %vm82_vm0, %v421_v62  ;;  %1295 = vmatmul.mubr.msk.f32.vlgmr.msra.gmra.mrb[4].mxu0 %vm82_vm0, %v421_v62 }
 0x507   :  { %1383 = vmatpush3.bf16.msra.mxu1 %v1380_v2  ;;  %1399 = vmatpush3.bf16.msra.mxu0 %v1396_v49 }
 0x508   :  { %1385 = vmatprep.subr.bf16.mxu1 %v1384_v15 }
 0x5d9   :  { %v1639_v5 = vpop.f32.mrb[2].mxu1  ;;  %v1296_v6 = vpop.f32.mrb[4].mxu0 }
 0x5da   :  { %v682_v7 = vadd.f32 %v1296_v6, %v1163_v3  ;;  %v1641_v8 = vpop.f32.mrb[3].mxu1  ;;  %v665_v9 = vpop.f32.mrb[5].mxu0  ;;  %v513_v0 = vadd.f32 %v1639_v5, %v1156_v63 }
 0x5db   :  { %v681_v10 = vadd.f32 %v1163_v3, %v665_v9  ;;  %v508_v1 = vadd.f32 %v1156_v63, %v1641_v8 }
 0x5dc   :  { %v684_v12 = vmax.f32 %v682_v7, 0.0 }
 0x5dd   :  { %v683_v11 = vmax.f32 %v681_v10, 0.0 }
 0x5df   :  { %1301 = vmatprep.mubr.msk.f32.mxu1 %vm689_vm1, %v683_v11 }
 0x5e0   :  { %1302 = vmatmul.mubr.msk.f32.vlgmr.msra.gmra.mrb[4].mxu1 %vm689_vm1, %v684_v12 }
 0x5e1   :  { %1387 = vmatpush3.bf16.msra.mxu1 %v1384_v15 }
 0x5e2   :  { %1389 = vmatprep.subr.bf16.mxu1 %v1388_v26 }
 0x6b3   :  { %v1303_v18 = vpop.f32.mrb[4].mxu1 }
 0x6b4   :  { %v768_v19 = vadd.f32 %v1303_v18, %v688_v17  ;;  %v762_v20 = vpop.f32.mrb[5].mxu1 }
 0x6b5   :  { %v763_v21 = vadd.f32 %v762_v20, %v688_v17 }
 0x6b6   :  { %v772_v23 = vmax.f32 %v768_v19, 0.0 }
 0x6b7   :  { %v771_v22 = vmax.f32 %v763_v21, 0.0 }
 0x6b9   :  { %1308 = vmatprep.mubr.msk.f32.mxu1 %vm689_vm1, %v771_v22 }
 0x6ba   :  { %1309 = vmatmul.mubr.msk.f32.vlgmr.msra.gmra.mrb[6].mxu1 %vm689_vm1, %v772_v23 }
 0x6bb   :  { %1391 = vmatpush3.bf16.msra.mxu1 %v1388_v26 }
 0x6bc   :  { %1393 = vmatprep.subr.bf16.mxu1 %v1392_v39 }
 0x78d   :  { %v1310_v27 = vpop.f32.mrb[6].mxu1 }
 0x78e   :  { %v855_v28 = vadd.f32 %v1310_v27, %v776_v31  ;;  %v849_v30 = vpop.f32.mrb[7].mxu1 }
 0x78f   :  { %v850_v32 = vadd.f32 %v849_v30, %v776_v31 }
 0x790   :  { %v859_v34 = vadd.f32 %v855_v28, %v682_v7 }
 0x791   :  { %v858_v35 = vadd.f32 %v850_v32, %v681_v10 }
 0x792   :  { %v861_v37 = vmax.f32 %v859_v34, 0.0 }
 0x793   :  { %v860_v36 = vmax.f32 %v858_v35, 0.0 }
 0x795   :  { %1315 = vmatprep.mubr.msk.f32.mxu1 %vm689_vm1, %v860_v36 }
 0x796   :  { %1316 = vmatmul.mubr.msk.f32.vlgmr.msra.gmra.mrb[8].mxu1 %vm689_vm1, %v861_v37 }
 0x797   :  { %1395 = vmatpush3.bf16.msra.mxu1 %v1392_v39 }
 0x869   :  { %v1317_v41 = vpop.f32.mrb[8].mxu1 }
 0x86a   :  { %v944_v42 = vadd.f32 %v1317_v41, %v865_v40  ;;  %v938_v43 = vpop.f32.mrb[9].mxu1 }
 0x86b   :  { %v939_v44 = vadd.f32 %v938_v43, %v865_v40 }
 0x86c   :  { %v948_v46 = vmax.f32 %v944_v42, 0.0 }
 0x86d   :  { %v947_v45 = vmax.f32 %v939_v44, 0.0 }
 0x86f   :  { %1322 = vmatprep.mubr.msk.f32.mxu1 %vm689_vm1, %v947_v45 }
 0x870   :  { %1323 = vmatmul.mubr.msk.f32.vlgmr.msra.gmra.mrb[10].mxu1 %vm689_vm1, %v948_v46 }
 0x943   :  { %v1324_v51 = vpop.f32.mrb[10].mxu1 }
 0x944   :  { %v1031_v52 = vadd.f32 %v1324_v51, %v952_v50  ;;  %v1025_v53 = vpop.f32.mrb[11].mxu1 }
 0x945   :  { %v1026_v54 = vadd.f32 %v1025_v53, %v952_v50 }
 0x946   :  { %v1035_v55 = vadd.f32 %v1031_v52, %v859_v34 }
 0x947   :  { %v1034_v56 = vadd.f32 %v1026_v54, %v858_v35 }
 0x948   :  { %v1037_v58 = vmax.f32 %v1035_v55, 0.0 }
 0x949   :  { %v1036_v57 = vmax.f32 %v1034_v56, 0.0 }
 0x94b   :  { %1329 = vmatprep.mubr.msk.f32.mxu0 %vm689_vm1, %v1036_v57 }
 0x94c   :  { %1330 = vmatmul.mubr.msk.f32.vlgmr.msra.gmra.mrb[6].mxu0 %vm689_vm1, %v1037_v58 }
 0xa1f   :  { %v1331_v60 = vpop.f32.mrb[6].mxu0 }
 0xa20   :  { %v1125_v61 = vadd.f32 %v1331_v60, %v1172_v59  ;;  %v1119_v29 = vpop.f32.mrb[7].mxu0 }
 0xa21   :  { %v1120_v62 = vadd.f32 %v1172_v59, %v1119_v29 }
 0xa22   :  { %1132 = vrot.lane.b32.xlu1 %v1125_v61, %s1411_s23 }
 0xa23   :  { %1130 = vrot.lane.b32.xlu0 %v1120_v62, %s1411_s23 }
 0xa94   :  { %v1133_v2 = vpop.permute.xlu1 %1132 }
 0xa95   :  { %v1138_v3 = vsel %vm1136_vm2, %v513_v0, %v1133_v2  ;;  %v1131_v6 = vpop.permute.xlu0 %1130 }
 0xa96   :  { %1141 = vst.msk [vmem:[%s1714_s15 + $0x8] sm:$0xff] %vm1139_vm3, %v1138_v3  ;;  %v1137_v7 = vsel %vm1136_vm2, %v508_v1, %v1131_v6 }
 0xa97   :  { %1140 = vst.msk [vmem:[%s1714_s15] sm:$0xff] %vm1139_vm3, %v1137_v7 }

// kernel: structure_module_forward.19
= control target key start
LH: loop header
LB: loop body
LE: loop exit
PB: predicated region body
PF: predicated region fallthrough
CT: control target
= control target key end

     0   :  { %vm83_vm0 = vcmask 261120   ;;  %s1748_s0 = inlined_call_operand.vmem [shape: f32[16,32], index: 0, kind: input, shape index: {}]   ;;  %s1749_s1 = inlined_call_operand.vmem [shape: f32[16,32], index: 1, kind: input, shape index: {}]   ;;  %s1750_s2 = inlined_call_operand.vmem [shape: f32[2,32], index: 2, kind: input, shape index: {}]   ;;  %s1751_s3 = inlined_call_operand.vmem [shape: f32[3,32,32], index: 3, kind: input, shape index: {}]   ;;  %s1752_s4 = inlined_call_operand.vmem [shape: f32[3,32], index: 4, kind: input, shape index: {}]   ;;  %s1753_s5 = inlined_call_operand.vmem [shape: f32[2,32], index: 5, kind: input, shape index: {}]   ;;  %s1754_s6 = inlined_call_operand.vmem [shape: f32[32,6], index: 6, kind: input, shape index: {}]   ;;  %s1755_s7 = inlined_call_operand.vmem [shape: f32[1,6], index: 7, kind: input, shape index: {}]   ;;  %s1756_s8 = inlined_call_operand.vmem [shape: f32[2,32,16], index: 8, kind: input, shape index: {}]   ;;  %s1757_s9 = inlined_call_operand.vmem [shape: f32[1,16], index: 9, kind: input, shape index: {}]   ;;  %s1758_s10 = inlined_call_operand.vmem [shape: f32[4,16,16], index: 10, kind: input, shape index: {}]   ;;  %s1759_s11 = inlined_call_operand.vmem [shape: f32[4,16], index: 11, kind: input, shape index: {}]   ;;  %s1760_s12 = inlined_call_operand.vmem [shape: f32[16,4], index: 12, kind: input, shape index: {}]   ;;  %s1761_s13 = inlined_call_operand.vmem [shape: f32[1,4], index: 13, kind: input, shape index: {}]   ;;  %s1762_s14 = inlined_call_operand.hbm [shape: f32[16,32], index: 14, kind: output, shape index: {0}]   ;;  %s1763_s15 = inlined_call_operand.vmem [shape: f32[16,10], index: 15, kind: output, shape index: {1}]  }
   0x1   :  { %v80_v0 = vld [vmem:[%s1748_s0] sm:$0xff]  ;;  %v81_v1 = vld [vmem:[%s1748_s0 + $0x8] sm:$0xff] }
   0x2   :  { %21 = vsyncpa [#allocation3], 0  ;;  %v84_v2 = vsel %vm83_vm0, %v80_v0, 0.0  ;;  %v87_v3 = vsel %vm83_vm0, %v81_v1, 0.0  ;;  %v50_v14 = vld [vmem:[%s1751_s3] sm:$0xff]  ;;  %v51_v15 = vld [vmem:[%s1751_s3 + $0x8] sm:$0xff]  ;;  %v111_v25 = vlaneseq }
   0x3   :  { %85 = vadd.xlane.f32.xlu0 %v84_v2  ;;  %v52_v16 = vld [vmem:[%s1751_s3 + $0x10] sm:$0xff]  ;;  %v1345_v17 = vpack.c.bf16 %v51_v15, %v50_v14  ;;  %v53_v18 = vld [vmem:[%s1751_s3 + $0x18] sm:$0xff]  ;;  %v54_v20 = vld [vmem:[%s1751_s3 + $0x20] sm:$0xff]  ;;  %vm690_vm1 = vcmask 130048  }
   0x4   :  { %v1349_v19 = vpack.c.bf16 %v53_v18, %v52_v16  ;;  %v55_v21 = vld [vmem:[%s1751_s3 + $0x28] sm:$0xff]  ;;  %v1563_v29 = vshrl.u32 %v111_v25, 7  ;;  %v82_v32 = vld [vmem:[%s1750_s2] sm:$0x3]  ;;  %v56_v44 = vld [vmem:[%s1751_s3 + $0x30] sm:$0xff] }
   0x5   :  { %1346 = vmatprep.subr.bf16.mxu0 %v1345_v17  ;;  %v1353_v22 = vpack.c.bf16 %v55_v21, %v54_v20  ;;  %v57_v45 = vld [vmem:[%s1751_s3 + $0x38] sm:$0xff]  ;;  %v58_v47 = vld [vmem:[%s1751_s3 + $0x40] sm:$0xff]  ;;  %v59_v48 = vld [vmem:[%s1751_s3 + $0x48] sm:$0xff] }
   0x6   :  { %1348 = vmatpush3.bf16.msra.mxu0 %v1345_v17  ;;  %v1566_v31 = vsub.s32 0, %v1563_v29  ;;  %v1572_v33 = vsub.s32 1, %v1563_v29  ;;  %v1357_v46 = vpack.c.bf16 %v57_v45, %v56_v44  ;;  %v1361_v49 = vpack.c.bf16 %v59_v48, %v58_v47  ;;  %v62_v50 = vld [vmem:[%s1752_s4] sm:$0x7]  ;;  %v60_v58 = vld [vmem:[%s1751_s3 + $0x50] sm:$0xff]  ;;  %v61_v59 = vld [vmem:[%s1751_s3 + $0x58] sm:$0xff] }
   0x7   :  { %88 = vadd.xlane.f32.xlu0 %v87_v3  ;;  %1350 = vmatprep.subr.bf16.mxu0 %v1349_v19  ;;  %v1365_v60 = vpack.c.bf16 %v61_v59, %v60_v58  ;;  %v77_v25 = vld [vmem:[%s1756_s8 + $0x28] sm:$0xff]  ;;  %v428_v45 = vld [vmem:[%s1754_s6 + $0x18] sm:$0xff] }
   0x8   :  { %1354 = vmatprep.subr.bf16.mxu1 %v1353_v22  ;;  %v114_v34 = vrot.slane %v82_v32, %v1566_v31  ;;  %v120_v37 = vrot.slane %v82_v32, %v1572_v33  ;;  %v126_v51 = vrot.slane %v62_v50, %v1566_v31  ;;  %v213_v61 = vrot.slane %v62_v50, %v1572_v33  ;;  %v72_v32 = vld [vmem:[%s1756_s8] sm:$0xff] }
   0x9   :  { %1356 = vmatpush3.bf16.msra.mxu1 %v1353_v22 }
   0xa   :  { %1352 = vmatpush3.bf16.msra.mxu0 %v1349_v19  ;;  %1358 = vmatprep.subr.bf16.mxu1 %v1357_v46 }
   0xb   :  { %1362 = vmatprep.subr.bf16.mxu0 %v1361_v49 }
   0xd   :  { %1360 = vmatpush3.bf16.msra.mxu1 %v1357_v46 }
  0x90   :  { %v86_v4 = vpop.xlane.xlu0 %85 }
  0x91   :  { %v91_v5 = vmul.f32 0.03125, %v86_v4  ;;  %v299_v4 = vsub.s32 2, %v1563_v29 }
  0x93   :  { %v93_v6 = vsub.f32 %v80_v0, %v91_v5  ;;  %v300_v5 = vrot.slane %v62_v50, %v299_v4 }
  0x94   :  { %v89_v7 = vpop.xlane.xlu0 %88 }
  0x95   :  { %v92_v8 = vmul.f32 0.03125, %v89_v7  ;;  %v95_v9 = vmul.f32 %v93_v6, %v93_v6 }
  0x97   :  { %v94_v10 = vsub.f32 %v81_v1, %v92_v8  ;;  %v97_v11 = vsel %vm83_vm0, %v95_v9, 0.0 }
  0x98   :  { %98 = vadd.xlane.f32.xlu1 %v97_v11 }
  0x99   :  { %v96_v12 = vmul.f32 %v94_v10, %v94_v10 }
  0x9b   :  { %v100_v13 = vsel %vm83_vm0, %v96_v12, 0.0 }
  0x9c   :  { %101 = vadd.xlane.f32.xlu1 %v100_v13 }
 0x125   :  { %v99_v23 = vpop.xlane.xlu1 %98 }
 0x126   :  { %v103_v24 = vmul.f32 0.03125, %v99_v23 }
 0x128   :  { %v105_v26 = vadd.f32 1e-05, %v103_v24  ;;  %v76_v24 = vld [vmem:[%s1756_s8 + $0x20] sm:$0xff] }
 0x129   :  { %v102_v27 = vpop.xlane.xlu1 %101 }
 0x12a   :  { %1419 = vrsqrt.f32 %v105_v26  ;;  %v104_v28 = vmul.f32 0.03125, %v102_v27  ;;  %v1377_v26 = vpack.c.bf16 %v77_v25, %v76_v24  ;;  %v78_v27 = vld [vmem:[%s1756_s8 + $0x30] sm:$0xff]  ;;  %v67_v24 = vld [vmem:[%s1758_s10 + $0x20] sm:$0xff]  ;;  %v68_v25 = vld [vmem:[%s1758_s10 + $0x28] sm:$0xff] }
 0x12c   :  { %v106_v30 = vadd.f32 1e-05, %v104_v28  ;;  %v79_v28 = vld [vmem:[%s1756_s8 + $0x38] sm:$0xff] }
 0x12e   :  { %1421 = vrsqrt.f32 %v106_v30  ;;  %v1381_v30 = vpack.c.bf16 %v79_v28, %v78_v27 }
 0x134   :  { %v1420_v35 = vpop.eup %1419 }
 0x135   :  { %v109_v36 = vmul.f32 %v1420_v35, %v93_v6  ;;  %v425_v35 = vld [vmem:[%s1754_s6] sm:$0xff] }
 0x137   :  { %v115_v38 = vmul.f32 %v114_v34, %v109_v36  ;;  %v517_v36 = vld [vmem:[%s1749_s1] sm:$0xff] }
 0x138   :  { %v1422_v39 = vpop.eup %1421 }
 0x139   :  { %v110_v40 = vmul.f32 %v1422_v39, %v94_v10  ;;  %v121_v41 = vadd.f32 %v120_v37, %v115_v38  ;;  %v426_v38 = vld [vmem:[%s1754_s6 + $0x8] sm:$0xff] }
 0x13a   :  { %v1369_v39 = vpack.c.bf16 %v426_v38, %v425_v35  ;;  %v69_v38 = vld [vmem:[%s1758_s10 + $0x30] sm:$0xff] }
 0x13b   :  { %v116_v42 = vmul.f32 %v114_v34, %v110_v40  ;;  %1252 = vmatprep.mubr.msk.f32.mxu0 %vm83_vm0, %v121_v41  ;;  %v73_v34 = vld [vmem:[%s1756_s8 + $0x8] sm:$0xff] }
 0x13c   :  { %v518_v40 = vld [vmem:[%s1749_s1 + $0x8] sm:$0xff]  ;;  %1370 = vmatprep.subr.bf16.mxu1 %v1369_v39 }
 0x13d   :  { %v122_v43 = vadd.f32 %v120_v37, %v116_v42  ;;  %v1385_v37 = vpack.c.bf16 %v73_v34, %v72_v32  ;;  %v75_v42 = vld [vmem:[%s1756_s8 + $0x18] sm:$0xff] }
 0x13f   :  { %1253 = vmatmul.mubr.msk.f32.vlgmr.msra.gmra.mrb[0].mxu0 %vm83_vm0, %v122_v43 }
 0x140   :  { %1364 = vmatpush3.bf16.msra.mxu0 %v1361_v49 }
 0x141   :  { %1366 = vmatprep.subr.bf16.mxu0 %v1365_v60 }
 0x144   :  { %1368 = vmatpush3.bf16.msra.mxu0 %v1365_v60 }
 0x145   :  { %1378 = vmatprep.subr.bf16.mxu0 %v1377_v26 }
 0x212   :  { %v1254_v52 = vpop.f32.mrb[0].mxu0 }
 0x213   :  { %v205_v53 = vadd.f32 %v1254_v52, %v126_v51  ;;  %v199_v54 = vpop.f32.mrb[1].mxu0 }
 0x214   :  { %v200_v55 = vadd.f32 %v199_v54, %v126_v51 }
 0x215   :  { %v209_v57 = vmax.f32 %v205_v53, 0.0  ;;  %v384_v53 = vld [vmem:[%s1753_s5] sm:$0x3] }
 0x216   :  { %v208_v56 = vmax.f32 %v200_v55, 0.0  ;;  %v414_v54 = vrot.slane %v384_v53, %v1566_v31  ;;  %v420_v58 = vrot.slane %v384_v53, %v1572_v33 }
 0x218   :  { %1263 = vmatprep.mubr.msk.f32.mxu1 %vm83_vm0, %v208_v56 }
 0x219   :  { %1264 = vmatmul.mubr.msk.f32.vlgmr.msra.gmra.mrb[0].mxu1 %vm83_vm0, %v209_v57 }
 0x21a   :  { %1372 = vmatpush3.bf16.msra.mxu1 %v1369_v39 }
 0x2ec   :  { %v1265_v62 = vpop.f32.mrb[0].mxu1 }
 0x2ed   :  { %v292_v63 = vadd.f32 %v1265_v62, %v213_v61  ;;  %v286_v0 = vpop.f32.mrb[1].mxu1 }
 0x2ee   :  { %v287_v1 = vadd.f32 %v286_v0, %v213_v61  ;;  %v63_v0 = vld [vmem:[%s1758_s10] sm:$0xff] }
 0x2ef   :  { %v296_v3 = vmax.f32 %v292_v63, 0.0 }
 0x2f0   :  { %v295_v2 = vmax.f32 %v287_v1, 0.0  ;;  %v64_v1 = vld [vmem:[%s1758_s10 + $0x8] sm:$0xff] }
 0x2f2   :  { %1274 = vmatprep.mubr.msk.f32.mxu0 %vm83_vm0, %v295_v2  ;;  %v1393_v2 = vpack.c.bf16 %v64_v1, %v63_v0 }
 0x2f3   :  { %1275 = vmatmul.mubr.msk.f32.vlgmr.msra.gmra.mrb[2].mxu0 %vm83_vm0, %v296_v3  ;;  %v1176_v3 = vld [vmem:[%s1757_s9] ss:$0 sm:$0xff] }
 0x2f4   :  { %1380 = vmatpush3.bf16.msra.mxu0 %v1377_v26  ;;  %1296 = vmatprep.mubr.msk.f32.mxu0 %vm83_vm0, %v517_v36  ;;  %v1401_v26 = vpack.c.bf16 %v68_v25, %v67_v24 }
 0x2f5   :  { %1382 = vmatprep.subr.bf16.mxu0 %v1381_v30 }
 0x2f8   :  { %1384 = vmatpush3.bf16.msra.mxu0 %v1381_v30 }
 0x2f9   :  { %1386 = vmatprep.subr.bf16.mxu0 %v1385_v37 }
 0x2fb   :  { %1297 = vmatmul.mubr.msk.f32.vlgmr.msra.gmra.mrb[4].mxu0 %vm83_vm0, %v518_v40 }
 0x2fc   :  { %1388 = vmatpush3.bf16.msra.mxu0 %v1385_v37 }
 0x3c6   :  { %v1276_v6 = vpop.f32.mrb[2].mxu0 }
 0x3c7   :  { %v379_v7 = vadd.f32 %v1276_v6, %v300_v5  ;;  %v373_v8 = vpop.f32.mrb[3].mxu0 }
 0x3c8   :  { %v374_v9 = vadd.f32 %v373_v8, %v300_v5 }
 0x3c9   :  { %v383_v10 = vadd.f32 %v379_v7, %v122_v43  ;;  %v427_v43 = vld [vmem:[%s1754_s6 + $0x10] sm:$0xff] }
 0x3ca   :  { %v382_v11 = vadd.f32 %v374_v9, %v121_v41  ;;  %v74_v41 = vld [vmem:[%s1756_s8 + $0x10] sm:$0xff]  ;;  %v1373_v46 = vpack.c.bf16 %v428_v45, %v427_v43  ;;  %s1451_s8 = smov [#allocation2]  }
 0x3cb   :  { %v388_v12 = vsel %vm83_vm0, %v383_v10, 0.0  ;;  %v1389_v44 = vpack.c.bf16 %v75_v42, %v74_v41 }
 0x3cc   :  { %389 = vadd.xlane.f32.xlu1 %v388_v12  ;;  %v385_v13 = vsel %vm83_vm0, %v382_v11, 0.0  ;;  %1374 = vmatprep.subr.bf16.mxu1 %v1373_v46 }
 0x3cd   :  { %386 = vadd.xlane.f32.xlu0 %v385_v13  ;;  %1390 = vmatprep.subr.bf16.mxu0 %v1389_v44  ;;  %v65_v13 = vld [vmem:[%s1758_s10 + $0x10] sm:$0xff] }
 0x3ce   :  { %1392 = vmatpush3.bf16.msra.mxu0 %v1389_v44  ;;  %1376 = vmatpush3.bf16.msra.mxu1 %v1373_v46 }
 0x3cf   :  { %1394 = vmatprep.subr.bf16.mxu1 %v1393_v2 }
 0x459   :  { %v390_v14 = vpop.xlane.xlu1 %389 }
 0x45a   :  { %v392_v15 = vmul.f32 0.03125, %v390_v14  ;;  %v387_v16 = vpop.xlane.xlu0 %386  ;;  %v66_v14 = vld [vmem:[%s1758_s10 + $0x18] sm:$0xff] }
 0x45b   :  { %v391_v17 = vmul.f32 0.03125, %v387_v16  ;;  %v71_v16 = vld [vmem:[%s1759_s11] sm:$0xf] }
 0x45c   :  { %v394_v18 = vsub.f32 %v383_v10, %v392_v15  ;;  %v1397_v15 = vpack.c.bf16 %v66_v14, %v65_v13  ;;  %v866_v40 = vrot.slane %v71_v16, %v299_v4  ;;  %v952_v4 = vsub.s32 3, %v1563_v29 }
 0x45d   :  { %v393_v19 = vsub.f32 %v382_v11, %v391_v17  ;;  %v689_v17 = vrot.slane %v71_v16, %v1566_v31  ;;  %v777_v31 = vrot.slane %v71_v16, %v1572_v33  ;;  %v70_v33 = vld [vmem:[%s1758_s10 + $0x38] sm:$0xff] }
 0x45e   :  { %v396_v20 = vmul.f32 %v394_v18, %v394_v18  ;;  %v1405_v39 = vpack.c.bf16 %v70_v33, %v69_v38 }
 0x45f   :  { %v395_v21 = vmul.f32 %v393_v19, %v393_v19 }
 0x460   :  { %v400_v22 = vsel %vm83_vm0, %v396_v20, 0.0 }
 0x461   :  { %401 = vadd.xlane.f32.xlu1 %v400_v22  ;;  %v397_v23 = vsel %vm83_vm0, %v395_v21, 0.0 }
 0x462   :  { %398 = vadd.xlane.f32.xlu0 %v397_v23 }
 0x4ee   :  { %v402_v47 = vpop.xlane.xlu1 %401 }
 0x4ef   :  { %v404_v48 = vmul.f32 0.03125, %v402_v47  ;;  %v399_v49 = vpop.xlane.xlu0 %398  ;;  %v1039_v47 = vld [vmem:[%s1760_s12] sm:$0xff] }
 0x4f0   :  { %v403_v50 = vmul.f32 0.03125, %v399_v49 }
 0x4f1   :  { %v406_v51 = vadd.f32 1e-05, %v404_v48  ;;  %v1040_v48 = vld [vmem:[%s1760_s12 + $0x8] sm:$0xff]  ;;  %s1148_s12 = sshll.u32 %s1451_s8, 4  ;;  %s1149_s12 = int_to_ptr.vmem [resolvable:$true] %s1148_s12 }
 0x4f2   :  { %v405_v52 = vadd.f32 1e-05, %v403_v50  ;;  %v1409_v49 = vpack.c.bf16 %v1040_v48, %v1039_v47  ;;  %v953_v50 = vrot.slane %v71_v16, %v952_v4  ;;  %s1427_s0 = scalar_lea.vmem %s1149_s12, 256  ;;  %p1432_p1 = scmp.lt.s32.totalorder %s1149_s12, %s1149_s12 }
 0x4f3   :  { %1423 = vrsqrt.f32 %v406_v51  ;;  %p1428_p0 = scmp.ne.s32.totalorder %s1149_s12, %s1427_s0  ;;  %p1433_p2 = scmp.lt.s32.totalorder %s1427_s0, %s1427_s0 }
 0x4f4   :  { %1425 = vrsqrt.f32 %v405_v52  ;;  %1410 = vmatprep.subr.bf16.mxu0 %v1409_v49 }
 0x4f5   :  { %p1434_p3 = por %p1433_p2, %p1432_p1 }
 0x4f7   :  { %p1435_p4 = pnand %p1434_p3, %p1428_p0 }
 0x4fd   :  { %v1424_v55 = vpop.eup %1423 }
 0x4fe   :  { %v1426_v56 = vpop.eup %1425  ;;  %v410_v57 = vmul.f32 %v1424_v55, %v394_v18 }
 0x4ff   :  { %v409_v59 = vmul.f32 %v1426_v56, %v393_v19 }
 0x500   :  { %v416_v60 = vmul.f32 %v414_v54, %v410_v57 }
 0x501   :  { %v415_v61 = vmul.f32 %v414_v54, %v409_v59 }
 0x502   :  { %v422_v62 = vadd.f32 %v420_v58, %v416_v60 }
 0x503   :  { %v421_v63 = vadd.f32 %v420_v58, %v415_v61 }
 0x504   :  { %424 = vst.msk [vmem:[#allocation2 + $0x8] sm:$0xff] %vm83_vm0, %v422_v62 }
 0x505   :  { %1285 = vmatprep.mubr.msk.f32.mxu1 %vm83_vm0, %v421_v63  ;;  %423 = vst.msk [vmem:[#allocation2] sm:$0xff] %vm83_vm0, %v421_v63  ;;  %1307 = vmatprep.mubr.msk.f32.mxu0 %vm83_vm0, %v421_v63 }
 0x506   :  { %1286 = vmatmul.mubr.msk.f32.vlgmr.msra.gmra.mrb[2].mxu1 %vm83_vm0, %v422_v62  ;;  %1308 = vmatmul.mubr.msk.f32.vlgmr.msra.gmra.mrb[4].mxu0 %vm83_vm0, %v422_v62 }
 0x507   :  { %1396 = vmatpush3.bf16.msra.mxu1 %v1393_v2  ;;  %1412 = vmatpush3.bf16.msra.mxu0 %v1409_v49 }
 0x508   :  { %1398 = vmatprep.subr.bf16.mxu1 %v1397_v15 }
 0x5d9   :  { %v1676_v5 = vpop.f32.mrb[2].mxu1  ;;  %v1309_v6 = vpop.f32.mrb[4].mxu0 }
 0x5da   :  { %v683_v7 = vadd.f32 %v1309_v6, %v1176_v3  ;;  %v1678_v8 = vpop.f32.mrb[3].mxu1  ;;  %v666_v9 = vpop.f32.mrb[5].mxu0 }
 0x5db   :  { %v682_v10 = vadd.f32 %v1176_v3, %v666_v9 }
 0x5dc   :  { %v685_v12 = vmax.f32 %v683_v7, 0.0 }
 0x5dd   :  { %v684_v11 = vmax.f32 %v682_v10, 0.0 }
 0x5df   :  { %1314 = vmatprep.mubr.msk.f32.mxu1 %vm690_vm1, %v684_v11 }
 0x5e0   :  { %1315 = vmatmul.mubr.msk.f32.vlgmr.msra.gmra.mrb[4].mxu1 %vm690_vm1, %v685_v12 }
 0x5e1   :  { %1400 = vmatpush3.bf16.msra.mxu1 %v1397_v15 }
 0x5e2   :  { %1402 = vmatprep.subr.bf16.mxu1 %v1401_v26 }
 0x6b3   :  { %v1316_v18 = vpop.f32.mrb[4].mxu1 }
 0x6b4   :  { %v769_v19 = vadd.f32 %v1316_v18, %v689_v17  ;;  %v763_v20 = vpop.f32.mrb[5].mxu1 }
 0x6b5   :  { %v764_v21 = vadd.f32 %v763_v20, %v689_v17 }
 0x6b6   :  { %v773_v23 = vmax.f32 %v769_v19, 0.0 }
 0x6b7   :  { %v772_v22 = vmax.f32 %v764_v21, 0.0 }
 0x6b9   :  { %1321 = vmatprep.mubr.msk.f32.mxu1 %vm690_vm1, %v772_v22 }
 0x6ba   :  { %1322 = vmatmul.mubr.msk.f32.vlgmr.msra.gmra.mrb[6].mxu1 %vm690_vm1, %v773_v23 }
 0x6bb   :  { %1404 = vmatpush3.bf16.msra.mxu1 %v1401_v26 }
 0x6bc   :  { %1406 = vmatprep.subr.bf16.mxu1 %v1405_v39 }
 0x78d   :  { %v1323_v27 = vpop.f32.mrb[6].mxu1 }
 0x78e   :  { %v856_v28 = vadd.f32 %v1323_v27, %v777_v31  ;;  %v850_v30 = vpop.f32.mrb[7].mxu1 }
 0x78f   :  { %v851_v32 = vadd.f32 %v850_v30, %v777_v31 }
 0x790   :  { %v860_v34 = vadd.f32 %v856_v28, %v683_v7 }
 0x791   :  { %v859_v35 = vadd.f32 %v851_v32, %v682_v10 }
 0x792   :  { %v862_v37 = vmax.f32 %v860_v34, 0.0 }
 0x793   :  { %v861_v36 = vmax.f32 %v859_v35, 0.0 }
 0x795   :  { %1328 = vmatprep.mubr.msk.f32.mxu1 %vm690_vm1, %v861_v36 }
 0x796   :  { %1329 = vmatmul.mubr.msk.f32.vlgmr.msra.gmra.mrb[8].mxu1 %vm690_vm1, %v862_v37 }
 0x797   :  { %1408 = vmatpush3.bf16.msra.mxu1 %v1405_v39 }
 0x869   :  { %v1330_v41 = vpop.f32.mrb[8].mxu1 }
 0x86a   :  { %v945_v42 = vadd.f32 %v1330_v41, %v866_v40  ;;  %v939_v43 = vpop.f32.mrb[9].mxu1 }
 0x86b   :  { %v940_v44 = vadd.f32 %v939_v43, %v866_v40 }
 0x86c   :  { %v949_v46 = vmax.f32 %v945_v42, 0.0 }
 0x86d   :  { %v948_v45 = vmax.f32 %v940_v44, 0.0 }
 0x86f   :  { %1335 = vmatprep.mubr.msk.f32.mxu1 %vm690_vm1, %v948_v45 }
 0x870   :  { %1336 = vmatmul.mubr.msk.f32.vlgmr.msra.gmra.mrb[10].mxu1 %vm690_vm1, %v949_v46 }
 0x943   :  { %v1337_v51 = vpop.f32.mrb[10].mxu1 }
 0x944   :  { %v1032_v52 = vadd.f32 %v1337_v51, %v953_v50  ;;  %v1026_v53 = vpop.f32.mrb[11].mxu1 }
 0x945   :  { %v1027_v54 = vadd.f32 %v1026_v53, %v953_v50 }
 0x946   :  { %v1036_v55 = vadd.f32 %v1032_v52, %v860_v34 }
 0x947   :  { %v1035_v56 = vadd.f32 %v1027_v54, %v859_v35 }
 0x948   :  { %v1038_v58 = vmax.f32 %v1036_v55, 0.0 }
 0x949   :  { %v1037_v57 = vmax.f32 %v1035_v56, 0.0 }
 0x94b   :  { %1342 = vmatprep.mubr.msk.f32.mxu0 %vm690_vm1, %v1037_v57 }
 0x94c   :  { %1343 = vmatmul.mubr.msk.f32.vlgmr.msra.gmra.mrb[6].mxu0 %vm690_vm1, %v1038_v58 }
 0x94d   :  { %1438 = shalt.err (!%p1435_p4)
}
 0x94e   :  { %s1439_s22 = scalar_lea.hbm %s1762_s14, 256 }
 0x94f   :  { %p1440_p5 = scmp.ne.s32.totalorder %s1762_s14, %s1439_s22  ;;  %p1443_p6 = scmp.lt.u32.totalorder %s1439_s22, %s1762_s14 }
 0x951   :  { %p1445_p7 = pnand %p1443_p6, %p1440_p5 }
 0x953   :  { %1448 = shalt.err (!%p1445_p7)
}
 0x954   :  { %s1452_s27 = smov 128   ;;  %s1453_s9 = smov 8   ;;  %v1185_v29 = vld [vmem:[%s1761_s13] ss:$0 sm:$0xff]  ;;  %vm1137_vm2 = vcmask 48128   ;;  %vm1140_vm3 = vcmask 80896  }
 0x955   :  { %1154 = dma.vmem_to_hbm [thread:$0]  %s1149_s12, 256, %s1762_s14, [#allocation3], %s1452_s27, %s1452_s27, %s1453_s9  }
 0x956   :  { %s1454_s3 = smov 6   ;;  %v1169_v63 = vld [vmem:[%s1755_s7] ss:$0 sm:$0xff] }
 0x957   :  { %v514_v0 = vadd.f32 %v1676_v5, %v1169_v63  ;;  %v509_v1 = vadd.f32 %v1169_v63, %v1678_v8 }
 0xa1f   :  { %v1344_v59 = vpop.f32.mrb[6].mxu0 }
 0xa20   :  { %v1126_v60 = vadd.f32 %v1344_v59, %v1185_v29  ;;  %v1120_v61 = vpop.f32.mrb[7].mxu0 }
 0xa21   :  { %v1121_v62 = vadd.f32 %v1185_v29, %v1120_v61 }
 0xa22   :  { %1133 = vrot.lane.b32.xlu1 %v1126_v60, %s1454_s3 }
 0xa23   :  { %1131 = vrot.lane.b32.xlu0 %v1121_v62, %s1454_s3 }
 0xa94   :  { %v1134_v2 = vpop.permute.xlu1 %1133 }
 0xa95   :  { %v1139_v3 = vsel %vm1137_vm2, %v514_v0, %v1134_v2  ;;  %v1132_v6 = vpop.permute.xlu0 %1131 }
 0xa96   :  { %1142 = vst.msk [vmem:[%s1763_s15 + $0x8] sm:$0xff] %vm1140_vm3, %v1139_v3  ;;  %v1138_v7 = vsel %vm1137_vm2, %v509_v1, %v1132_v6 }
 0xa97   :  { %1141 = vst.msk [vmem:[%s1763_s15] sm:$0xff] %vm1140_vm3, %v1138_v7 }
 0xa98   :  { %1449 = dma.done.wait [#allocation3], 256  }
 0xa99   :  { %1450 = vsyncadd [#allocation3], 4294967040 }
 0xa9a   :  { %1162 = vsyncpa [#allocation3], 1 }

</bundles_post_ra>
